<compile_context>
chip_gen: v7x
topology: tpu7x:2x2x1
jax: 0.10.0
libtpu: 0.0.40
codegen_flags: <defaults>
</compile_context>

<pallas_src>
import functools

import jax
import jax.numpy as jnp
from jax import lax
from jax.experimental import pallas as pl
from jax.experimental.pallas import tpu as pltpu


def _cdiv(a, b):
    return (a + b - 1) // b


def _round_up(a, b):
    return _cdiv(a, b) * b


# ----------------------------------------------------------------------------
# Pallas kernel 1: GEMM (conv hot path via im2col).  bf16 MXU inputs, f32 acc,
# K collapsed into a single full-extent block (no accumulator / phase branches).
# ----------------------------------------------------------------------------
def _matmul_kernel(a_ref, b_ref, o_ref):
    o_ref[...] = jnp.dot(a_ref[...], b_ref[...], preferred_element_type=jnp.float32)


def matmul_pallas(a_bf16, b_bf16, max_tm=256):
    """a: (M, Kp) bf16, b: (Kp, Np) bf16 -> (M, Np) f32 via Pallas MXU GEMM."""
    M, Kp = a_bf16.shape
    Kp2, Np = b_bf16.shape
    assert Kp == Kp2 and Np % 128 == 0
    Mr = _round_up(M, 8)
    if Mr > max_tm:
        tm = max_tm
    elif Mr >= 128:
        tm = _round_up(_cdiv(Mr, 2), 8)   # >=2 row blocks helps dual-core (v7x)
    else:
        tm = Mr
    Mp = _cdiv(M, tm) * tm
    a_p = a_bf16 if Mp == M else jnp.pad(a_bf16, ((0, Mp - M), (0, 0)))

    out = pl.pallas_call(
        _matmul_kernel,
        out_shape=jax.ShapeDtypeStruct((Mp, Np), jnp.float32),
        grid_spec=pltpu.PrefetchScalarGridSpec(
            num_scalar_prefetch=0,
            grid=(Mp // tm,),
            in_specs=[
                pl.BlockSpec((tm, Kp), lambda i: (i, 0)),
                pl.BlockSpec((Kp, Np), lambda i: (0, 0)),
            ],
            out_specs=pl.BlockSpec((tm, Np), lambda i: (i, 0)),
        ),
        compiler_params=pltpu.CompilerParams(dimension_semantics=("parallel",)),
    )(a_p, b_bf16)
    return out if Mp == M else out[:M]


# ----------------------------------------------------------------------------
# Pallas kernel 2: fused lane-dense affine (BN scale/shift or bias) + activation
# (+ optional residual add).  Operates on (rows, W*C) slabs so the lane axis is
# naturally dense (no padding of tiny channel counts to 128).
# ----------------------------------------------------------------------------
def _affine_act_kernel(*refs, act, has_skip):
    if has_skip:
        x_ref, skip_ref, s_ref, b_ref, o_ref = refs
    else:
        x_ref, s_ref, b_ref, o_ref = refs
        skip_ref = None
    y = x_ref[...] * s_ref[...] + b_ref[...]
    if act == "relu":
        y = jnp.maximum(y, 0.0)
    elif act == "tanh":
        y = jnp.tanh(y)
    if skip_ref is not None:
        y = y + skip_ref[...]
    o_ref[...] = y


def affine_act_pallas(x, scale_row, shift_row, act="none", skip=None, max_rows=1024):
    """x: (M, D) f32; y = act(x * scale_row + shift_row) [+ skip]."""
    M, D = x.shape
    Mr = _round_up(M, 8)
    tr = min(max_rows, Mr)
    Mp = _cdiv(M, tr) * tr
    if Mp != M:
        x = jnp.pad(x, ((0, Mp - M), (0, 0)))
        if skip is not None:
            skip = jnp.pad(skip, ((0, Mp - M), (0, 0)))
    s2 = scale_row.reshape(1, D).astype(jnp.float32)
    b2 = shift_row.reshape(1, D).astype(jnp.float32)

    operands = [x]
    in_specs = [pl.BlockSpec((tr, D), lambda i: (i, 0))]
    if skip is not None:
        operands.append(skip)
        in_specs.append(pl.BlockSpec((tr, D), lambda i: (i, 0)))
    operands += [s2, b2]
    in_specs += [pl.BlockSpec((1, D), lambda i: (0, 0)),
                 pl.BlockSpec((1, D), lambda i: (0, 0))]

    out = pl.pallas_call(
        functools.partial(_affine_act_kernel, act=act, has_skip=skip is not None),
        out_shape=jax.ShapeDtypeStruct((Mp, D), jnp.float32),
        grid_spec=pltpu.PrefetchScalarGridSpec(
            num_scalar_prefetch=0,
            grid=(Mp // tr,),
            in_specs=in_specs,
            out_specs=pl.BlockSpec((tr, D), lambda i: (i, 0)),
        ),
        compiler_params=pltpu.CompilerParams(dimension_semantics=("parallel",)),
    )(*operands)
    return out if Mp == M else out[:M]


# ----------------------------------------------------------------------------
# One-time weight preparation (layout, padding, bf16 cast) -- outside forward
# ----------------------------------------------------------------------------
def _prep_mat(w_hwio):
    """(kh,kw,Cin,Cout) f32 -> ((Kp, Np) bf16 GEMM matrix, kh, kw, cout)."""
    kh, kw, cin, cout = w_hwio.shape
    K = kh * kw * cin
    Kp, Np = _round_up(K, 16), _round_up(cout, 128)
    w = jnp.zeros((Kp, Np), jnp.bfloat16)
    w = w.at[:K, :cout].set(w_hwio.reshape(K, cout).astype(jnp.bfloat16))
    return (w, kh, kw, cout)


def prep_conv(w_torch):
    """torch Conv2d weight (Cout,Cin,kh,kw) -> prepared GEMM weight."""
    return _prep_mat(jnp.transpose(w_torch, (2, 3, 1, 0)))


def prep_conv_transpose(w_torch):
    """torch ConvTranspose2d (Cin,Cout,3,3) -> 4 prepared sub-conv weights.

    y[2t,2s]     = x[t,s]*wf[1,1]
    y[2t,2s+1]   = x[t,s]*wf[1,0]   + x[t,s+1]*wf[1,2]
    y[2t+1,2s]   = x[t,s]*wf[0,1]   + x[t+1,s]*wf[2,1]
    y[2t+1,2s+1] = x[t,s]*wf[0,0]   + x[t,s+1]*wf[0,2]
                 + x[t+1,s]*wf[2,0] + x[t+1,s+1]*wf[2,2]
    with wf the spatially flipped kernel in HWIO (out-of-range inputs are 0).
    """
    wf = jnp.transpose(w_torch[:, :, ::-1, ::-1], (2, 3, 0, 1))  # (3,3,Cin,Cout)
    return {
        "ee": _prep_mat(wf[1:2, 1:2]),
        "eo": _prep_mat(wf[1:2, 0::2]),
        "oe": _prep_mat(wf[0::2, 1:2]),
        "oo": _prep_mat(wf[0::2, 0::2]),
    }


# ----------------------------------------------------------------------------
# Conv / ConvTranspose / BN built on the Pallas kernels (im2col etc. is glue)
# ----------------------------------------------------------------------------
def reflect_pad(x, p):
    return jnp.pad(x, ((0, 0), (p, p), (p, p), (0, 0)), mode="reflect")


def zero_pad(x, p):
    return jnp.pad(x, ((0, 0), (p, p), (p, p), (0, 0)))


def conv2d_nhwc(x, convw, stride=1):
    """x: (N,H,W,Cin) already spatially padded; convw = (w_mat, kh, kw, cout)."""
    w_mat, kh, kw, cout = convw
    N, H, W, Cin = x.shape
    Kp, Np = w_mat.shape
    K = kh * kw * Cin
    OH = (H - kh) // stride + 1
    OW = (W - kw) // stride + 1
    cols = [x[:, i:i + stride * (OH - 1) + 1:stride,
              j:j + stride * (OW - 1) + 1:stride, :]
            for i in range(kh) for j in range(kw)]
    # TODO(synk): the im2col slab is still materialized once in HBM; an in-kernel
    # (index_map-driven) im2col would remove this remaining bandwidth cost.
    a = jnp.stack(cols, axis=3).reshape(N * OH * OW, K).astype(jnp.bfloat16)
    if Kp != K:
        a = jnp.pad(a, ((0, 0), (0, Kp - K)))
    y = matmul_pallas(a, w_mat)
    return y[:, :cout].reshape(N, OH, OW, cout)


def conv_transpose2d_nhwc(x, sub_convws):
    """ConvTranspose2d(k=3,s=2,p=1,op=1) as 4 sub-convolutions (no zero-dilation)."""
    N, H, W, _ = x.shape
    cout = sub_convws["ee"][3]
    xr = jnp.pad(x, ((0, 0), (0, 1), (0, 0), (0, 0)))
    xc = jnp.pad(x, ((0, 0), (0, 0), (0, 1), (0, 0)))
    xrc = jnp.pad(x, ((0, 0), (0, 1), (0, 1), (0, 0)))
    y_ee = conv2d_nhwc(x, sub_convws["ee"])      # even rows, even cols
    y_eo = conv2d_nhwc(xc, sub_convws["eo"])     # even rows, odd cols
    y_oe = conv2d_nhwc(xr, sub_convws["oe"])     # odd rows, even cols
    y_oo = conv2d_nhwc(xrc, sub_convws["oo"])    # odd rows, odd cols
    y = jnp.stack([jnp.stack([y_ee, y_eo], axis=3),
                   jnp.stack([y_oe, y_oo], axis=3)], axis=2)   # (N,H,2,W,2,C)
    return y.reshape(N, 2 * H, 2 * W, cout)


def batch_norm_act(x, gamma, beta, act="none", skip=None, eps=1e-5):
    """BatchNorm2d (training-mode batch stats) with fused affine+act(+residual)."""
    N, H, W, C = x.shape
    # TODO(synk): per-channel sum / sum-of-squares are still XLA reductions (one
    # extra HBM read per BN); fusing them into the GEMM epilogue is a follow-up.
    m1 = jnp.mean(x, axis=(0, 1, 2))
    m2 = jnp.mean(jnp.square(x), axis=(0, 1, 2))
    var = jnp.maximum(m2 - m1 * m1, 0.0)     # biased variance, as in torch training fwd
    scale = gamma * lax.rsqrt(var + eps)
    shift = beta - m1 * scale
    y = affine_act_pallas(
        x.reshape(N * H, W * C),
        jnp.tile(scale, W), jnp.tile(shift, W),
        act=act,
        skip=None if skip is None else skip.reshape(N * H, W * C))
    return y.reshape(N, H, W, C)


def bias_act_nhwc(x, bias, act="tanh"):
    N, H, W, C = x.shape
    y = affine_act_pallas(x.reshape(N * H, W * C),
                          jnp.ones((W * C,), jnp.float32),
                          jnp.tile(bias, W), act=act)
    return y.reshape(N, H, W, C)


# ----------------------------------------------------------------------------
# Parameter init (deterministic, PyTorch weight-shape conventions) + prep
# ----------------------------------------------------------------------------
def init_generator_params(key, in_channels, out_channels, nf=8, n_blocks=2):
    keys = iter(jax.random.split(key, 64))

    def conv_w(cout, cin, k):   # torch Conv2d weight shape
        return jax.random.normal(next(keys), (cout, cin, k, k), jnp.float32) * 0.05

    def convT_w(cin, cout, k):  # torch ConvTranspose2d weight shape
        return jax.random.normal(next(keys), (cin, cout, k, k), jnp.float32) * 0.05

    def bn(c):                  # torch BatchNorm2d default init
        return (jnp.ones((c,), jnp.float32), jnp.zeros((c,), jnp.float32))

    p = {}
    p["conv_in"] = conv_w(nf, in_channels, 7)
    p["bn_in"] = bn(nf)
    p["down"] = []
    for i in range(2):
        mult = 2 ** i
        p["down"].append((conv_w(nf * mult * 2, nf * mult, 3), bn(nf * mult * 2)))
    mult = 4
    p["blocks"] = []
    for _ in range(n_blocks):
        p["blocks"].append((conv_w(nf * mult, nf * mult, 3), bn(nf * mult),
                            conv_w(nf * mult, nf * mult, 3), bn(nf * mult)))
    p["up"] = []
    for i in range(2):
        mult = 2 ** (2 - i)
        p["up"].append((convT_w(nf * mult, nf * mult // 2, 3), bn(nf * mult // 2)))
    p["conv_out_w"] = conv_w(out_channels, nf, 7)
    p["conv_out_b"] = jax.random.normal(next(keys), (out_channels,), jnp.float32) * 0.05
    return p


def prepare_params(p):
    """One-time layout prep: HWIO transpose, (K,Cout) reshape, pad, bf16 cast."""
    q = {}
    q["conv_in"] = prep_conv(p["conv_in"])
    q["bn_in"] = p["bn_in"]
    q["down"] = [(prep_conv(w), bn) for (w, bn) in p["down"]]
    q["blocks"] = [(prep_conv(w1), bn1, prep_conv(w2), bn2)
                   for (w1, bn1, w2, bn2) in p["blocks"]]
    q["up"] = [(prep_conv_transpose(w), bn) for (w, bn) in p["up"]]
    q["conv_out"] = prep_conv(p["conv_out_w"])
    q["conv_out_b"] = p["conv_out_b"]
    return q


# ----------------------------------------------------------------------------
# Forward pass (mirrors the nn.Sequential order of ResnetGenerator)
# ----------------------------------------------------------------------------
def resnet_generator_forward(params, x_nchw):
    x = jnp.transpose(x_nchw, (0, 2, 3, 1)).astype(jnp.float32)   # NCHW -> NHWC

    # stem: ReflectionPad(3) + Conv7x7 (no bias) + BN + ReLU
    h = conv2d_nhwc(reflect_pad(x, 3), params["conv_in"])
    h = batch_norm_act(h, *params["bn_in"], act="relu")

    # 2 downsampling Conv3x3 stride-2 pad-1 (zero pad) + BN + ReLU
    for convw, (g, b) in params["down"]:
        h = conv2d_nhwc(zero_pad(h, 1), convw, stride=2)
        h = batch_norm_act(h, g, b, act="relu")

    # ResnetBlocks: reflect pad 1, conv3x3, BN, ReLU, reflect pad 1, conv3x3, BN + skip
    # (residual add fused into the second BN's affine kernel)
    for convw1, (g1, b1), convw2, (g2, b2) in params["blocks"]:
        r = conv2d_nhwc(reflect_pad(h, 1), convw1)
        r = batch_norm_act(r, g1, b1, act="relu")
        r = conv2d_nhwc(reflect_pad(r, 1), convw2)
        h = batch_norm_act(r, g2, b2, act="none", skip=h)

    # 2 upsampling ConvTranspose3x3 stride-2 pad-1 outpad-1 + BN + ReLU
    for sub_ws, (g, b) in params["up"]:
        h = conv_transpose2d_nhwc(h, sub_ws)
        h = batch_norm_act(h, g, b, act="relu")

    # head: ReflectionPad(3) + Conv7x7 (with bias) + Tanh
    h = conv2d_nhwc(reflect_pad(h, 3), params["conv_out"])
    h = bias_act_nhwc(h, params["conv_out_b"], act="tanh")

    return jnp.transpose(h, (0, 3, 1, 2))   # back to NCHW


# TODO(synk): nn.Dropout(0.5) path is unused (use_dropout=False default) and not implemented.

if __name__ == "__main__":
    key = jax.random.PRNGKey(0)
    pkey, xkey = jax.random.split(key)

    in_channels, out_channels = 3, 3
    nf, n_blocks = 8, 2           # small analogue of last_layer_filters=64, n_blocks=6
    batch, spatial = 2, 16

    raw = init_generator_params(pkey, in_channels, out_channels, nf=nf, n_blocks=n_blocks)
    params = prepare_params(raw)            # one-time weight layout/pad/bf16 prep
    x = jax.random.normal(xkey, (batch, in_channels, spatial, spatial), jnp.float32)

    fwd = jax.jit(lambda inp: resnet_generator_forward(params, inp))
    y = jax.block_until_ready(fwd(x))
    assert y.shape == (batch, out_channels, spatial, spatial), y.shape
    assert bool(jnp.all(jnp.isfinite(y))) and bool(jnp.all(jnp.abs(y) <= 1.0 + 1e-5))
    print("KERNEL_OK")
</pallas_src>

<mosaic_0001>
module attributes {stable_mosaic.version = 11 : i64} {
  func.func @_matmul_kernel(%arg0: i32, %arg1: memref<256x160xbf16, #tpu.memory_space<vmem>>, %arg2: memref<160x128xbf16, #tpu.memory_space<vmem>>, %arg3: memref<256x128xf32, #tpu.memory_space<vmem>>) attributes {dimension_semantics = [#tpu.dimension_semantics<parallel>], iteration_bounds = array<i64: 2>, scalar_prefetch = 0 : i64, scratch_operands = 0 : i64, tpu.core_type = #tpu.core_type<tc>, window_params = [{transform_indices = @transform_0, window_bounds = array<i64: 256, 160>}, {pipeline_mode = #tpu.pipeline_mode<synchronous>, transform_indices = @transform_1, window_bounds = array<i64: 160, 128>}, {transform_indices = @transform_2, window_bounds = array<i64: 256, 128>}]} {
    %c0 = arith.constant 0 : index
    %c0_0 = arith.constant 0 : index
    %0 = vector.load %arg1[%c0, %c0_0] : memref<256x160xbf16, #tpu.memory_space<vmem>>, vector<256x160xbf16>
    %c0_1 = arith.constant 0 : index
    %c0_2 = arith.constant 0 : index
    %1 = vector.load %arg2[%c0_1, %c0_2] : memref<160x128xbf16, #tpu.memory_space<vmem>>, vector<160x128xbf16>
    %cst = arith.constant dense<0.000000e+00> : vector<256x128xf32>
    %2 = tpu.matmul %0, %1, %cst {dimension_numbers = #tpu.dot_dimension_numbers<[1], [0], [0], [1], [0, 0, 1, 1], [], []>} : vector<256x160xbf16>, vector<160x128xbf16>, vector<256x128xf32> -> vector<256x128xf32>
    %c0_3 = arith.constant 0 : index
    %c0_4 = arith.constant 0 : index
    %3 = vector.load %arg3[%c0_3, %c0_4] : memref<256x128xf32, #tpu.memory_space<vmem>>, vector<256x128xf32>
    tpu.vector_store %arg3[%c0_3, %c0_4], %2 {strides = array<i32>} : memref<256x128xf32, #tpu.memory_space<vmem>>, vector<256x128xf32>,
    return
  }
  func.func @transform_0(%arg0: i32) -> (i32, i32) {
    %c0_i32 = arith.constant 0 : i32
    %c0_i32_0 = arith.constant 0 : i32
    return %arg0, %c0_i32 : i32, i32
  }
  func.func @transform_1(%arg0: i32) -> (i32, i32) {
    %c0_i32 = arith.constant 0 : i32
    %c0_i32_0 = arith.constant 0 : i32
    %c0_i32_1 = arith.constant 0 : i32
    return %c0_i32, %c0_i32_0 : i32, i32
  }
  func.func @transform_2(%arg0: i32) -> (i32, i32) {
    %c0_i32 = arith.constant 0 : i32
    %c0_i32_0 = arith.constant 0 : i32
    return %arg0, %c0_i32 : i32, i32
  }
}

module attributes {stable_mosaic.version = 11 : i64} {
  func.func @_affine_act_kernel(%arg0: i32, %arg1: memref<32x128xf32, #tpu.memory_space<vmem>>, %arg2: memref<1x128xf32, #tpu.memory_space<vmem>>, %arg3: memref<1x128xf32, #tpu.memory_space<vmem>>, %arg4: memref<32x128xf32, #tpu.memory_space<vmem>>) attributes {dimension_semantics = [#tpu.dimension_semantics<parallel>], iteration_bounds = array<i64: 1>, scalar_prefetch = 0 : i64, scratch_operands = 0 : i64, tpu.core_type = #tpu.core_type<tc>, window_params = [{transform_indices = @transform_0, window_bounds = array<i64: 32, 128>}, {pipeline_mode = #tpu.pipeline_mode<synchronous>, transform_indices = @transform_1, window_bounds = array<i64: 1, 128>}, {pipeline_mode = #tpu.pipeline_mode<synchronous>, transform_indices = @transform_2, window_bounds = array<i64: 1, 128>}, {transform_indices = @transform_3, window_bounds = array<i64: 32, 128>}]} {
    %c0 = arith.constant 0 : index
    %c0_0 = arith.constant 0 : index
    %0 = vector.load %arg1[%c0, %c0_0] : memref<32x128xf32, #tpu.memory_space<vmem>>, vector<32x128xf32>
    %c0_1 = arith.constant 0 : index
    %c0_2 = arith.constant 0 : index
    %1 = vector.load %arg2[%c0_1, %c0_2] : memref<1x128xf32, #tpu.memory_space<vmem>>, vector<1x128xf32>
    %2 = vector.broadcast %1 : vector<1x128xf32> to vector<32x128xf32>
    %3 = arith.mulf %0, %2 : vector<32x128xf32>
    %c0_3 = arith.constant 0 : index
    %c0_4 = arith.constant 0 : index
    %4 = vector.load %arg3[%c0_3, %c0_4] : memref<1x128xf32, #tpu.memory_space<vmem>>, vector<1x128xf32>
    %5 = vector.broadcast %4 : vector<1x128xf32> to vector<32x128xf32>
    %6 = arith.addf %3, %5 : vector<32x128xf32>
    %cst = arith.constant 0.000000e+00 : f32
    %7 = vector.broadcast %cst : f32 to vector<32x128xf32>
    %8 = arith.maximumf %6, %7 : vector<32x128xf32>
    %c0_5 = arith.constant 0 : index
    %c0_6 = arith.constant 0 : index
    %9 = vector.load %arg4[%c0_5, %c0_6] : memref<32x128xf32, #tpu.memory_space<vmem>>, vector<32x128xf32>
    tpu.vector_store %arg4[%c0_5, %c0_6], %8 {strides = array<i32>} : memref<32x128xf32, #tpu.memory_space<vmem>>, vector<32x128xf32>,
    return
  }
  func.func @transform_0(%arg0: i32) -> (i32, i32) {
    %c0_i32 = arith.constant 0 : i32
    %c0_i32_0 = arith.constant 0 : i32
    return %arg0, %c0_i32 : i32, i32
  }
  func.func @transform_1(%arg0: i32) -> (i32, i32) {
    %c0_i32 = arith.constant 0 : i32
    %c0_i32_0 = arith.constant 0 : i32
    %c0_i32_1 = arith.constant 0 : i32
    return %c0_i32, %c0_i32_0 : i32, i32
  }
  func.func @transform_2(%arg0: i32) -> (i32, i32) {
    %c0_i32 = arith.constant 0 : i32
    %c0_i32_0 = arith.constant 0 : i32
    %c0_i32_1 = arith.constant 0 : i32
    return %c0_i32, %c0_i32_0 : i32, i32
  }
  func.func @transform_3(%arg0: i32) -> (i32, i32) {
    %c0_i32 = arith.constant 0 : i32
    %c0_i32_0 = arith.constant 0 : i32
    return %arg0, %c0_i32 : i32, i32
  }
}

module attributes {stable_mosaic.version = 11 : i64} {
  func.func @_matmul_kernel(%arg0: i32, %arg1: memref<64x80xbf16, #tpu.memory_space<vmem>>, %arg2: memref<80x128xbf16, #tpu.memory_space<vmem>>, %arg3: memref<64x128xf32, #tpu.memory_space<vmem>>) attributes {dimension_semantics = [#tpu.dimension_semantics<parallel>], iteration_bounds = array<i64: 2>, scalar_prefetch = 0 : i64, scratch_operands = 0 : i64, tpu.core_type = #tpu.core_type<tc>, window_params = [{transform_indices = @transform_0, window_bounds = array<i64: 64, 80>}, {pipeline_mode = #tpu.pipeline_mode<synchronous>, transform_indices = @transform_1, window_bounds = array<i64: 80, 128>}, {transform_indices = @transform_2, window_bounds = array<i64: 64, 128>}]} {
    %c0 = arith.constant 0 : index
    %c0_0 = arith.constant 0 : index
    %0 = vector.load %arg1[%c0, %c0_0] : memref<64x80xbf16, #tpu.memory_space<vmem>>, vector<64x80xbf16>
    %c0_1 = arith.constant 0 : index
    %c0_2 = arith.constant 0 : index
    %1 = vector.load %arg2[%c0_1, %c0_2] : memref<80x128xbf16, #tpu.memory_space<vmem>>, vector<80x128xbf16>
    %cst = arith.constant dense<0.000000e+00> : vector<64x128xf32>
    %2 = tpu.matmul %0, %1, %cst {dimension_numbers = #tpu.dot_dimension_numbers<[1], [0], [0], [1], [0, 0, 1, 1], [], []>} : vector<64x80xbf16>, vector<80x128xbf16>, vector<64x128xf32> -> vector<64x128xf32>
    %c0_3 = arith.constant 0 : index
    %c0_4 = arith.constant 0 : index
    %3 = vector.load %arg3[%c0_3, %c0_4] : memref<64x128xf32, #tpu.memory_space<vmem>>, vector<64x128xf32>
    tpu.vector_store %arg3[%c0_3, %c0_4], %2 {strides = array<i32>} : memref<64x128xf32, #tpu.memory_space<vmem>>, vector<64x128xf32>,
    return
  }
  func.func @transform_0(%arg0: i32) -> (i32, i32) {
    %c0_i32 = arith.constant 0 : i32
    %c0_i32_0 = arith.constant 0 : i32
    return %arg0, %c0_i32 : i32, i32
  }
  func.func @transform_1(%arg0: i32) -> (i32, i32) {
    %c0_i32 = arith.constant 0 : i32
    %c0_i32_0 = arith.constant 0 : i32
    %c0_i32_1 = arith.constant 0 : i32
    return %c0_i32, %c0_i32_0 : i32, i32
  }
  func.func @transform_2(%arg0: i32) -> (i32, i32) {
    %c0_i32 = arith.constant 0 : i32
    %c0_i32_0 = arith.constant 0 : i32
    return %arg0, %c0_i32 : i32, i32
  }
}

module attributes {stable_mosaic.version = 11 : i64} {
  func.func @_affine_act_kernel(%arg0: i32, %arg1: memref<16x128xf32, #tpu.memory_space<vmem>>, %arg2: memref<1x128xf32, #tpu.memory_space<vmem>>, %arg3: memref<1x128xf32, #tpu.memory_space<vmem>>, %arg4: memref<16x128xf32, #tpu.memory_space<vmem>>) attributes {dimension_semantics = [#tpu.dimension_semantics<parallel>], iteration_bounds = array<i64: 1>, scalar_prefetch = 0 : i64, scratch_operands = 0 : i64, tpu.core_type = #tpu.core_type<tc>, window_params = [{transform_indices = @transform_0, window_bounds = array<i64: 16, 128>}, {pipeline_mode = #tpu.pipeline_mode<synchronous>, transform_indices = @transform_1, window_bounds = array<i64: 1, 128>}, {pipeline_mode = #tpu.pipeline_mode<synchronous>, transform_indices = @transform_2, window_bounds = array<i64: 1, 128>}, {transform_indices = @transform_3, window_bounds = array<i64: 16, 128>}]} {
    %c0 = arith.constant 0 : index
    %c0_0 = arith.constant 0 : index
    %0 = vector.load %arg1[%c0, %c0_0] : memref<16x128xf32, #tpu.memory_space<vmem>>, vector<16x128xf32>
    %c0_1 = arith.constant 0 : index
    %c0_2 = arith.constant 0 : index
    %1 = vector.load %arg2[%c0_1, %c0_2] : memref<1x128xf32, #tpu.memory_space<vmem>>, vector<1x128xf32>
    %2 = vector.broadcast %1 : vector<1x128xf32> to vector<16x128xf32>
    %3 = arith.mulf %0, %2 : vector<16x128xf32>
    %c0_3 = arith.constant 0 : index
    %c0_4 = arith.constant 0 : index
    %4 = vector.load %arg3[%c0_3, %c0_4] : memref<1x128xf32, #tpu.memory_space<vmem>>, vector<1x128xf32>
    %5 = vector.broadcast %4 : vector<1x128xf32> to vector<16x128xf32>
    %6 = arith.addf %3, %5 : vector<16x128xf32>
    %cst = arith.constant 0.000000e+00 : f32
    %7 = vector.broadcast %cst : f32 to vector<16x128xf32>
    %8 = arith.maximumf %6, %7 : vector<16x128xf32>
    %c0_5 = arith.constant 0 : index
    %c0_6 = arith.constant 0 : index
    %9 = vector.load %arg4[%c0_5, %c0_6] : memref<16x128xf32, #tpu.memory_space<vmem>>, vector<16x128xf32>
    tpu.vector_store %arg4[%c0_5, %c0_6], %8 {strides = array<i32>} : memref<16x128xf32, #tpu.memory_space<vmem>>, vector<16x128xf32>,
    return
  }
  func.func @transform_0(%arg0: i32) -> (i32, i32) {
    %c0_i32 = arith.constant 0 : i32
    %c0_i32_0 = arith.constant 0 : i32
    return %arg0, %c0_i32 : i32, i32
  }
  func.func @transform_1(%arg0: i32) -> (i32, i32) {
    %c0_i32 = arith.constant 0 : i32
    %c0_i32_0 = arith.constant 0 : i32
    %c0_i32_1 = arith.constant 0 : i32
    return %c0_i32, %c0_i32_0 : i32, i32
  }
  func.func @transform_2(%arg0: i32) -> (i32, i32) {
    %c0_i32 = arith.constant 0 : i32
    %c0_i32_0 = arith.constant 0 : i32
    %c0_i32_1 = arith.constant 0 : i32
    return %c0_i32, %c0_i32_0 : i32, i32
  }
  func.func @transform_3(%arg0: i32) -> (i32, i32) {
    %c0_i32 = arith.constant 0 : i32
    %c0_i32_0 = arith.constant 0 : i32
    return %arg0, %c0_i32 : i32, i32
  }
}

module attributes {stable_mosaic.version = 11 : i64} {
  func.func @_matmul_kernel(%arg0: i32, %arg1: memref<32x144xbf16, #tpu.memory_space<vmem>>, %arg2: memref<144x128xbf16, #tpu.memory_space<vmem>>, %arg3: memref<32x128xf32, #tpu.memory_space<vmem>>) attributes {dimension_semantics = [#tpu.dimension_semantics<parallel>], iteration_bounds = array<i64: 1>, scalar_prefetch = 0 : i64, scratch_operands = 0 : i64, tpu.core_type = #tpu.core_type<tc>, window_params = [{transform_indices = @transform_0, window_bounds = array<i64: 32, 144>}, {pipeline_mode = #tpu.pipeline_mode<synchronous>, transform_indices = @transform_1, window_bounds = array<i64: 144, 128>}, {transform_indices = @transform_2, window_bounds = array<i64: 32, 128>}]} {
    %c0 = arith.constant 0 : index
    %c0_0 = arith.constant 0 : index
    %0 = vector.load %arg1[%c0, %c0_0] : memref<32x144xbf16, #tpu.memory_space<vmem>>, vector<32x144xbf16>
    %c0_1 = arith.constant 0 : index
    %c0_2 = arith.constant 0 : index
    %1 = vector.load %arg2[%c0_1, %c0_2] : memref<144x128xbf16, #tpu.memory_space<vmem>>, vector<144x128xbf16>
    %cst = arith.constant dense<0.000000e+00> : vector<32x128xf32>
    %2 = tpu.matmul %0, %1, %cst {dimension_numbers = #tpu.dot_dimension_numbers<[1], [0], [0], [1], [0, 0, 1, 1], [], []>} : vector<32x144xbf16>, vector<144x128xbf16>, vector<32x128xf32> -> vector<32x128xf32>
    %c0_3 = arith.constant 0 : index
    %c0_4 = arith.constant 0 : index
    %3 = vector.load %arg3[%c0_3, %c0_4] : memref<32x128xf32, #tpu.memory_space<vmem>>, vector<32x128xf32>
    tpu.vector_store %arg3[%c0_3, %c0_4], %2 {strides = array<i32>} : memref<32x128xf32, #tpu.memory_space<vmem>>, vector<32x128xf32>,
    return
  }
  func.func @transform_0(%arg0: i32) -> (i32, i32) {
    %c0_i32 = arith.constant 0 : i32
    %c0_i32_0 = arith.constant 0 : i32
    return %arg0, %c0_i32 : i32, i32
  }
  func.func @transform_1(%arg0: i32) -> (i32, i32) {
    %c0_i32 = arith.constant 0 : i32
    %c0_i32_0 = arith.constant 0 : i32
    %c0_i32_1 = arith.constant 0 : i32
    return %c0_i32, %c0_i32_0 : i32, i32
  }
  func.func @transform_2(%arg0: i32) -> (i32, i32) {
    %c0_i32 = arith.constant 0 : i32
    %c0_i32_0 = arith.constant 0 : i32
    return %arg0, %c0_i32 : i32, i32
  }
}

module attributes {stable_mosaic.version = 11 : i64} {
  func.func @_affine_act_kernel(%arg0: i32, %arg1: memref<8x128xf32, #tpu.memory_space<vmem>>, %arg2: memref<1x128xf32, #tpu.memory_space<vmem>>, %arg3: memref<1x128xf32, #tpu.memory_space<vmem>>, %arg4: memref<8x128xf32, #tpu.memory_space<vmem>>) attributes {dimension_semantics = [#tpu.dimension_semantics<parallel>], iteration_bounds = array<i64: 1>, scalar_prefetch = 0 : i64, scratch_operands = 0 : i64, tpu.core_type = #tpu.core_type<tc>, window_params = [{transform_indices = @transform_0, window_bounds = array<i64: 8, 128>}, {pipeline_mode = #tpu.pipeline_mode<synchronous>, transform_indices = @transform_1, window_bounds = array<i64: 1, 128>}, {pipeline_mode = #tpu.pipeline_mode<synchronous>, transform_indices = @transform_2, window_bounds = array<i64: 1, 128>}, {transform_indices = @transform_3, window_bounds = array<i64: 8, 128>}]} {
    %c0 = arith.constant 0 : index
    %c0_0 = arith.constant 0 : index
    %0 = vector.load %arg1[%c0, %c0_0] : memref<8x128xf32, #tpu.memory_space<vmem>>, vector<8x128xf32>
    %c0_1 = arith.constant 0 : index
    %c0_2 = arith.constant 0 : index
    %1 = vector.load %arg2[%c0_1, %c0_2] : memref<1x128xf32, #tpu.memory_space<vmem>>, vector<1x128xf32>
    %2 = vector.broadcast %1 : vector<1x128xf32> to vector<8x128xf32>
    %3 = arith.mulf %0, %2 : vector<8x128xf32>
    %c0_3 = arith.constant 0 : index
    %c0_4 = arith.constant 0 : index
    %4 = vector.load %arg3[%c0_3, %c0_4] : memref<1x128xf32, #tpu.memory_space<vmem>>, vector<1x128xf32>
    %5 = vector.broadcast %4 : vector<1x128xf32> to vector<8x128xf32>
    %6 = arith.addf %3, %5 : vector<8x128xf32>
    %cst = arith.constant 0.000000e+00 : f32
    %7 = vector.broadcast %cst : f32 to vector<8x128xf32>
    %8 = arith.maximumf %6, %7 : vector<8x128xf32>
    %c0_5 = arith.constant 0 : index
    %c0_6 = arith.constant 0 : index
    %9 = vector.load %arg4[%c0_5, %c0_6] : memref<8x128xf32, #tpu.memory_space<vmem>>, vector<8x128xf32>
    tpu.vector_store %arg4[%c0_5, %c0_6], %8 {strides = array<i32>} : memref<8x128xf32, #tpu.memory_space<vmem>>, vector<8x128xf32>,
    return
  }
  func.func @transform_0(%arg0: i32) -> (i32, i32) {
    %c0_i32 = arith.constant 0 : i32
    %c0_i32_0 = arith.constant 0 : i32
    return %arg0, %c0_i32 : i32, i32
  }
  func.func @transform_1(%arg0: i32) -> (i32, i32) {
    %c0_i32 = arith.constant 0 : i32
    %c0_i32_0 = arith.constant 0 : i32
    %c0_i32_1 = arith.constant 0 : i32
    return %c0_i32, %c0_i32_0 : i32, i32
  }
  func.func @transform_2(%arg0: i32) -> (i32, i32) {
    %c0_i32 = arith.constant 0 : i32
    %c0_i32_0 = arith.constant 0 : i32
    %c0_i32_1 = arith.constant 0 : i32
    return %c0_i32, %c0_i32_0 : i32, i32
  }
  func.func @transform_3(%arg0: i32) -> (i32, i32) {
    %c0_i32 = arith.constant 0 : i32
    %c0_i32_0 = arith.constant 0 : i32
    return %arg0, %c0_i32 : i32, i32
  }
}

module attributes {stable_mosaic.version = 11 : i64} {
  func.func @_affine_act_kernel(%arg0: i32, %arg1: memref<8x128xf32, #tpu.memory_space<vmem>>, %arg2: memref<8x128xf32, #tpu.memory_space<vmem>>, %arg3: memref<1x128xf32, #tpu.memory_space<vmem>>, %arg4: memref<1x128xf32, #tpu.memory_space<vmem>>, %arg5: memref<8x128xf32, #tpu.memory_space<vmem>>) attributes {dimension_semantics = [#tpu.dimension_semantics<parallel>], iteration_bounds = array<i64: 1>, scalar_prefetch = 0 : i64, scratch_operands = 0 : i64, tpu.core_type = #tpu.core_type<tc>, window_params = [{transform_indices = @transform_0, window_bounds = array<i64: 8, 128>}, {transform_indices = @transform_1, window_bounds = array<i64: 8, 128>}, {pipeline_mode = #tpu.pipeline_mode<synchronous>, transform_indices = @transform_2, window_bounds = array<i64: 1, 128>}, {pipeline_mode = #tpu.pipeline_mode<synchronous>, transform_indices = @transform_3, window_bounds = array<i64: 1, 128>}, {transform_indices = @transform_4, window_bounds = array<i64: 8, 128>}]} {
    %c0 = arith.constant 0 : index
    %c0_0 = arith.constant 0 : index
    %0 = vector.load %arg1[%c0, %c0_0] : memref<8x128xf32, #tpu.memory_space<vmem>>, vector<8x128xf32>
    %c0_1 = arith.constant 0 : index
    %c0_2 = arith.constant 0 : index
    %1 = vector.load %arg3[%c0_1, %c0_2] : memref<1x128xf32, #tpu.memory_space<vmem>>, vector<1x128xf32>
    %2 = vector.broadcast %1 : vector<1x128xf32> to vector<8x128xf32>
    %3 = arith.mulf %0, %2 : vector<8x128xf32>
    %c0_3 = arith.constant 0 : index
    %c0_4 = arith.constant 0 : index
    %4 = vector.load %arg4[%c0_3, %c0_4] : memref<1x128xf32, #tpu.memory_space<vmem>>, vector<1x128xf32>
    %5 = vector.broadcast %4 : vector<1x128xf32> to vector<8x128xf32>
    %6 = arith.addf %3, %5 : vector<8x128xf32>
    %c0_5 = arith.constant 0 : index
    %c0_6 = arith.constant 0 : index
    %7 = vector.load %arg2[%c0_5, %c0_6] : memref<8x128xf32, #tpu.memory_space<vmem>>, vector<8x128xf32>
    %8 = arith.addf %6, %7 : vector<8x128xf32>
    %c0_7 = arith.constant 0 : index
    %c0_8 = arith.constant 0 : index
    %9 = vector.load %arg5[%c0_7, %c0_8] : memref<8x128xf32, #tpu.memory_space<vmem>>, vector<8x128xf32>
    tpu.vector_store %arg5[%c0_7, %c0_8], %8 {strides = array<i32>} : memref<8x128xf32, #tpu.memory_space<vmem>>, vector<8x128xf32>,
    return
  }
  func.func @transform_0(%arg0: i32) -> (i32, i32) {
    %c0_i32 = arith.constant 0 : i32
    %c0_i32_0 = arith.constant 0 : i32
    return %arg0, %c0_i32 : i32, i32
  }
  func.func @transform_1(%arg0: i32) -> (i32, i32) {
    %c0_i32 = arith.constant 0 : i32
    %c0_i32_0 = arith.constant 0 : i32
    return %arg0, %c0_i32 : i32, i32
  }
  func.func @transform_2(%arg0: i32) -> (i32, i32) {
    %c0_i32 = arith.constant 0 : i32
    %c0_i32_0 = arith.constant 0 : i32
    %c0_i32_1 = arith.constant 0 : i32
    return %c0_i32, %c0_i32_0 : i32, i32
  }
  func.func @transform_3(%arg0: i32) -> (i32, i32) {
    %c0_i32 = arith.constant 0 : i32
    %c0_i32_0 = arith.constant 0 : i32
    %c0_i32_1 = arith.constant 0 : i32
    return %c0_i32, %c0_i32_0 : i32, i32
  }
  func.func @transform_4(%arg0: i32) -> (i32, i32) {
    %c0_i32 = arith.constant 0 : i32
    %c0_i32_0 = arith.constant 0 : i32
    return %arg0, %c0_i32 : i32, i32
  }
}

module attributes {stable_mosaic.version = 11 : i64} {
  func.func @_matmul_kernel(%arg0: i32, %arg1: memref<32x288xbf16, #tpu.memory_space<vmem>>, %arg2: memref<288x128xbf16, #tpu.memory_space<vmem>>, %arg3: memref<32x128xf32, #tpu.memory_space<vmem>>) attributes {dimension_semantics = [#tpu.dimension_semantics<parallel>], iteration_bounds = array<i64: 1>, scalar_prefetch = 0 : i64, scratch_operands = 0 : i64, tpu.core_type = #tpu.core_type<tc>, window_params = [{transform_indices = @transform_0, window_bounds = array<i64: 32, 288>}, {pipeline_mode = #tpu.pipeline_mode<synchronous>, transform_indices = @transform_1, window_bounds = array<i64: 288, 128>}, {transform_indices = @transform_2, window_bounds = array<i64: 32, 128>}]} {
    %c0 = arith.constant 0 : index
    %c0_0 = arith.constant 0 : index
    %0 = vector.load %arg1[%c0, %c0_0] : memref<32x288xbf16, #tpu.memory_space<vmem>>, vector<32x288xbf16>
    %c0_1 = arith.constant 0 : index
    %c0_2 = arith.constant 0 : index
    %1 = vector.load %arg2[%c0_1, %c0_2] : memref<288x128xbf16, #tpu.memory_space<vmem>>, vector<288x128xbf16>
    %cst = arith.constant dense<0.000000e+00> : vector<32x128xf32>
    %2 = tpu.matmul %0, %1, %cst {dimension_numbers = #tpu.dot_dimension_numbers<[1], [0], [0], [1], [0, 0, 1, 1], [], []>} : vector<32x288xbf16>, vector<288x128xbf16>, vector<32x128xf32> -> vector<32x128xf32>
    %c0_3 = arith.constant 0 : index
    %c0_4 = arith.constant 0 : index
    %3 = vector.load %arg3[%c0_3, %c0_4] : memref<32x128xf32, #tpu.memory_space<vmem>>, vector<32x128xf32>
    tpu.vector_store %arg3[%c0_3, %c0_4], %2 {strides = array<i32>} : memref<32x128xf32, #tpu.memory_space<vmem>>, vector<32x128xf32>,
    return
  }
  func.func @transform_0(%arg0: i32) -> (i32, i32) {
    %c0_i32 = arith.constant 0 : i32
    %c0_i32_0 = arith.constant 0 : i32
    return %arg0, %c0_i32 : i32, i32
  }
  func.func @transform_1(%arg0: i32) -> (i32, i32) {
    %c0_i32 = arith.constant 0 : i32
    %c0_i32_0 = arith.constant 0 : i32
    %c0_i32_1 = arith.constant 0 : i32
    return %c0_i32, %c0_i32_0 : i32, i32
  }
  func.func @transform_2(%arg0: i32) -> (i32, i32) {
    %c0_i32 = arith.constant 0 : i32
    %c0_i32_0 = arith.constant 0 : i32
    return %arg0, %c0_i32 : i32, i32
  }
}

module attributes {stable_mosaic.version = 11 : i64} {
  func.func @_matmul_kernel(%arg0: i32, %arg1: memref<32x64xbf16, #tpu.memory_space<vmem>>, %arg2: memref<64x128xbf16, #tpu.memory_space<vmem>>, %arg3: memref<32x128xf32, #tpu.memory_space<vmem>>) attributes {dimension_semantics = [#tpu.dimension_semantics<parallel>], iteration_bounds = array<i64: 1>, scalar_prefetch = 0 : i64, scratch_operands = 0 : i64, tpu.core_type = #tpu.core_type<tc>, window_params = [{transform_indices = @transform_0, window_bounds = array<i64: 32, 64>}, {pipeline_mode = #tpu.pipeline_mode<synchronous>, transform_indices = @transform_1, window_bounds = array<i64: 64, 128>}, {transform_indices = @transform_2, window_bounds = array<i64: 32, 128>}]} {
    %c0 = arith.constant 0 : index
    %c0_0 = arith.constant 0 : index
    %0 = vector.load %arg1[%c0, %c0_0] : memref<32x64xbf16, #tpu.memory_space<vmem>>, vector<32x64xbf16>
    %c0_1 = arith.constant 0 : index
    %c0_2 = arith.constant 0 : index
    %1 = vector.load %arg2[%c0_1, %c0_2] : memref<64x128xbf16, #tpu.memory_space<vmem>>, vector<64x128xbf16>
    %cst = arith.constant dense<0.000000e+00> : vector<32x128xf32>
    %2 = tpu.matmul %0, %1, %cst {dimension_numbers = #tpu.dot_dimension_numbers<[1], [0], [0], [1], [0, 0, 1, 1], [], []>} : vector<32x64xbf16>, vector<64x128xbf16>, vector<32x128xf32> -> vector<32x128xf32>
    %c0_3 = arith.constant 0 : index
    %c0_4 = arith.constant 0 : index
    %3 = vector.load %arg3[%c0_3, %c0_4] : memref<32x128xf32, #tpu.memory_space<vmem>>, vector<32x128xf32>
    tpu.vector_store %arg3[%c0_3, %c0_4], %2 {strides = array<i32>} : memref<32x128xf32, #tpu.memory_space<vmem>>, vector<32x128xf32>,
    return
  }
  func.func @transform_0(%arg0: i32) -> (i32, i32) {
    %c0_i32 = arith.constant 0 : i32
    %c0_i32_0 = arith.constant 0 : i32
    return %arg0, %c0_i32 : i32, i32
  }
  func.func @transform_1(%arg0: i32) -> (i32, i32) {
    %c0_i32 = arith.constant 0 : i32
    %c0_i32_0 = arith.constant 0 : i32
    %c0_i32_1 = arith.constant 0 : i32
    return %c0_i32, %c0_i32_0 : i32, i32
  }
  func.func @transform_2(%arg0: i32) -> (i32, i32) {
    %c0_i32 = arith.constant 0 : i32
    %c0_i32_0 = arith.constant 0 : i32
    return %arg0, %c0_i32 : i32, i32
  }
}

module attributes {stable_mosaic.version = 11 : i64} {
  func.func @_matmul_kernel(%arg0: i32, %arg1: memref<32x32xbf16, #tpu.memory_space<vmem>>, %arg2: memref<32x128xbf16, #tpu.memory_space<vmem>>, %arg3: memref<32x128xf32, #tpu.memory_space<vmem>>) attributes {dimension_semantics = [#tpu.dimension_semantics<parallel>], iteration_bounds = array<i64: 1>, scalar_prefetch = 0 : i64, scratch_operands = 0 : i64, tpu.core_type = #tpu.core_type<tc>, window_params = [{transform_indices = @transform_0, window_bounds = array<i64: 32, 32>}, {pipeline_mode = #tpu.pipeline_mode<synchronous>, transform_indices = @transform_1, window_bounds = array<i64: 32, 128>}, {transform_indices = @transform_2, window_bounds = array<i64: 32, 128>}]} {
    %c0 = arith.constant 0 : index
    %c0_0 = arith.constant 0 : index
    %0 = vector.load %arg1[%c0, %c0_0] : memref<32x32xbf16, #tpu.memory_space<vmem>>, vector<32x32xbf16>
    %c0_1 = arith.constant 0 : index
    %c0_2 = arith.constant 0 : index
    %1 = vector.load %arg2[%c0_1, %c0_2] : memref<32x128xbf16, #tpu.memory_space<vmem>>, vector<32x128xbf16>
    %cst = arith.constant dense<0.000000e+00> : vector<32x128xf32>
    %2 = tpu.matmul %0, %1, %cst {dimension_numbers = #tpu.dot_dimension_numbers<[1], [0], [0], [1], [0, 0, 1, 1], [], []>} : vector<32x32xbf16>, vector<32x128xbf16>, vector<32x128xf32> -> vector<32x128xf32>
    %c0_3 = arith.constant 0 : index
    %c0_4 = arith.constant 0 : index
    %3 = vector.load %arg3[%c0_3, %c0_4] : memref<32x128xf32, #tpu.memory_space<vmem>>, vector<32x128xf32>
    tpu.vector_store %arg3[%c0_3, %c0_4], %2 {strides = array<i32>} : memref<32x128xf32, #tpu.memory_space<vmem>>, vector<32x128xf32>,
    return
  }
  func.func @transform_0(%arg0: i32) -> (i32, i32) {
    %c0_i32 = arith.constant 0 : i32
    %c0_i32_0 = arith.constant 0 : i32
    return %arg0, %c0_i32 : i32, i32
  }
  func.func @transform_1(%arg0: i32) -> (i32, i32) {
    %c0_i32 = arith.constant 0 : i32
    %c0_i32_0 = arith.constant 0 : i32
    %c0_i32_1 = arith.constant 0 : i32
    return %c0_i32, %c0_i32_0 : i32, i32
  }
  func.func @transform_2(%arg0: i32) -> (i32, i32) {
    %c0_i32 = arith.constant 0 : i32
    %c0_i32_0 = arith.constant 0 : i32
    return %arg0, %c0_i32 : i32, i32
  }
}

module attributes {stable_mosaic.version = 11 : i64} {
  func.func @_matmul_kernel(%arg0: i32, %arg1: memref<32x128xbf16, #tpu.memory_space<vmem>>, %arg2: memref<128x128xbf16, #tpu.memory_space<vmem>>, %arg3: memref<32x128xf32, #tpu.memory_space<vmem>>) attributes {dimension_semantics = [#tpu.dimension_semantics<parallel>], iteration_bounds = array<i64: 1>, scalar_prefetch = 0 : i64, scratch_operands = 0 : i64, tpu.core_type = #tpu.core_type<tc>, window_params = [{transform_indices = @transform_0, window_bounds = array<i64: 32, 128>}, {pipeline_mode = #tpu.pipeline_mode<synchronous>, transform_indices = @transform_1, window_bounds = array<i64: 128, 128>}, {transform_indices = @transform_2, window_bounds = array<i64: 32, 128>}]} {
    %c0 = arith.constant 0 : index
    %c0_0 = arith.constant 0 : index
    %0 = vector.load %arg1[%c0, %c0_0] : memref<32x128xbf16, #tpu.memory_space<vmem>>, vector<32x128xbf16>
    %c0_1 = arith.constant 0 : index
    %c0_2 = arith.constant 0 : index
    %1 = vector.load %arg2[%c0_1, %c0_2] : memref<128x128xbf16, #tpu.memory_space<vmem>>, vector<128x128xbf16>
    %cst = arith.constant dense<0.000000e+00> : vector<32x128xf32>
    %2 = tpu.matmul %0, %1, %cst {dimension_numbers = #tpu.dot_dimension_numbers<[1], [0], [0], [1], [0, 0, 1, 1], [], []>} : vector<32x128xbf16>, vector<128x128xbf16>, vector<32x128xf32> -> vector<32x128xf32>
    %c0_3 = arith.constant 0 : index
    %c0_4 = arith.constant 0 : index
    %3 = vector.load %arg3[%c0_3, %c0_4] : memref<32x128xf32, #tpu.memory_space<vmem>>, vector<32x128xf32>
    tpu.vector_store %arg3[%c0_3, %c0_4], %2 {strides = array<i32>} : memref<32x128xf32, #tpu.memory_space<vmem>>, vector<32x128xf32>,
    return
  }
  func.func @transform_0(%arg0: i32) -> (i32, i32) {
    %c0_i32 = arith.constant 0 : i32
    %c0_i32_0 = arith.constant 0 : i32
    return %arg0, %c0_i32 : i32, i32
  }
  func.func @transform_1(%arg0: i32) -> (i32, i32) {
    %c0_i32 = arith.constant 0 : i32
    %c0_i32_0 = arith.constant 0 : i32
    %c0_i32_1 = arith.constant 0 : i32
    return %c0_i32, %c0_i32_0 : i32, i32
  }
  func.func @transform_2(%arg0: i32) -> (i32, i32) {
    %c0_i32 = arith.constant 0 : i32
    %c0_i32_0 = arith.constant 0 : i32
    return %arg0, %c0_i32 : i32, i32
  }
}

module attributes {stable_mosaic.version = 11 : i64} {
  func.func @_matmul_kernel(%arg0: i32, %arg1: memref<64x32xbf16, #tpu.memory_space<vmem>>, %arg2: memref<32x128xbf16, #tpu.memory_space<vmem>>, %arg3: memref<64x128xf32, #tpu.memory_space<vmem>>) attributes {dimension_semantics = [#tpu.dimension_semantics<parallel>], iteration_bounds = array<i64: 2>, scalar_prefetch = 0 : i64, scratch_operands = 0 : i64, tpu.core_type = #tpu.core_type<tc>, window_params = [{transform_indices = @transform_0, window_bounds = array<i64: 64, 32>}, {pipeline_mode = #tpu.pipeline_mode<synchronous>, transform_indices = @transform_1, window_bounds = array<i64: 32, 128>}, {transform_indices = @transform_2, window_bounds = array<i64: 64, 128>}]} {
    %c0 = arith.constant 0 : index
    %c0_0 = arith.constant 0 : index
    %0 = vector.load %arg1[%c0, %c0_0] : memref<64x32xbf16, #tpu.memory_space<vmem>>, vector<64x32xbf16>
    %c0_1 = arith.constant 0 : index
    %c0_2 = arith.constant 0 : index
    %1 = vector.load %arg2[%c0_1, %c0_2] : memref<32x128xbf16, #tpu.memory_space<vmem>>, vector<32x128xbf16>
    %cst = arith.constant dense<0.000000e+00> : vector<64x128xf32>
    %2 = tpu.matmul %0, %1, %cst {dimension_numbers = #tpu.dot_dimension_numbers<[1], [0], [0], [1], [0, 0, 1, 1], [], []>} : vector<64x32xbf16>, vector<32x128xbf16>, vector<64x128xf32> -> vector<64x128xf32>
    %c0_3 = arith.constant 0 : index
    %c0_4 = arith.constant 0 : index
    %3 = vector.load %arg3[%c0_3, %c0_4] : memref<64x128xf32, #tpu.memory_space<vmem>>, vector<64x128xf32>
    tpu.vector_store %arg3[%c0_3, %c0_4], %2 {strides = array<i32>} : memref<64x128xf32, #tpu.memory_space<vmem>>, vector<64x128xf32>,
    return
  }
  func.func @transform_0(%arg0: i32) -> (i32, i32) {
    %c0_i32 = arith.constant 0 : i32
    %c0_i32_0 = arith.constant 0 : i32
    return %arg0, %c0_i32 : i32, i32
  }
  func.func @transform_1(%arg0: i32) -> (i32, i32) {
    %c0_i32 = arith.constant 0 : i32
    %c0_i32_0 = arith.constant 0 : i32
    %c0_i32_1 = arith.constant 0 : i32
    return %c0_i32, %c0_i32_0 : i32, i32
  }
  func.func @transform_2(%arg0: i32) -> (i32, i32) {
    %c0_i32 = arith.constant 0 : i32
    %c0_i32_0 = arith.constant 0 : i32
    return %arg0, %c0_i32 : i32, i32
  }
}

module attributes {stable_mosaic.version = 11 : i64} {
  func.func @_matmul_kernel(%arg0: i32, %arg1: memref<64x16xbf16, #tpu.memory_space<vmem>>, %arg2: memref<16x128xbf16, #tpu.memory_space<vmem>>, %arg3: memref<64x128xf32, #tpu.memory_space<vmem>>) attributes {dimension_semantics = [#tpu.dimension_semantics<parallel>], iteration_bounds = array<i64: 2>, scalar_prefetch = 0 : i64, scratch_operands = 0 : i64, tpu.core_type = #tpu.core_type<tc>, window_params = [{transform_indices = @transform_0, window_bounds = array<i64: 64, 16>}, {pipeline_mode = #tpu.pipeline_mode<synchronous>, transform_indices = @transform_1, window_bounds = array<i64: 16, 128>}, {transform_indices = @transform_2, window_bounds = array<i64: 64, 128>}]} {
    %c0 = arith.constant 0 : index
    %c0_0 = arith.constant 0 : index
    %0 = vector.load %arg1[%c0, %c0_0] : memref<64x16xbf16, #tpu.memory_space<vmem>>, vector<64x16xbf16>
    %c0_1 = arith.constant 0 : index
    %c0_2 = arith.constant 0 : index
    %1 = vector.load %arg2[%c0_1, %c0_2] : memref<16x128xbf16, #tpu.memory_space<vmem>>, vector<16x128xbf16>
    %cst = arith.constant dense<0.000000e+00> : vector<64x128xf32>
    %2 = tpu.matmul %0, %1, %cst {dimension_numbers = #tpu.dot_dimension_numbers<[1], [0], [0], [1], [0, 0, 1, 1], [], []>} : vector<64x16xbf16>, vector<16x128xbf16>, vector<64x128xf32> -> vector<64x128xf32>
    %c0_3 = arith.constant 0 : index
    %c0_4 = arith.constant 0 : index
    %3 = vector.load %arg3[%c0_3, %c0_4] : memref<64x128xf32, #tpu.memory_space<vmem>>, vector<64x128xf32>
    tpu.vector_store %arg3[%c0_3, %c0_4], %2 {strides = array<i32>} : memref<64x128xf32, #tpu.memory_space<vmem>>, vector<64x128xf32>,
    return
  }
  func.func @transform_0(%arg0: i32) -> (i32, i32) {
    %c0_i32 = arith.constant 0 : i32
    %c0_i32_0 = arith.constant 0 : i32
    return %arg0, %c0_i32 : i32, i32
  }
  func.func @transform_1(%arg0: i32) -> (i32, i32) {
    %c0_i32 = arith.constant 0 : i32
    %c0_i32_0 = arith.constant 0 : i32
    %c0_i32_1 = arith.constant 0 : i32
    return %c0_i32, %c0_i32_0 : i32, i32
  }
  func.func @transform_2(%arg0: i32) -> (i32, i32) {
    %c0_i32 = arith.constant 0 : i32
    %c0_i32_0 = arith.constant 0 : i32
    return %arg0, %c0_i32 : i32, i32
  }
}

module attributes {stable_mosaic.version = 11 : i64} {
  func.func @_matmul_kernel(%arg0: i32, %arg1: memref<64x64xbf16, #tpu.memory_space<vmem>>, %arg2: memref<64x128xbf16, #tpu.memory_space<vmem>>, %arg3: memref<64x128xf32, #tpu.memory_space<vmem>>) attributes {dimension_semantics = [#tpu.dimension_semantics<parallel>], iteration_bounds = array<i64: 2>, scalar_prefetch = 0 : i64, scratch_operands = 0 : i64, tpu.core_type = #tpu.core_type<tc>, window_params = [{transform_indices = @transform_0, window_bounds = array<i64: 64, 64>}, {pipeline_mode = #tpu.pipeline_mode<synchronous>, transform_indices = @transform_1, window_bounds = array<i64: 64, 128>}, {transform_indices = @transform_2, window_bounds = array<i64: 64, 128>}]} {
    %c0 = arith.constant 0 : index
    %c0_0 = arith.constant 0 : index
    %0 = vector.load %arg1[%c0, %c0_0] : memref<64x64xbf16, #tpu.memory_space<vmem>>, vector<64x64xbf16>
    %c0_1 = arith.constant 0 : index
    %c0_2 = arith.constant 0 : index
    %1 = vector.load %arg2[%c0_1, %c0_2] : memref<64x128xbf16, #tpu.memory_space<vmem>>, vector<64x128xbf16>
    %cst = arith.constant dense<0.000000e+00> : vector<64x128xf32>
    %2 = tpu.matmul %0, %1, %cst {dimension_numbers = #tpu.dot_dimension_numbers<[1], [0], [0], [1], [0, 0, 1, 1], [], []>} : vector<64x64xbf16>, vector<64x128xbf16>, vector<64x128xf32> -> vector<64x128xf32>
    %c0_3 = arith.constant 0 : index
    %c0_4 = arith.constant 0 : index
    %3 = vector.load %arg3[%c0_3, %c0_4] : memref<64x128xf32, #tpu.memory_space<vmem>>, vector<64x128xf32>
    tpu.vector_store %arg3[%c0_3, %c0_4], %2 {strides = array<i32>} : memref<64x128xf32, #tpu.memory_space<vmem>>, vector<64x128xf32>,
    return
  }
  func.func @transform_0(%arg0: i32) -> (i32, i32) {
    %c0_i32 = arith.constant 0 : i32
    %c0_i32_0 = arith.constant 0 : i32
    return %arg0, %c0_i32 : i32, i32
  }
  func.func @transform_1(%arg0: i32) -> (i32, i32) {
    %c0_i32 = arith.constant 0 : i32
    %c0_i32_0 = arith.constant 0 : i32
    %c0_i32_1 = arith.constant 0 : i32
    return %c0_i32, %c0_i32_0 : i32, i32
  }
  func.func @transform_2(%arg0: i32) -> (i32, i32) {
    %c0_i32 = arith.constant 0 : i32
    %c0_i32_0 = arith.constant 0 : i32
    return %arg0, %c0_i32 : i32, i32
  }
}

module attributes {stable_mosaic.version = 11 : i64} {
  func.func @_matmul_kernel(%arg0: i32, %arg1: memref<256x400xbf16, #tpu.memory_space<vmem>>, %arg2: memref<400x128xbf16, #tpu.memory_space<vmem>>, %arg3: memref<256x128xf32, #tpu.memory_space<vmem>>) attributes {dimension_semantics = [#tpu.dimension_semantics<parallel>], iteration_bounds = array<i64: 2>, scalar_prefetch = 0 : i64, scratch_operands = 0 : i64, tpu.core_type = #tpu.core_type<tc>, window_params = [{transform_indices = @transform_0, window_bounds = array<i64: 256, 400>}, {pipeline_mode = #tpu.pipeline_mode<synchronous>, transform_indices = @transform_1, window_bounds = array<i64: 400, 128>}, {transform_indices = @transform_2, window_bounds = array<i64: 256, 128>}]} {
    %c0 = arith.constant 0 : index
    %c0_0 = arith.constant 0 : index
    %0 = vector.load %arg1[%c0, %c0_0] : memref<256x400xbf16, #tpu.memory_space<vmem>>, vector<256x400xbf16>
    %c0_1 = arith.constant 0 : index
    %c0_2 = arith.constant 0 : index
    %1 = vector.load %arg2[%c0_1, %c0_2] : memref<400x128xbf16, #tpu.memory_space<vmem>>, vector<400x128xbf16>
    %cst = arith.constant dense<0.000000e+00> : vector<256x128xf32>
    %2 = tpu.matmul %0, %1, %cst {dimension_numbers = #tpu.dot_dimension_numbers<[1], [0], [0], [1], [0, 0, 1, 1], [], []>} : vector<256x400xbf16>, vector<400x128xbf16>, vector<256x128xf32> -> vector<256x128xf32>
    %c0_3 = arith.constant 0 : index
    %c0_4 = arith.constant 0 : index
    %3 = vector.load %arg3[%c0_3, %c0_4] : memref<256x128xf32, #tpu.memory_space<vmem>>, vector<256x128xf32>
    tpu.vector_store %arg3[%c0_3, %c0_4], %2 {strides = array<i32>} : memref<256x128xf32, #tpu.memory_space<vmem>>, vector<256x128xf32>,
    return
  }
  func.func @transform_0(%arg0: i32) -> (i32, i32) {
    %c0_i32 = arith.constant 0 : i32
    %c0_i32_0 = arith.constant 0 : i32
    return %arg0, %c0_i32 : i32, i32
  }
  func.func @transform_1(%arg0: i32) -> (i32, i32) {
    %c0_i32 = arith.constant 0 : i32
    %c0_i32_0 = arith.constant 0 : i32
    %c0_i32_1 = arith.constant 0 : i32
    return %c0_i32, %c0_i32_0 : i32, i32
  }
  func.func @transform_2(%arg0: i32) -> (i32, i32) {
    %c0_i32 = arith.constant 0 : i32
    %c0_i32_0 = arith.constant 0 : i32
    return %arg0, %c0_i32 : i32, i32
  }
}

module attributes {stable_mosaic.version = 11 : i64} {
  func.func @_affine_act_kernel(%arg0: i32, %arg1: memref<32x48xf32, #tpu.memory_space<vmem>>, %arg2: memref<1x48xf32, #tpu.memory_space<vmem>>, %arg3: memref<1x48xf32, #tpu.memory_space<vmem>>, %arg4: memref<32x48xf32, #tpu.memory_space<vmem>>) attributes {dimension_semantics = [#tpu.dimension_semantics<parallel>], iteration_bounds = array<i64: 1>, scalar_prefetch = 0 : i64, scratch_operands = 0 : i64, tpu.core_type = #tpu.core_type<tc>, window_params = [{transform_indices = @transform_0, window_bounds = array<i64: 32, 48>}, {pipeline_mode = #tpu.pipeline_mode<synchronous>, transform_indices = @transform_1, window_bounds = array<i64: 1, 48>}, {pipeline_mode = #tpu.pipeline_mode<synchronous>, transform_indices = @transform_2, window_bounds = array<i64: 1, 48>}, {transform_indices = @transform_3, window_bounds = array<i64: 32, 48>}]} {
    %c0 = arith.constant 0 : index
    %c0_0 = arith.constant 0 : index
    %0 = vector.load %arg1[%c0, %c0_0] : memref<32x48xf32, #tpu.memory_space<vmem>>, vector<32x48xf32>
    %c0_1 = arith.constant 0 : index
    %c0_2 = arith.constant 0 : index
    %1 = vector.load %arg2[%c0_1, %c0_2] : memref<1x48xf32, #tpu.memory_space<vmem>>, vector<1x48xf32>
    %2 = vector.broadcast %1 : vector<1x48xf32> to vector<32x48xf32>
    %3 = arith.mulf %0, %2 : vector<32x48xf32>
    %c0_3 = arith.constant 0 : index
    %c0_4 = arith.constant 0 : index
    %4 = vector.load %arg3[%c0_3, %c0_4] : memref<1x48xf32, #tpu.memory_space<vmem>>, vector<1x48xf32>
    %5 = vector.broadcast %4 : vector<1x48xf32> to vector<32x48xf32>
    %6 = arith.addf %3, %5 : vector<32x48xf32>
    %7 = math.tanh %6 : vector<32x48xf32>
    %c0_5 = arith.constant 0 : index
    %c0_6 = arith.constant 0 : index
    %8 = vector.load %arg4[%c0_5, %c0_6] : memref<32x48xf32, #tpu.memory_space<vmem>>, vector<32x48xf32>
    tpu.vector_store %arg4[%c0_5, %c0_6], %7 {strides = array<i32>} : memref<32x48xf32, #tpu.memory_space<vmem>>, vector<32x48xf32>,
    return
  }
  func.func @transform_0(%arg0: i32) -> (i32, i32) {
    %c0_i32 = arith.constant 0 : i32
    %c0_i32_0 = arith.constant 0 : i32
    return %arg0, %c0_i32 : i32, i32
  }
  func.func @transform_1(%arg0: i32) -> (i32, i32) {
    %c0_i32 = arith.constant 0 : i32
    %c0_i32_0 = arith.constant 0 : i32
    %c0_i32_1 = arith.constant 0 : i32
    return %c0_i32, %c0_i32_0 : i32, i32
  }
  func.func @transform_2(%arg0: i32) -> (i32, i32) {
    %c0_i32 = arith.constant 0 : i32
    %c0_i32_0 = arith.constant 0 : i32
    %c0_i32_1 = arith.constant 0 : i32
    return %c0_i32, %c0_i32_0 : i32, i32
  }
  func.func @transform_3(%arg0: i32) -> (i32, i32) {
    %c0_i32 = arith.constant 0 : i32
    %c0_i32_0 = arith.constant 0 : i32
    return %arg0, %c0_i32 : i32, i32
  }
}

</mosaic_0001>

<bundles_post_ra>
// kernel: tile.97
= control target key start
LH: loop header
LB: loop body
LE: loop exit
PB: predicated region body
PF: predicated region fallthrough
CT: control target
= control target key end

     0   :  { %s28_s0 = inlined_call_operand.vmem [shape: f32[8], index: 0, kind: input, shape index: {}]   ;;  %s29_s1 = inlined_call_operand.vmem [shape: f32[16,8], index: 1, kind: output, shape index: {}]  }
   0x1   :  { %v4_v0 = vld [vmem:[%s28_s0] ss:$0 sm:$0xff] }
   0x2   :  { %5 = vst [vmem:[%s29_s1] sm:$0xff] %v4_v0  ;;  %8 = vst [vmem:[%s29_s1 + $0x8] sm:$0xff] %v4_v0 }

// kernel: tile.102
= control target key start
LH: loop header
LB: loop body
LE: loop exit
PB: predicated region body
PF: predicated region fallthrough
CT: control target
= control target key end

     0   :  { %s131_s10 = smov 120   ;;  %s132_s11 = smov 104   ;;  %vm3_vm0 = vcmask 64512   ;;  %vm9_vm1 = vcmask 1048512   ;;  %vm15_vm2 = vcmask 982912   ;;  %vm21_vm3 = vcmask 917312   ;;  %s207_s0 = inlined_call_operand.vmem [shape: f32[16,8], index: 0, kind: input, shape index: {}]   ;;  %s208_s1 = inlined_call_operand.vmem [shape: f32[1,128], index: 1, kind: output, shape index: {}]  }
   0x1   :  { %v101_v0 = vld [vmem:[%s207_s0 + $0xf] sm:$0x1]   ;;  %v103_v1 = vld [vmem:[%s207_s0 + $0xd] sm:$0x1]   ;;  %v102_v2 = vld [vmem:[%s207_s0 + $0xe] sm:$0x1]  }
   0x2   :  { %7 = vrot.lane.b32.xlu0 %v101_v0, %s131_s10  ;;  %19 = vrot.lane.b32.xlu1 %v103_v1, %s132_s11  ;;  %v104_v3 = vld [vmem:[%s207_s0 + $0xc] sm:$0x1]   ;;  %s133_s16 = smov 112   ;;  %s134_s17 = smov 96   ;;  %v105_v4 = vld [vmem:[%s207_s0 + $0xb] sm:$0x1]  }
   0x3   :  { %v106_v5 = vld [vmem:[%s207_s0 + $0xa] sm:$0x1]   ;;  %v2_v6 = vld [vmem:[%s207_s0] sm:$0x1]   ;;  %s135_s24 = smov 88   ;;  %s136_s25 = smov 80  }
   0x4   :  { %4 = vst.msk [vmem:[#allocation0] sm:$0x1] %vm3_vm0, %v2_v6   ;;  %v107_v7 = vld [vmem:[%s207_s0 + $0x9] sm:$0x1]   ;;  %v108_v8 = vld [vmem:[%s207_s0 + $0x8] sm:$0x1]  }
   0x5   :  { %s137_s30 = smov 72   ;;  %s138_s2 = smov 64   ;;  %v109_v9 = vld [vmem:[%s207_s0 + $0x7] sm:$0x1]   ;;  %v110_v10 = vld [vmem:[%s207_s0 + $0x6] sm:$0x1]  }
   0x6   :  { %13 = vrot.lane.b32.xlu0 %v102_v2, %s133_s16  ;;  %25 = vrot.lane.b32.xlu1 %v104_v3, %s134_s17  ;;  %s139_s7 = smov 56   ;;  %s140_s8 = smov 48   ;;  %v111_v11 = vld [vmem:[%s207_s0 + $0x5] sm:$0x1]   ;;  %v112_v12 = vld [vmem:[%s207_s0 + $0x4] sm:$0x1]  }
   0x7   :  { %s141_s13 = smov 40   ;;  %s142_s14 = smov 32   ;;  %v113_v13 = vld [vmem:[%s207_s0 + $0x3] sm:$0x1]   ;;  %v114_v14 = vld [vmem:[%s207_s0 + $0x2] sm:$0x1]  }
   0x8   :  { %s143_s19 = smov 24   ;;  %s144_s20 = smov 16   ;;  %v115_v15 = vld [vmem:[%s207_s0 + $0x1] sm:$0x1]   ;;  %vm27_vm4 = vcmask 851712   ;;  %vm33_vm5 = vcmask 786112  }
   0x9   :  { %s145_s0 = smov 8   ;;  %vm39_vm6 = vcmask 720512   ;;  %vm45_vm7 = vcmask 654912   ;;  %vm51_vm8 = vcmask 589312   ;;  %vm57_vm9 = vcmask 523712  }
   0xa   :  { %31 = vrot.lane.b32.xlu0 %v105_v4, %s135_s24  ;;  %37 = vrot.lane.b32.xlu1 %v106_v5, %s136_s25  ;;  %vm63_vm10 = vcmask 458112   ;;  %vm69_vm11 = vcmask 392512   ;;  %vm75_vm12 = vcmask 326912   ;;  %vm81_vm13 = vcmask 261312  }
   0xb   :  { %vm87_vm14 = vcmask 195712   ;;  %vm93_vm15 = vcmask 130112  }
   0xe   :  { %43 = vrot.lane.b32.xlu0 %v107_v7, %s137_s30  ;;  %49 = vrot.lane.b32.xlu1 %v108_v8, %s138_s2 }
  0x12   :  { %55 = vrot.lane.b32.xlu0 %v109_v9, %s139_s7  ;;  %61 = vrot.lane.b32.xlu1 %v110_v10, %s140_s8 }
  0x16   :  { %67 = vrot.lane.b32.xlu0 %v111_v11, %s141_s13  ;;  %73 = vrot.lane.b32.xlu1 %v112_v12, %s142_s14 }
  0x1a   :  { %79 = vrot.lane.b32.xlu0 %v113_v13, %s143_s19  ;;  %85 = vrot.lane.b32.xlu1 %v114_v14, %s144_s20 }
  0x1e   :  { %91 = vrot.lane.b32.xlu0 %v115_v15, %s145_s0 }
  0x74   :  { %v8_v16 = vpop.permute.xlu0 %7   ;;  %v20_v17 = vpop.permute.xlu1 %19  }
  0x75   :  { %10 = vst.msk [vmem:[#allocation0] sm:$0x1] %vm9_vm1, %v8_v16  }
  0x78   :  { %v14_v18 = vpop.permute.xlu0 %13   ;;  %v26_v19 = vpop.permute.xlu1 %25  }
  0x79   :  { %16 = vst.msk [vmem:[#allocation0] sm:$0x1] %vm15_vm2, %v14_v18  }
  0x7a   :  { %22 = vst.msk [vmem:[#allocation0] sm:$0x1] %vm21_vm3, %v20_v17  }
  0x7b   :  { %28 = vst.msk [vmem:[#allocation0] sm:$0x1] %vm27_vm4, %v26_v19  }
  0x7c   :  { %v32_v20 = vpop.permute.xlu0 %31   ;;  %v38_v21 = vpop.permute.xlu1 %37  }
  0x7d   :  { %34 = vst.msk [vmem:[#allocation0] sm:$0x1] %vm33_vm5, %v32_v20  }
  0x7e   :  { %40 = vst.msk [vmem:[#allocation0] sm:$0x1] %vm39_vm6, %v38_v21  }
  0x80   :  { %v44_v22 = vpop.permute.xlu0 %43   ;;  %v50_v23 = vpop.permute.xlu1 %49  }
  0x81   :  { %46 = vst.msk [vmem:[#allocation0] sm:$0x1] %vm45_vm7, %v44_v22  }
  0x82   :  { %52 = vst.msk [vmem:[#allocation0] sm:$0x1] %vm51_vm8, %v50_v23  }
  0x84   :  { %v56_v24 = vpop.permute.xlu0 %55   ;;  %v62_v25 = vpop.permute.xlu1 %61  }
  0x85   :  { %58 = vst.msk [vmem:[#allocation0] sm:$0x1] %vm57_vm9, %v56_v24  }
  0x86   :  { %64 = vst.msk [vmem:[#allocation0] sm:$0x1] %vm63_vm10, %v62_v25  }
  0x88   :  { %v68_v26 = vpop.permute.xlu0 %67   ;;  %v74_v27 = vpop.permute.xlu1 %73  }
  0x89   :  { %70 = vst.msk [vmem:[#allocation0] sm:$0x1] %vm69_vm11, %v68_v26  }
  0x8a   :  { %76 = vst.msk [vmem:[#allocation0] sm:$0x1] %vm75_vm12, %v74_v27  }
  0x8c   :  { %v80_v28 = vpop.permute.xlu0 %79   ;;  %v86_v29 = vpop.permute.xlu1 %85  }
  0x8d   :  { %82 = vst.msk [vmem:[#allocation0] sm:$0x1] %vm81_vm13, %v80_v28  }
  0x8e   :  { %88 = vst.msk [vmem:[#allocation0] sm:$0x1] %vm87_vm14, %v86_v29  }
  0x90   :  { %v92_v30 = vpop.permute.xlu0 %91  }
  0x91   :  { %94 = vst.msk [vmem:[#allocation0] sm:$0x1] %vm93_vm15, %v92_v30  }
  0x98   :  { %v98_v31 = vld [vmem:[#allocation0] sm:$0x1] }
  0x99   :  { %100 = vst [vmem:[%s208_s1] sm:$0x1] %v98_v31 }

// kernel: _lambda_.26
= control target key start
LH: loop header
LB: loop body
LE: loop exit
PB: predicated region body
PF: predicated region fallthrough
CT: control target
= control target key end

     0   :  { %s887_s9 = smov 0   ;;  %s1025_s0 = inlined_call_operand.vmem [shape: bf16[512,160], index: 0, kind: input, shape index: {}]   ;;  %s1026_s1 = inlined_call_operand.vmem [shape: bf16[160,128], index: 1, kind: input, shape index: {}]   ;;  %s1027_s2 = inlined_call_operand.vmem [shape: f32[512,128], index: 2, kind: output, shape index: {}]  }
   0x1 LB: > { %s705_s10 = sadd.s32 4294967295, %s869_s9   ;;  %p709_p0 = scmp.ge.s32.totalorder %s869_s9, 1  ;;  %s869_s9 = sphi %s887_s9, %s12_s9  }
   0x2   : > { %p114_p1 = scmp.lt.s32.totalorder %s869_s9, 3 }
   0x4   : > { %p115_p2 = pnand %p709_p0, %p114_p1 }
   0x5   : > { %v805_v0 = vld [vmem:[%s1026_s1] sm:$0xff] (!%p115_p2)   ;;  %v871_v1 = vmov (!%p115_p2), 0   ;;  %s710_s13 = sshll.u32 (!%p115_p2), %s705_s10, 5  ;;  %v806_v2 = vld [vmem:[%s1026_s1 + $0x8] sm:$0xff] (!%p115_p2)   ;;  %v807_v3 = vld [vmem:[%s1026_s1 + $0x10] sm:$0xff] (!%p115_p2)   ;;  %vm407_vm0 = vcmask (!%p115_p2), 261120  }
   0x6   : > { %118 = sbr.rel (%p115_p2) target bundleno = 317 (0x13d), region = 28  ;;  %456 = vmatprep.subr.bf16.mxu0 (!%p115_p2), %v871_v1  ;;  %776 = vmatprep.subr.bf16.mxu1 (!%p115_p2), %v871_v1  ;;  %p138_p3 = scmp.lt.s32.totalorder (!%p115_p2), %s710_s13, 63  ;;  %v808_v4 = vld [vmem:[%s1026_s1 + $0x18] sm:$0xff] (!%p115_p2)   ;;  %v809_v7 = vld [vmem:[%s1026_s1 + $0x20] sm:$0xff] (!%p115_p2)   ;;  %v810_v8 = vld [vmem:[%s1026_s1 + $0x28] sm:$0xff] (!%p115_p2)  }
   0x7   : > { %457 = vmatpush1.bf16.msra.mxu0 (!%p115_p2), %v805_v0  ;;  %786 = vmatpush1.bf16.msra.mxu1 (!%p115_p2), %v805_v0  ;;  %v811_v9 = vld [vmem:[%s1026_s1 + $0x30] sm:$0xff] (!%p115_p2)   ;;  %v812_v10 = vld [vmem:[%s1026_s1 + $0x38] sm:$0xff] (!%p115_p2)   ;;  %v813_v11 = vld [vmem:[%s1026_s1 + $0x40] sm:$0xff] (!%p115_p2)  }
   0x8   : > { %458 = vmatprep.subr.bf16.mxu0 (!%p115_p2), %v871_v1  ;;  %777 = vmatprep.subr.bf16.mxu1 (!%p115_p2), %v871_v1  ;;  %v814_v12 = vld [vmem:[%s1026_s1 + $0x48] sm:$0xff] (!%p115_p2)  }
   0xb   : > { %459 = vmatpush1.bf16.msra.mxu0 (!%p115_p2), %v806_v2  ;;  %787 = vmatpush1.bf16.msra.mxu1 (!%p115_p2), %v806_v2 }
   0xc   : > { %460 = vmatprep.subr.bf16.mxu0 (!%p115_p2), %v871_v1  ;;  %778 = vmatprep.subr.bf16.mxu1 (!%p115_p2), %v871_v1 }
   0xd   : > { %s1029_s13 = smov (!%p138_p3, %s710_s13), 63 }
   0xe   : > { %s775_s18 = sshll.u32 %s1029_s13, 3 }
   0xf   : > { %s912_s21 = scalar_lea.vmem %s1025_s0, %s775_s18  ;;  %461 = vmatpush1.bf16.msra.mxu0 %v807_v3  ;;  %788 = vmatpush1.bf16.msra.mxu1 %v807_v3  ;;  %s988_s11 = scalar_lea.vmem %s1027_s2, %s775_s18 }
  0x10   : > { %462 = vmatprep.subr.bf16.mxu0 %v871_v1  ;;  %779 = vmatprep.subr.bf16.mxu1 %v871_v1  ;;  %v817_v5 = vld [vmem:[%s912_s21 + $0x4] ss:$8 sps:$4 sm:$0xff]   ;;  %v815_v13 = vld [vmem:[%s912_s21] ss:$8 sps:$4 sm:$0xff]   ;;  %v821_v15 = vld [vmem:[%s912_s21 + $0x14] ss:$8 sps:$4 sm:$0xff]  }
  0x11   : > { %v820_v6 = vld [vmem:[%s912_s21 + $0x84] ss:$8 sps:$4 sm:$0xff]   ;;  %757 = vmatprep.mubr.msk.bf16.mxu0 %vm407_vm0, %v817_v5  ;;  %v818_v14 = vld [vmem:[%s912_s21 + $0x80] ss:$8 sps:$4 sm:$0xff]   ;;  %v823_v16 = vld [vmem:[%s912_s21 + $0x94] ss:$8 sps:$4 sm:$0xff]  }
  0x12   : > { %765 = vmatprep.mubr.msk.bf16.mxu1 %vm407_vm0, %v820_v6  ;;  %v825_v17 = vld [vmem:[%s912_s21 + $0x10] ss:$8 sps:$4 sm:$0xff]   ;;  %v827_v19 = vld [vmem:[%s912_s21 + $0x24] ss:$8 sps:$4 sm:$0xff]   ;;  %v831_v21 = vld [vmem:[%s912_s21 + $0x20] ss:$8 sps:$4 sm:$0xff]  }
  0x13   : > { %463 = vmatpush1.bf16.msra.mxu0 %v808_v4  ;;  %789 = vmatpush1.bf16.msra.mxu1 %v808_v4  ;;  %v826_v18 = vld [vmem:[%s912_s21 + $0x90] ss:$8 sps:$4 sm:$0xff]   ;;  %v829_v20 = vld [vmem:[%s912_s21 + $0xa4] ss:$8 sps:$4 sm:$0xff]   ;;  %v832_v22 = vld [vmem:[%s912_s21 + $0xa0] ss:$8 sps:$4 sm:$0xff]  }
  0x14   : > { %464 = vmatprep.subr.bf16.mxu0 %v871_v1  ;;  %780 = vmatprep.subr.bf16.mxu1 %v871_v1  ;;  %v833_v23 = vld [vmem:[%s912_s21 + $0x34] ss:$8 sps:$4 sm:$0xff]   ;;  %v837_v25 = vld [vmem:[%s912_s21 + $0x30] ss:$8 sps:$4 sm:$0xff]   ;;  %v839_v27 = vld [vmem:[%s912_s21 + $0x44] ss:$8 sps:$4 sm:$0xff]  }
  0x15   : > { %v835_v24 = vld [vmem:[%s912_s21 + $0xb4] ss:$8 sps:$4 sm:$0xff]   ;;  %v838_v26 = vld [vmem:[%s912_s21 + $0xb0] ss:$8 sps:$4 sm:$0xff]   ;;  %v841_v28 = vld [vmem:[%s912_s21 + $0xc4] ss:$8 sps:$4 sm:$0xff]  }
  0x16   : > { %v843_v29 = vld [vmem:[%s912_s21 + $0x40] ss:$8 sps:$4 sm:$0xff]   ;;  %v845_v31 = vld [vmem:[%s912_s21 + $0x54] ss:$8 sps:$4 sm:$0xff]   ;;  %v849_v33 = vld [vmem:[%s912_s21 + $0x50] ss:$8 sps:$4 sm:$0xff]  }
  0x17   : > { %465 = vmatpush1.bf16.msra.mxu0 %v809_v7  ;;  %790 = vmatpush1.bf16.msra.mxu1 %v809_v7  ;;  %v844_v30 = vld [vmem:[%s912_s21 + $0xc0] ss:$8 sps:$4 sm:$0xff]   ;;  %v847_v32 = vld [vmem:[%s912_s21 + $0xd4] ss:$8 sps:$4 sm:$0xff]   ;;  %v850_v34 = vld [vmem:[%s912_s21 + $0xd0] ss:$8 sps:$4 sm:$0xff]  }
  0x18   : > { %466 = vmatprep.subr.bf16.mxu0 %v871_v1  ;;  %781 = vmatprep.subr.bf16.mxu1 %v871_v1  ;;  %v851_v35 = vld [vmem:[%s912_s21 + $0x64] ss:$8 sps:$4 sm:$0xff]   ;;  %v855_v37 = vld [vmem:[%s912_s21 + $0x60] ss:$8 sps:$4 sm:$0xff]   ;;  %v857_v39 = vld [vmem:[%s912_s21 + $0x74] ss:$8 sps:$4 sm:$0xff]  }
  0x19   : > { %v853_v36 = vld [vmem:[%s912_s21 + $0xe4] ss:$8 sps:$4 sm:$0xff]   ;;  %v856_v38 = vld [vmem:[%s912_s21 + $0xe0] ss:$8 sps:$4 sm:$0xff]   ;;  %v859_v40 = vld [vmem:[%s912_s21 + $0xf4] ss:$8 sps:$4 sm:$0xff]  }
  0x1a   : > { %v861_v41 = vld [vmem:[%s912_s21 + $0x70] ss:$8 sps:$4 sm:$0xff]  }
  0x1b   : > { %467 = vmatpush1.bf16.msra.mxu0 %v810_v8  ;;  %791 = vmatpush1.bf16.msra.mxu1 %v810_v8  ;;  %v862_v42 = vld [vmem:[%s912_s21 + $0xf0] ss:$8 sps:$4 sm:$0xff]  }
  0x1c   : > { %468 = vmatprep.subr.bf16.mxu0 %v871_v1  ;;  %782 = vmatprep.subr.bf16.mxu1 %v871_v1 }
  0x1f   : > { %469 = vmatpush1.bf16.msra.mxu0 %v811_v9  ;;  %792 = vmatpush1.bf16.msra.mxu1 %v811_v9 }
  0x20   : > { %470 = vmatprep.subr.bf16.mxu0 %v871_v1  ;;  %783 = vmatprep.subr.bf16.mxu1 %v871_v1 }
  0x23   : > { %471 = vmatpush1.bf16.msra.mxu0 %v812_v10  ;;  %793 = vmatpush1.bf16.msra.mxu1 %v812_v10 }
  0x24   : > { %472 = vmatprep.subr.bf16.mxu0 %v871_v1  ;;  %784 = vmatprep.subr.bf16.mxu1 %v871_v1 }
  0x27   : > { %473 = vmatpush1.bf16.msra.mxu0 %v813_v11  ;;  %794 = vmatpush1.bf16.msra.mxu1 %v813_v11 }
  0x28   : > { %474 = vmatprep.subr.bf16.mxu0 %v871_v1  ;;  %785 = vmatprep.subr.bf16.mxu1 %v871_v1 }
  0x2b   : > { %475 = vmatpush1.bf16.msra.mxu0 %v814_v12  ;;  %795 = vmatpush1.bf16.msra.mxu1 %v814_v12 }
  0x2e   : > { %489 = vmatmul.mubr.bf16.vlgmr.msra.gmra.mrb[0].mxu0 %v815_v13  ;;  %553 = vmatmul.mubr.bf16.vlgmr.msra.gmra.mrb[0].mxu1 %v818_v14 }
  0x2f   : > { %758 = vmatprep.mubr.msk.bf16.mxu0 %vm407_vm0, %v821_v15  ;;  %766 = vmatprep.mubr.msk.bf16.mxu1 %vm407_vm0, %v823_v16 }
  0x36   : > { %497 = vmatmul.mubr.bf16.gmra.mrb[4].mxu0 %v825_v17  ;;  %561 = vmatmul.mubr.bf16.gmra.mrb[4].mxu1 %v826_v18 }
  0x37   : > { %759 = vmatprep.mubr.msk.bf16.mxu0 %vm407_vm0, %v827_v19  ;;  %767 = vmatprep.mubr.msk.bf16.mxu1 %vm407_vm0, %v829_v20 }
  0x3e   : > { %505 = vmatmul.mubr.bf16.gmra.mrb[8].mxu0 %v831_v21  ;;  %569 = vmatmul.mubr.bf16.gmra.mrb[8].mxu1 %v832_v22 }
  0x3f   : > { %760 = vmatprep.mubr.msk.bf16.mxu0 %vm407_vm0, %v833_v23  ;;  %768 = vmatprep.mubr.msk.bf16.mxu1 %vm407_vm0, %v835_v24 }
  0x46   : > { %513 = vmatmul.mubr.bf16.gmra.mrb[12].mxu0 %v837_v25  ;;  %577 = vmatmul.mubr.bf16.gmra.mrb[12].mxu1 %v838_v26 }
  0x47   : > { %761 = vmatprep.mubr.msk.bf16.mxu0 %vm407_vm0, %v839_v27  ;;  %769 = vmatprep.mubr.msk.bf16.mxu1 %vm407_vm0, %v841_v28 }
  0x4e   : > { %521 = vmatmul.mubr.bf16.gmra.mrb[16].mxu0 %v843_v29  ;;  %585 = vmatmul.mubr.bf16.gmra.mrb[16].mxu1 %v844_v30 }
  0x4f   : > { %762 = vmatprep.mubr.msk.bf16.mxu0 %vm407_vm0, %v845_v31  ;;  %770 = vmatprep.mubr.msk.bf16.mxu1 %vm407_vm0, %v847_v32 }
  0x56   : > { %529 = vmatmul.mubr.bf16.gmra.mrb[20].mxu0 %v849_v33  ;;  %593 = vmatmul.mubr.bf16.gmra.mrb[20].mxu1 %v850_v34 }
  0x57   : > { %763 = vmatprep.mubr.msk.bf16.mxu0 %vm407_vm0, %v851_v35  ;;  %771 = vmatprep.mubr.msk.bf16.mxu1 %vm407_vm0, %v853_v36 }
  0x5e   : > { %537 = vmatmul.mubr.bf16.gmra.mrb[24].mxu0 %v855_v37  ;;  %601 = vmatmul.mubr.bf16.gmra.mrb[24].mxu1 %v856_v38 }
  0x5f   : > { %764 = vmatprep.mubr.msk.bf16.mxu0 %vm407_vm0, %v857_v39  ;;  %772 = vmatprep.mubr.msk.bf16.mxu1 %vm407_vm0, %v859_v40 }
  0x66   : > { %545 = vmatmul.mubr.bf16.gmra.mrb[28].mxu0 %v861_v41  ;;  %609 = vmatmul.mubr.bf16.gmra.mrb[28].mxu1 %v862_v42 }
 0x101   : > { %v490_v43 = vpop.f32.mrb[0].mxu0  ;;  %v554_v44 = vpop.f32.mrb[0].mxu1 }
 0x102   : > { %617 = vst [vmem:[%s988_s11] sm:$0xff] %v490_v43  ;;  %633 = vst [vmem:[%s988_s11 + $0x80] sm:$0xff] %v554_v44  ;;  %v492_v45 = vpop.f32.mrb[1].mxu0  ;;  %v556_v46 = vpop.f32.mrb[1].mxu1 }
 0x103   : > { %v493_v47 = vpop.f32.mrb[2].mxu0  ;;  %v557_v48 = vpop.f32.mrb[2].mxu1 }
 0x104   : > { %618 = vst [vmem:[%s988_s11 + $0x8] sm:$0xff] %v493_v47  ;;  %634 = vst [vmem:[%s988_s11 + $0x88] sm:$0xff] %v557_v48  ;;  %v495_v49 = vpop.f32.mrb[3].mxu0  ;;  %v559_v50 = vpop.f32.mrb[3].mxu1 }
 0x109   : > { %v498_v51 = vpop.f32.mrb[4].mxu0  ;;  %v562_v52 = vpop.f32.mrb[4].mxu1 }
 0x10a   : > { %619 = vst [vmem:[%s988_s11 + $0x10] sm:$0xff] %v498_v51  ;;  %635 = vst [vmem:[%s988_s11 + $0x90] sm:$0xff] %v562_v52  ;;  %v500_v53 = vpop.f32.mrb[5].mxu0  ;;  %v564_v54 = vpop.f32.mrb[5].mxu1 }
 0x10b   : > { %v501_v55 = vpop.f32.mrb[6].mxu0  ;;  %v565_v56 = vpop.f32.mrb[6].mxu1 }
 0x10c   : > { %620 = vst [vmem:[%s988_s11 + $0x18] sm:$0xff] %v501_v55  ;;  %636 = vst [vmem:[%s988_s11 + $0x98] sm:$0xff] %v565_v56  ;;  %v503_v57 = vpop.f32.mrb[7].mxu0  ;;  %v567_v58 = vpop.f32.mrb[7].mxu1 }
 0x111   : > { %v506_v59 = vpop.f32.mrb[8].mxu0  ;;  %v570_v60 = vpop.f32.mrb[8].mxu1 }
 0x112   : > { %621 = vst [vmem:[%s988_s11 + $0x20] sm:$0xff] %v506_v59  ;;  %637 = vst [vmem:[%s988_s11 + $0xa0] sm:$0xff] %v570_v60  ;;  %v508_v61 = vpop.f32.mrb[9].mxu0  ;;  %v572_v62 = vpop.f32.mrb[9].mxu1 }
 0x113   : > { %v509_v63 = vpop.f32.mrb[10].mxu0  ;;  %v573_v0 = vpop.f32.mrb[10].mxu1 }
 0x114   : > { %622 = vst [vmem:[%s988_s11 + $0x28] sm:$0xff] %v509_v63  ;;  %638 = vst [vmem:[%s988_s11 + $0xa8] sm:$0xff] %v573_v0  ;;  %v511_v1 = vpop.f32.mrb[11].mxu0  ;;  %v575_v2 = vpop.f32.mrb[11].mxu1 }
 0x119   : > { %v514_v3 = vpop.f32.mrb[12].mxu0  ;;  %v578_v4 = vpop.f32.mrb[12].mxu1 }
 0x11a   : > { %623 = vst [vmem:[%s988_s11 + $0x30] sm:$0xff] %v514_v3  ;;  %639 = vst [vmem:[%s988_s11 + $0xb0] sm:$0xff] %v578_v4  ;;  %v516_v5 = vpop.f32.mrb[13].mxu0  ;;  %v580_v6 = vpop.f32.mrb[13].mxu1 }
 0x11b   : > { %v517_v7 = vpop.f32.mrb[14].mxu0  ;;  %v581_v8 = vpop.f32.mrb[14].mxu1 }
 0x11c   : > { %624 = vst [vmem:[%s988_s11 + $0x38] sm:$0xff] %v517_v7  ;;  %640 = vst [vmem:[%s988_s11 + $0xb8] sm:$0xff] %v581_v8  ;;  %v519_v9 = vpop.f32.mrb[15].mxu0  ;;  %v583_v10 = vpop.f32.mrb[15].mxu1 }
 0x121   : > { %v522_v11 = vpop.f32.mrb[16].mxu0  ;;  %v586_v12 = vpop.f32.mrb[16].mxu1 }
 0x122   : > { %625 = vst [vmem:[%s988_s11 + $0x40] sm:$0xff] %v522_v11  ;;  %641 = vst [vmem:[%s988_s11 + $0xc0] sm:$0xff] %v586_v12  ;;  %v524_v13 = vpop.f32.mrb[17].mxu0  ;;  %v588_v14 = vpop.f32.mrb[17].mxu1 }
 0x123   : > { %v525_v15 = vpop.f32.mrb[18].mxu0  ;;  %v589_v16 = vpop.f32.mrb[18].mxu1 }
 0x124   : > { %626 = vst [vmem:[%s988_s11 + $0x48] sm:$0xff] %v525_v15  ;;  %642 = vst [vmem:[%s988_s11 + $0xc8] sm:$0xff] %v589_v16  ;;  %v527_v17 = vpop.f32.mrb[19].mxu0  ;;  %v591_v18 = vpop.f32.mrb[19].mxu1 }
 0x129   : > { %v530_v19 = vpop.f32.mrb[20].mxu0  ;;  %v594_v20 = vpop.f32.mrb[20].mxu1 }
 0x12a   : > { %627 = vst [vmem:[%s988_s11 + $0x50] sm:$0xff] %v530_v19  ;;  %643 = vst [vmem:[%s988_s11 + $0xd0] sm:$0xff] %v594_v20  ;;  %v532_v21 = vpop.f32.mrb[21].mxu0  ;;  %v596_v22 = vpop.f32.mrb[21].mxu1 }
 0x12b   : > { %v533_v23 = vpop.f32.mrb[22].mxu0  ;;  %v597_v24 = vpop.f32.mrb[22].mxu1 }
 0x12c   : > { %628 = vst [vmem:[%s988_s11 + $0x58] sm:$0xff] %v533_v23  ;;  %644 = vst [vmem:[%s988_s11 + $0xd8] sm:$0xff] %v597_v24  ;;  %v535_v25 = vpop.f32.mrb[23].mxu0  ;;  %v599_v26 = vpop.f32.mrb[23].mxu1 }
 0x131   : > { %v538_v27 = vpop.f32.mrb[24].mxu0  ;;  %v602_v28 = vpop.f32.mrb[24].mxu1 }
 0x132   : > { %629 = vst [vmem:[%s988_s11 + $0x60] sm:$0xff] %v538_v27  ;;  %645 = vst [vmem:[%s988_s11 + $0xe0] sm:$0xff] %v602_v28  ;;  %v540_v29 = vpop.f32.mrb[25].mxu0  ;;  %v604_v30 = vpop.f32.mrb[25].mxu1 }
 0x133   : > { %v541_v31 = vpop.f32.mrb[26].mxu0  ;;  %v605_v32 = vpop.f32.mrb[26].mxu1 }
 0x134   : > { %630 = vst [vmem:[%s988_s11 + $0x68] sm:$0xff] %v541_v31  ;;  %646 = vst [vmem:[%s988_s11 + $0xe8] sm:$0xff] %v605_v32  ;;  %v543_v33 = vpop.f32.mrb[27].mxu0  ;;  %v607_v34 = vpop.f32.mrb[27].mxu1 }
 0x139   : > { %v546_v35 = vpop.f32.mrb[28].mxu0  ;;  %v610_v36 = vpop.f32.mrb[28].mxu1 }
 0x13a   : > { %631 = vst [vmem:[%s988_s11 + $0x70] sm:$0xff] %v546_v35  ;;  %647 = vst [vmem:[%s988_s11 + $0xf0] sm:$0xff] %v610_v36  ;;  %v548_v37 = vpop.f32.mrb[29].mxu0  ;;  %v612_v38 = vpop.f32.mrb[29].mxu1 }
 0x13b   : > { %v549_v39 = vpop.f32.mrb[30].mxu0  ;;  %v613_v40 = vpop.f32.mrb[30].mxu1 }
 0x13c   : > { %632 = vst [vmem:[%s988_s11 + $0x78] sm:$0xff] %v549_v39  ;;  %648 = vst [vmem:[%s988_s11 + $0xf8] sm:$0xff] %v613_v40  ;;  %v551_v41 = vpop.f32.mrb[31].mxu0  ;;  %v615_v42 = vpop.f32.mrb[31].mxu1 }
 0x13d PF: > { %s12_s9 = sadd.s32 1, %s869_s9  }
 0x13e   : > { %p9_p4 = scmp.ge.s32.totalorder %s12_s9, 4  }
 0x140   :  { %11 = sbr.rel (!%p9_p4) target bundleno = 1 (0x1), region = 58 }

// kernel: _lambda_.27
= control target key start
LH: loop header
LB: loop body
LE: loop exit
PB: predicated region body
PF: predicated region fallthrough
CT: control target
= control target key end

     0   :  { %s104_s0 = inlined_call_operand.vmem [shape: f32[32,128], index: 0, kind: input, shape index: {}]   ;;  %s105_s1 = inlined_call_operand.vmem [shape: f32[1,128], index: 1, kind: input, shape index: {}]   ;;  %s106_s2 = inlined_call_operand.vmem [shape: f32[1,128], index: 2, kind: input, shape index: {}]   ;;  %s107_s3 = inlined_call_operand.vmem [shape: f32[32,128], index: 3, kind: output, shape index: {}]  }
   0x1   :  { %v14_v0 = vld [vmem:[%s104_s0] sm:$0xff]  ;;  %v15_v4 = vld [vmem:[%s104_s0 + $0x8] sm:$0xff]  ;;  %v16_v5 = vld [vmem:[%s104_s0 + $0x10] sm:$0xff] }
   0x2   :  { %v52_v1 = vld [vmem:[%s105_s1] ss:$0 sm:$0xff]  ;;  %v17_v6 = vld [vmem:[%s104_s0 + $0x18] sm:$0xff] }
   0x3   :  { %v53_v2 = vld [vmem:[%s106_s2] ss:$0 sm:$0xff]  ;;  %v25_v3 = vmul.f32 %v52_v1, %v14_v0  ;;  %v26_v7 = vmul.f32 %v52_v1, %v15_v4  ;;  %v27_v8 = vmul.f32 %v52_v1, %v16_v5  ;;  %v28_v9 = vmul.f32 %v52_v1, %v17_v6 }
   0x5   :  { %v36_v10 = vadd.f32 %v53_v2, %v25_v3  ;;  %v37_v11 = vadd.f32 %v53_v2, %v26_v7  ;;  %v38_v12 = vadd.f32 %v53_v2, %v27_v8  ;;  %v39_v13 = vadd.f32 %v53_v2, %v28_v9 }
   0x7   :  { %v40_v14 = vmax.f32 %v36_v10, 0.0  ;;  %v41_v15 = vmax.f32 %v37_v11, 0.0  ;;  %v42_v16 = vmax.f32 %v38_v12, 0.0  ;;  %v43_v17 = vmax.f32 %v39_v13, 0.0 }
   0x9   :  { %44 = vst [vmem:[%s107_s3] sm:$0xff] %v40_v14  ;;  %45 = vst [vmem:[%s107_s3 + $0x8] sm:$0xff] %v41_v15 }
   0xa   :  { %46 = vst [vmem:[%s107_s3 + $0x10] sm:$0xff] %v42_v16  ;;  %47 = vst [vmem:[%s107_s3 + $0x18] sm:$0xff] %v43_v17 }

// kernel: _lambda_.28
= control target key start
LH: loop header
LB: loop body
LE: loop exit
PB: predicated region body
PF: predicated region fallthrough
CT: control target
= control target key end

     0   :  { %s459_s9 = smov 0   ;;  %s499_s0 = inlined_call_operand.vmem [shape: bf16[128,80], index: 0, kind: input, shape index: {}]   ;;  %s500_s1 = inlined_call_operand.vmem [shape: bf16[80,128], index: 1, kind: input, shape index: {}]   ;;  %s501_s2 = inlined_call_operand.vmem [shape: f32[128,128], index: 2, kind: output, shape index: {}]  }
   0x1 LB: > { %s358_s10 = sadd.s32 4294967295, %s442_s9   ;;  %p362_p0 = scmp.ge.s32.totalorder %s442_s9, 1  ;;  %s442_s9 = sphi %s459_s9, %s12_s9  }
   0x2   : > { %p113_p1 = scmp.lt.s32.totalorder %s442_s9, 3 }
   0x4   : > { %p114_p2 = pnand %p362_p0, %p113_p1 }
   0x5   : > { %v427_v0 = vld [vmem:[%s500_s1] sm:$0xff] (!%p114_p2)   ;;  %s363_s13 = sshll.u32 (!%p114_p2), %s358_s10, 3  ;;  %v428_v1 = vld [vmem:[%s500_s1 + $0x8] sm:$0xff] (!%p114_p2)   ;;  %v429_v2 = vld [vmem:[%s500_s1 + $0x10] sm:$0xff] (!%p114_p2)   ;;  %vm216_vm0 = vcmask (!%p114_p2), 654336  }
   0x6   : > { %117 = sbr.rel (%p114_p2) target bundleno = 242 (0xf2), region = 28  ;;  %p136_p3 = scmp.lt.s32.totalorder (!%p114_p2), %s363_s13, 15  ;;  %391 = vmatprep.subr.bf16.mxu0 (!%p114_p2), %v427_v0  ;;  %409 = vmatprep.subr.bf16.mxu1 (!%p114_p2), %v427_v0  ;;  %v430_v3 = vld [vmem:[%s500_s1 + $0x18] sm:$0xff] (!%p114_p2)   ;;  %v431_v6 = vld [vmem:[%s500_s1 + $0x20] sm:$0xff] (!%p114_p2)  }
   0x7   : > { %392 = vmatpush3.bf16.msra.mxu0 (!%p114_p2), %v427_v0  ;;  %414 = vmatpush3.bf16.msra.mxu1 (!%p114_p2), %v427_v0 }
   0x8   : > { %393 = vmatprep.subr.bf16.mxu0 (!%p114_p2), %v428_v1  ;;  %410 = vmatprep.subr.bf16.mxu1 (!%p114_p2), %v428_v1 }
   0xb   : > { %394 = vmatpush3.bf16.msra.mxu0 (!%p114_p2), %v428_v1  ;;  %415 = vmatpush3.bf16.msra.mxu1 (!%p114_p2), %v428_v1 }
   0xc   : > { %395 = vmatprep.subr.bf16.mxu0 (!%p114_p2), %v429_v2  ;;  %411 = vmatprep.subr.bf16.mxu1 (!%p114_p2), %v429_v2 }
   0xd   : > { %s503_s13 = smov (!%p136_p3, %s363_s13), 15 }
   0xe   : > { %s364_s18 = sshll.u32 %s503_s13, 2  ;;  %s366_s26 = sshll.u32 %s503_s13, 3 }
   0xf   : > { %s139_s23 = scalar_lea.vmem %s499_s0, %s364_s18  ;;  %396 = vmatpush3.bf16.msra.mxu0 %v429_v2  ;;  %416 = vmatpush3.bf16.msra.mxu1 %v429_v2  ;;  %s145_s29 = scalar_lea.vmem %s501_s2, %s366_s26 }
  0x10   : > { %v432_v4 = vld [vmem:[%s139_s23] sm:$0xff]   ;;  %v433_v5 = vld [vmem:[%s139_s23 + $0x10] sm:$0xff]   ;;  %397 = vmatprep.subr.bf16.mxu0 %v430_v3  ;;  %412 = vmatprep.subr.bf16.mxu1 %v430_v3  ;;  %v434_v7 = vld [vmem:[%s139_s23 + $0x8] sm:$0xff]  }
  0x11   : > { %401 = vmatprep.mubr.msk.bf16.mxu0 %vm216_vm0, %v432_v4  ;;  %405 = vmatprep.mubr.msk.bf16.mxu1 %vm216_vm0, %v433_v5  ;;  %v435_v8 = vld [vmem:[%s139_s23 + $0x18] sm:$0xff]  }
  0x13   : > { %398 = vmatpush3.bf16.msra.mxu0 %v430_v3  ;;  %417 = vmatpush3.bf16.msra.mxu1 %v430_v3 }
  0x14   : > { %399 = vmatprep.subr.bf16.mxu0 %v431_v6  ;;  %413 = vmatprep.subr.bf16.mxu1 %v431_v6 }
  0x17   : > { %400 = vmatpush3.bf16.msra.mxu0 %v431_v6  ;;  %418 = vmatpush3.bf16.msra.mxu1 %v431_v6 }
  0x1a   : > { %402 = vmatmul.mubr.msk.bf16.vlgmr.msra.gmra.mrb[0].mxu0 %vm216_vm0, %v434_v7  ;;  %406 = vmatmul.mubr.msk.bf16.vlgmr.msra.gmra.mrb[0].mxu1 %vm216_vm0, %v435_v8 }
  0xed   : > { %v403_v9 = vpop.f32.mrb[0].mxu0  ;;  %v407_v10 = vpop.f32.mrb[0].mxu1 }
  0xee   : > { %296 = vst [vmem:[%s145_s29 + $0x10] sm:$0xff] %v403_v9  ;;  %300 = vst [vmem:[%s145_s29 + $0x30] sm:$0xff] %v407_v10  ;;  %v263_v11 = vpop.f32.mrb[1].mxu0  ;;  %v279_v12 = vpop.f32.mrb[1].mxu1 }
  0xef   : > { %294 = vst [vmem:[%s145_s29] sm:$0xff] %v263_v11  ;;  %298 = vst [vmem:[%s145_s29 + $0x20] sm:$0xff] %v279_v12  ;;  %v404_v13 = vpop.f32.mrb[2].mxu0  ;;  %v408_v14 = vpop.f32.mrb[2].mxu1 }
  0xf0   : > { %297 = vst [vmem:[%s145_s29 + $0x18] sm:$0xff] %v404_v13  ;;  %301 = vst [vmem:[%s145_s29 + $0x38] sm:$0xff] %v408_v14  ;;  %v266_v15 = vpop.f32.mrb[3].mxu0  ;;  %v282_v16 = vpop.f32.mrb[3].mxu1 }
  0xf1   : > { %295 = vst [vmem:[%s145_s29 + $0x8] sm:$0xff] %v266_v15  ;;  %299 = vst [vmem:[%s145_s29 + $0x28] sm:$0xff] %v282_v16 }
  0xf2 PF: > { %s12_s9 = sadd.s32 1, %s442_s9  }
  0xf3   : > { %p9_p4 = scmp.ge.s32.totalorder %s12_s9, 4  }
  0xf5   :  { %11 = sbr.rel (!%p9_p4) target bundleno = 1 (0x1), region = 58 }

// kernel: tile.107
= control target key start
LH: loop header
LB: loop body
LE: loop exit
PB: predicated region body
PF: predicated region fallthrough
CT: control target
= control target key end

     0   :  { %s22_s0 = inlined_call_operand.vmem [shape: f32[16], index: 0, kind: input, shape index: {}]   ;;  %s23_s1 = inlined_call_operand.vmem [shape: f32[8,16], index: 1, kind: output, shape index: {}]  }
   0x1   :  { %v4_v0 = vld [vmem:[%s22_s0] ss:$0 sm:$0xff] }
   0x2   :  { %5 = vst [vmem:[%s23_s1] sm:$0xff] %v4_v0 }

// kernel: tile.112
= control target key start
LH: loop header
LB: loop body
LE: loop exit
PB: predicated region body
PF: predicated region fallthrough
CT: control target
= control target key end

     0   :  { %s67_s10 = smov 112   ;;  %s68_s11 = smov 80   ;;  %vm3_vm0 = vcmask 130048   ;;  %vm9_vm1 = vcmask 1048448   ;;  %vm15_vm2 = vcmask 917248   ;;  %vm21_vm3 = vcmask 786048   ;;  %s111_s0 = inlined_call_operand.vmem [shape: f32[8,16], index: 0, kind: input, shape index: {}]   ;;  %s112_s1 = inlined_call_operand.vmem [shape: f32[1,128], index: 1, kind: output, shape index: {}]  }
   0x1   :  { %v53_v0 = vld [vmem:[%s111_s0 + $0x7] sm:$0x1]   ;;  %v55_v1 = vld [vmem:[%s111_s0 + $0x5] sm:$0x1]   ;;  %v54_v2 = vld [vmem:[%s111_s0 + $0x6] sm:$0x1]  }
   0x2   :  { %7 = vrot.lane.b32.xlu0 %v53_v0, %s67_s10  ;;  %19 = vrot.lane.b32.xlu1 %v55_v1, %s68_s11  ;;  %v56_v3 = vld [vmem:[%s111_s0 + $0x4] sm:$0x1]   ;;  %v2_v4 = vld [vmem:[%s111_s0] sm:$0x1]   ;;  %s69_s18 = smov 96   ;;  %s70_s19 = smov 64  }
   0x3   :  { %4 = vst.msk [vmem:[#allocation0] sm:$0x1] %vm3_vm0, %v2_v4   ;;  %v57_v5 = vld [vmem:[%s111_s0 + $0x3] sm:$0x1]   ;;  %v58_v6 = vld [vmem:[%s111_s0 + $0x2] sm:$0x1]  }
   0x4   :  { %s71_s24 = smov 48   ;;  %s72_s25 = smov 32   ;;  %v59_v7 = vld [vmem:[%s111_s0 + $0x1] sm:$0x1]   ;;  %vm27_vm4 = vcmask 654848   ;;  %vm33_vm5 = vcmask 523648  }
   0x5   :  { %s73_s0 = smov 16   ;;  %vm39_vm6 = vcmask 392448   ;;  %vm45_vm7 = vcmask 261248  }
   0x6   :  { %13 = vrot.lane.b32.xlu0 %v54_v2, %s69_s18  ;;  %25 = vrot.lane.b32.xlu1 %v56_v3, %s70_s19 }
   0xa   :  { %31 = vrot.lane.b32.xlu0 %v57_v5, %s71_s24  ;;  %37 = vrot.lane.b32.xlu1 %v58_v6, %s72_s25 }
   0xe   :  { %43 = vrot.lane.b32.xlu0 %v59_v7, %s73_s0 }
  0x74   :  { %v8_v8 = vpop.permute.xlu0 %7   ;;  %v20_v9 = vpop.permute.xlu1 %19  }
  0x75   :  { %10 = vst.msk [vmem:[#allocation0] sm:$0x1] %vm9_vm1, %v8_v8  }
  0x78   :  { %v14_v10 = vpop.permute.xlu0 %13   ;;  %v26_v11 = vpop.permute.xlu1 %25  }
  0x79   :  { %16 = vst.msk [vmem:[#allocation0] sm:$0x1] %vm15_vm2, %v14_v10  }
  0x7a   :  { %22 = vst.msk [vmem:[#allocation0] sm:$0x1] %vm21_vm3, %v20_v9  }
  0x7b   :  { %28 = vst.msk [vmem:[#allocation0] sm:$0x1] %vm27_vm4, %v26_v11  }
  0x7c   :  { %v32_v12 = vpop.permute.xlu0 %31   ;;  %v38_v13 = vpop.permute.xlu1 %37  }
  0x7d   :  { %34 = vst.msk [vmem:[#allocation0] sm:$0x1] %vm33_vm5, %v32_v12  }
  0x7e   :  { %40 = vst.msk [vmem:[#allocation0] sm:$0x1] %vm39_vm6, %v38_v13  }
  0x80   :  { %v44_v14 = vpop.permute.xlu0 %43  }
  0x81   :  { %46 = vst.msk [vmem:[#allocation0] sm:$0x1] %vm45_vm7, %v44_v14  }
  0x88   :  { %v50_v15 = vld [vmem:[#allocation0] sm:$0x1] }
  0x89   :  { %52 = vst [vmem:[%s112_s1] sm:$0x1] %v50_v15 }

// kernel: _lambda_.29
= control target key start
LH: loop header
LB: loop body
LE: loop exit
PB: predicated region body
PF: predicated region fallthrough
CT: control target
= control target key end

     0   :  { %s82_s0 = inlined_call_operand.vmem [shape: f32[16,128], index: 0, kind: input, shape index: {}]   ;;  %s83_s1 = inlined_call_operand.vmem [shape: f32[1,128], index: 1, kind: input, shape index: {}]   ;;  %s84_s2 = inlined_call_operand.vmem [shape: f32[1,128], index: 2, kind: input, shape index: {}]   ;;  %s85_s3 = inlined_call_operand.vmem [shape: f32[16,128], index: 3, kind: output, shape index: {}]  }
   0x1   :  { %v14_v0 = vld [vmem:[%s82_s0] sm:$0xff]  ;;  %v15_v4 = vld [vmem:[%s82_s0 + $0x8] sm:$0xff] }
   0x2   :  { %v42_v1 = vld [vmem:[%s83_s1] ss:$0 sm:$0xff] }
   0x3   :  { %v43_v2 = vld [vmem:[%s84_s2] ss:$0 sm:$0xff]  ;;  %v23_v3 = vmul.f32 %v42_v1, %v14_v0  ;;  %v24_v5 = vmul.f32 %v42_v1, %v15_v4 }
   0x5   :  { %v32_v6 = vadd.f32 %v43_v2, %v23_v3  ;;  %v33_v7 = vadd.f32 %v43_v2, %v24_v5 }
   0x7   :  { %v34_v8 = vmax.f32 %v32_v6, 0.0  ;;  %v35_v9 = vmax.f32 %v33_v7, 0.0 }
   0x9   :  { %36 = vst [vmem:[%s85_s3] sm:$0xff] %v34_v8  ;;  %37 = vst [vmem:[%s85_s3 + $0x8] sm:$0xff] %v35_v9 }

// kernel: _lambda_.30
= control target key start
LH: loop header
LB: loop body
LE: loop exit
PB: predicated region body
PF: predicated region fallthrough
CT: control target
= control target key end

     0   :  { %v219_v0 = vmov 0   ;;  %vm106_vm0 = vcmask 130048   ;;  %s286_s1 = inlined_call_operand.vmem [shape: bf16[144,128], index: 1, kind: input, shape index: {}]   ;;  %s287_s0 = inlined_call_operand.vmem [shape: bf16[32,144], index: 0, kind: input, shape index: {}]   ;;  %s288_s2 = inlined_call_operand.vmem [shape: f32[32,128], index: 2, kind: output, shape index: {}]  }
   0x1   :  { %113 = vmatprep.subr.bf16.mxu0 %v219_v0  ;;  %185 = vmatprep.subr.bf16.mxu1 %v219_v0  ;;  %v204_v1 = vld [vmem:[%s286_s1] sm:$0xff]   ;;  %v205_v2 = vld [vmem:[%s286_s1 + $0x8] sm:$0xff]   ;;  %v206_v3 = vld [vmem:[%s286_s1 + $0x10] sm:$0xff]  }
   0x2   :  { %114 = vmatpush1.bf16.msra.mxu0 %v204_v1  ;;  %194 = vmatpush1.bf16.msra.mxu1 %v204_v1  ;;  %v207_v4 = vld [vmem:[%s286_s1 + $0x18] sm:$0xff]   ;;  %v215_v5 = vld [vmem:[%s287_s0 + $0x4] ss:$8 sps:$4 sm:$0xff]   ;;  %v210_v9 = vld [vmem:[%s286_s1 + $0x30] sm:$0xff]  }
   0x3   :  { %115 = vmatprep.subr.bf16.mxu0 %v219_v0  ;;  %186 = vmatprep.subr.bf16.mxu1 %v219_v0  ;;  %v218_v6 = vld [vmem:[%s287_s0 + $0x14] ss:$8 sps:$4 sm:$0xff]   ;;  %v208_v7 = vld [vmem:[%s286_s1 + $0x20] sm:$0xff]   ;;  %v209_v8 = vld [vmem:[%s286_s1 + $0x28] sm:$0xff]  }
   0x4   :  { %183 = vmatprep.mubr.msk.bf16.mxu0 %vm106_vm0, %v215_v5  ;;  %184 = vmatprep.mubr.msk.bf16.mxu1 %vm106_vm0, %v218_v6  ;;  %v211_v10 = vld [vmem:[%s286_s1 + $0x38] sm:$0xff]   ;;  %v212_v11 = vld [vmem:[%s286_s1 + $0x40] sm:$0xff]  }
   0x5   :  { %v213_v12 = vld [vmem:[%s287_s0] ss:$8 sps:$4 sm:$0xff]   ;;  %v216_v13 = vld [vmem:[%s287_s0 + $0x10] ss:$8 sps:$4 sm:$0xff]  }
   0x6   :  { %116 = vmatpush1.bf16.msra.mxu0 %v205_v2  ;;  %195 = vmatpush1.bf16.msra.mxu1 %v205_v2 }
   0x7   :  { %117 = vmatprep.subr.bf16.mxu0 %v219_v0  ;;  %187 = vmatprep.subr.bf16.mxu1 %v219_v0 }
   0xa   :  { %118 = vmatpush1.bf16.msra.mxu0 %v206_v3  ;;  %196 = vmatpush1.bf16.msra.mxu1 %v206_v3 }
   0xb   :  { %119 = vmatprep.subr.bf16.mxu0 %v219_v0  ;;  %188 = vmatprep.subr.bf16.mxu1 %v219_v0 }
   0xe   :  { %120 = vmatpush1.bf16.msra.mxu0 %v207_v4  ;;  %197 = vmatpush1.bf16.msra.mxu1 %v207_v4 }
   0xf   :  { %121 = vmatprep.subr.bf16.mxu0 %v219_v0  ;;  %189 = vmatprep.subr.bf16.mxu1 %v219_v0 }
  0x12   :  { %122 = vmatpush1.bf16.msra.mxu0 %v208_v7  ;;  %198 = vmatpush1.bf16.msra.mxu1 %v208_v7 }
  0x13   :  { %123 = vmatprep.subr.bf16.mxu0 %v219_v0  ;;  %190 = vmatprep.subr.bf16.mxu1 %v219_v0 }
  0x16   :  { %124 = vmatpush1.bf16.msra.mxu0 %v209_v8  ;;  %199 = vmatpush1.bf16.msra.mxu1 %v209_v8 }
  0x17   :  { %125 = vmatprep.subr.bf16.mxu0 %v219_v0  ;;  %191 = vmatprep.subr.bf16.mxu1 %v219_v0 }
  0x1a   :  { %126 = vmatpush1.bf16.msra.mxu0 %v210_v9  ;;  %200 = vmatpush1.bf16.msra.mxu1 %v210_v9 }
  0x1b   :  { %127 = vmatprep.subr.bf16.mxu0 %v219_v0  ;;  %192 = vmatprep.subr.bf16.mxu1 %v219_v0 }
  0x1e   :  { %128 = vmatpush1.bf16.msra.mxu0 %v211_v10  ;;  %201 = vmatpush1.bf16.msra.mxu1 %v211_v10 }
  0x1f   :  { %129 = vmatprep.subr.bf16.mxu0 %v219_v0  ;;  %193 = vmatprep.subr.bf16.mxu1 %v219_v0 }
  0x22   :  { %130 = vmatpush1.bf16.msra.mxu0 %v212_v11  ;;  %202 = vmatpush1.bf16.msra.mxu1 %v212_v11 }
  0x25   :  { %146 = vmatmul.mubr.bf16.vlgmr.msra.gmra.mrb[0].mxu0 %v213_v12  ;;  %154 = vmatmul.mubr.bf16.vlgmr.msra.gmra.mrb[0].mxu1 %v216_v13 }
  0xf8   :  { %v147_v14 = vpop.f32.mrb[0].mxu0  ;;  %v155_v15 = vpop.f32.mrb[0].mxu1 }
  0xf9   :  { %162 = vst [vmem:[%s288_s2] sm:$0xff] %v147_v14  ;;  %164 = vst [vmem:[%s288_s2 + $0x10] sm:$0xff] %v155_v15  ;;  %v149_v16 = vpop.f32.mrb[1].mxu0  ;;  %v157_v17 = vpop.f32.mrb[1].mxu1 }
  0xfa   :  { %v150_v18 = vpop.f32.mrb[2].mxu0  ;;  %v158_v19 = vpop.f32.mrb[2].mxu1 }
  0xfb   :  { %163 = vst [vmem:[%s288_s2 + $0x8] sm:$0xff] %v150_v18  ;;  %165 = vst [vmem:[%s288_s2 + $0x18] sm:$0xff] %v158_v19  ;;  %v152_v20 = vpop.f32.mrb[3].mxu0  ;;  %v160_v21 = vpop.f32.mrb[3].mxu1 }

// kernel: tile.117
= control target key start
LH: loop header
LB: loop body
LE: loop exit
PB: predicated region body
PF: predicated region fallthrough
CT: control target
= control target key end

     0   :  { %s22_s0 = inlined_call_operand.vmem [shape: f32[32], index: 0, kind: input, shape index: {}]   ;;  %s23_s1 = inlined_call_operand.vmem [shape: f32[4,32], index: 1, kind: output, shape index: {}]  }
   0x1   :  { %v4_v0 = vld [vmem:[%s22_s0] ss:$0 sm:$0xff] }
   0x2   :  { %5 = vst [vmem:[%s23_s1] sm:$0xf] %v4_v0 }

// kernel: tile.122
= control target key start
LH: loop header
LB: loop body
LE: loop exit
PB: predicated region body
PF: predicated region fallthrough
CT: control target
= control target key end

     0   :  { %vm7_vm0 = vcmask 261120   ;;  %s37_s8 = smov 32   ;;  %s38_s9 = smov 64   ;;  %vm13_vm1 = vcmask 1048320   ;;  %vm19_vm2 = vcmask 785920   ;;  %vm25_vm3 = vcmask 523520   ;;  %s55_s0 = inlined_call_operand.vmem [shape: f32[4,32], index: 0, kind: input, shape index: {}]   ;;  %s56_s1 = inlined_call_operand.vmem [shape: f32[1,128], index: 1, kind: output, shape index: {}]  }
   0x1   :  { %v4_v0 = vld [vmem:[%s55_s0] sm:$0xf]  ;;  %s36_s0 = smov 96  }
   0x2   :  { %5 = vst [vmem:[#allocation1] sm:$0xf] %v4_v0 }
   0x9   :  { %v10_v1 = vld [vmem:[#allocation1 + $0x3] sm:$0x1]   ;;  %v22_v2 = vld [vmem:[#allocation1 + $0x1] sm:$0x1]   ;;  %v6_v3 = vld [vmem:[#allocation1] sm:$0x1]  }
   0xa   :  { %11 = vrot.lane.b32.xlu0 %v10_v1, %s36_s0  ;;  %23 = vrot.lane.b32.xlu1 %v22_v2, %s37_s8  ;;  %v16_v4 = vld [vmem:[#allocation1 + $0x2] sm:$0x1]   ;;  %8 = vst.msk [vmem:[#allocation0] sm:$0x1] %vm7_vm0, %v6_v3  }
   0xe   :  { %17 = vrot.lane.b32.xlu0 %v16_v4, %s38_s9 }
  0x7c   :  { %v12_v5 = vpop.permute.xlu0 %11   ;;  %v24_v6 = vpop.permute.xlu1 %23  }
  0x7d   :  { %14 = vst.msk [vmem:[#allocation0] sm:$0x1] %vm13_vm1, %v12_v5  }
  0x80   :  { %v18_v7 = vpop.permute.xlu0 %17  }
  0x81   :  { %20 = vst.msk [vmem:[#allocation0] sm:$0x1] %vm19_vm2, %v18_v7  }
  0x82   :  { %26 = vst.msk [vmem:[#allocation0] sm:$0x1] %vm25_vm3, %v24_v6  }
  0x89   :  { %v30_v8 = vld [vmem:[#allocation0] sm:$0x1] }
  0x8a   :  { %32 = vst [vmem:[%s56_s1] sm:$0x1] %v30_v8 }

// kernel: _lambda_.31
= control target key start
LH: loop header
LB: loop body
LE: loop exit
PB: predicated region body
PF: predicated region fallthrough
CT: control target
= control target key end

     0   :  { %s71_s0 = inlined_call_operand.vmem [shape: f32[8,128], index: 0, kind: input, shape index: {}]   ;;  %s72_s1 = inlined_call_operand.vmem [shape: f32[1,128], index: 1, kind: input, shape index: {}]   ;;  %s73_s2 = inlined_call_operand.vmem [shape: f32[1,128], index: 2, kind: input, shape index: {}]   ;;  %s74_s3 = inlined_call_operand.vmem [shape: f32[8,128], index: 3, kind: output, shape index: {}]  }
   0x1   :  { %v14_v0 = vld [vmem:[%s71_s0] sm:$0xff] }
   0x2   :  { %v37_v1 = vld [vmem:[%s72_s1] ss:$0 sm:$0xff] }
   0x3   :  { %v38_v2 = vld [vmem:[%s73_s2] ss:$0 sm:$0xff]  ;;  %v22_v3 = vmul.f32 %v37_v1, %v14_v0 }
   0x5   :  { %v30_v4 = vadd.f32 %v38_v2, %v22_v3 }
   0x7   :  { %v31_v5 = vmax.f32 %v30_v4, 0.0 }
   0x9   :  { %32 = vst [vmem:[%s74_s3] sm:$0xff] %v31_v5 }

// kernel: _lambda_.35
= control target key start
LH: loop header
LB: loop body
LE: loop exit
PB: predicated region body
PF: predicated region fallthrough
CT: control target
= control target key end

     0   :  { %s83_s0 = inlined_call_operand.vmem [shape: f32[8,128], index: 0, kind: input, shape index: {}]   ;;  %s84_s1 = inlined_call_operand.vmem [shape: f32[8,128], index: 1, kind: input, shape index: {}]   ;;  %s85_s2 = inlined_call_operand.vmem [shape: f32[1,128], index: 2, kind: input, shape index: {}]   ;;  %s86_s3 = inlined_call_operand.vmem [shape: f32[1,128], index: 3, kind: input, shape index: {}]   ;;  %s87_s4 = inlined_call_operand.vmem [shape: f32[8,128], index: 4, kind: output, shape index: {}]  }
   0x1   :  { %v17_v0 = vld [vmem:[%s83_s0] sm:$0xff] }
   0x2   :  { %v41_v1 = vld [vmem:[%s85_s2] ss:$0 sm:$0xff] }
   0x3   :  { %v42_v2 = vld [vmem:[%s86_s3] ss:$0 sm:$0xff]  ;;  %v25_v3 = vmul.f32 %v41_v1, %v17_v0 }
   0x4   :  { %v34_v4 = vld [vmem:[%s84_s1] sm:$0xff] }
   0x5   :  { %v33_v5 = vadd.f32 %v42_v2, %v25_v3 }
   0x7   :  { %v35_v6 = vadd.f32 %v34_v4, %v33_v5 }
   0x9   :  { %36 = vst [vmem:[%s87_s4] sm:$0xff] %v35_v6 }

// kernel: _lambda_.41
= control target key start
LH: loop header
LB: loop body
LE: loop exit
PB: predicated region body
PF: predicated region fallthrough
CT: control target
= control target key end

     0   :  { %vm58_vm0 = vcmask 523264   ;;  %s199_s1 = inlined_call_operand.vmem [shape: bf16[64,128], index: 1, kind: input, shape index: {}]   ;;  %s200_s0 = inlined_call_operand.vmem [shape: bf16[32,64], index: 0, kind: input, shape index: {}]   ;;  %s201_s2 = inlined_call_operand.vmem [shape: f32[32,128], index: 2, kind: output, shape index: {}]  }
   0x1   :  { %v148_v0 = vld [vmem:[%s199_s1] sm:$0xff]   ;;  %v149_v1 = vld [vmem:[%s199_s1 + $0x8] sm:$0xff]   ;;  %v150_v2 = vld [vmem:[%s199_s1 + $0x10] sm:$0xff]  }
   0x2   :  { %136 = vmatprep.subr.bf16.mxu0 %v148_v0  ;;  %v152_v3 = vld [vmem:[%s200_s0] sm:$0xff]   ;;  %v151_v4 = vld [vmem:[%s199_s1 + $0x18] sm:$0xff]   ;;  %v153_v5 = vld [vmem:[%s200_s0 + $0x8] sm:$0xff]  }
   0x3   :  { %137 = vmatpush3.bf16.msra.mxu0 %v148_v0  ;;  %144 = vmatprep.mubr.msk.bf16.mxu0 %vm58_vm0, %v152_v3 }
   0x4   :  { %138 = vmatprep.subr.bf16.mxu0 %v149_v1 }
   0x7   :  { %139 = vmatpush3.bf16.msra.mxu0 %v149_v1 }
   0x8   :  { %140 = vmatprep.subr.bf16.mxu0 %v150_v2 }
   0xb   :  { %141 = vmatpush3.bf16.msra.mxu0 %v150_v2 }
   0xc   :  { %142 = vmatprep.subr.bf16.mxu0 %v151_v4 }
   0xf   :  { %143 = vmatpush3.bf16.msra.mxu0 %v151_v4 }
  0x12   :  { %145 = vmatmul.mubr.msk.bf16.vlgmr.msra.gmra.mrb[0].mxu0 %vm58_vm0, %v153_v5 }
  0xe5   :  { %v146_v6 = vpop.f32.mrb[0].mxu0 }
  0xe6   :  { %116 = vst [vmem:[%s201_s2 + $0x10] sm:$0xff] %v146_v6  ;;  %v99_v7 = vpop.f32.mrb[1].mxu0 }
  0xe7   :  { %114 = vst [vmem:[%s201_s2] sm:$0xff] %v99_v7  ;;  %v147_v8 = vpop.f32.mrb[2].mxu0 }
  0xe8   :  { %117 = vst [vmem:[%s201_s2 + $0x18] sm:$0xff] %v147_v8  ;;  %v102_v9 = vpop.f32.mrb[3].mxu0 }
  0xe9   :  { %115 = vst [vmem:[%s201_s2 + $0x8] sm:$0xff] %v102_v9 }

// kernel: _lambda_.32
= control target key start
LH: loop header
LB: loop body
LE: loop exit
PB: predicated region body
PF: predicated region fallthrough
CT: control target
= control target key end

     0   :  { %vm194_vm0 = vcmask 261120   ;;  %s498_s1 = inlined_call_operand.vmem [shape: bf16[288,128], index: 1, kind: input, shape index: {}]   ;;  %s499_s0 = inlined_call_operand.vmem [shape: bf16[32,288], index: 0, kind: input, shape index: {}]   ;;  %s500_s2 = inlined_call_operand.vmem [shape: f32[32,128], index: 2, kind: output, shape index: {}]  }
   0x1   :  { %v373_v0 = vld [vmem:[%s498_s1 + $0x40] sm:$0xff]   ;;  %v375_v2 = vld [vmem:[%s498_s1 + $0x48] sm:$0xff]   ;;  %v377_v4 = vld [vmem:[%s498_s1 + $0x50] sm:$0xff]  }
   0x2   :  { %v374_v1 = vld [vmem:[%s498_s1] sm:$0xff]   ;;  %333 = vmatprep.subr.bf16.mxu0 %v373_v0  ;;  %v376_v3 = vld [vmem:[%s498_s1 + $0x8] sm:$0xff]   ;;  %v378_v5 = vld [vmem:[%s498_s1 + $0x10] sm:$0xff]  }
   0x3   :  { %334 = vmatpush3.bf16.msra.mxu0 %v374_v1  ;;  %v379_v6 = vld [vmem:[%s498_s1 + $0x58] sm:$0xff]   ;;  %v381_v8 = vld [vmem:[%s498_s1 + $0x60] sm:$0xff]   ;;  %v383_v11 = vld [vmem:[%s498_s1 + $0x68] sm:$0xff]  }
   0x4   :  { %335 = vmatprep.subr.bf16.mxu0 %v375_v2  ;;  %v380_v7 = vld [vmem:[%s498_s1 + $0x18] sm:$0xff]   ;;  %v387_v9 = vld [vmem:[%s498_s1 + $0x80] sm:$0xff]   ;;  %v384_v12 = vld [vmem:[%s498_s1 + $0x28] sm:$0xff]  }
   0x5   :  { %v382_v10 = vld [vmem:[%s498_s1 + $0x20] sm:$0xff]   ;;  %365 = vmatprep.subr.bf16.mxu1 %v387_v9  ;;  %v390_v13 = vld [vmem:[%s498_s1 + $0x88] sm:$0xff]   ;;  %v385_v14 = vld [vmem:[%s498_s1 + $0x70] sm:$0xff]  }
   0x6   :  { %366 = vmatpush3.bf16.msra.mxu1 %v387_v9  ;;  %v393_v15 = vld [vmem:[%s499_s0 + $0x4] ss:$12 sps:$4 sm:$0xff]   ;;  %v394_v16 = vld [vmem:[%s499_s0 + $0x8] ss:$12 sps:$4 sm:$0xff]   ;;  %v395_v17 = vld [vmem:[%s499_s0 + $0x20] ss:$12 sps:$4 sm:$0xff]  }
   0x7   :  { %336 = vmatpush3.bf16.msra.mxu0 %v376_v3  ;;  %367 = vmatprep.subr.bf16.mxu1 %v390_v13  ;;  %v386_v18 = vld [vmem:[%s498_s1 + $0x30] sm:$0xff]   ;;  %v388_v19 = vld [vmem:[%s498_s1 + $0x78] sm:$0xff]   ;;  %v391_v21 = vld [vmem:[%s499_s0] ss:$12 sps:$4 sm:$0xff]  }
   0x8   :  { %337 = vmatprep.subr.bf16.mxu0 %v377_v4  ;;  %233 = vmatprep.mubr.bf16.mxu0 %v393_v15  ;;  %v389_v20 = vld [vmem:[%s498_s1 + $0x38] sm:$0xff]  }
   0x9   :  { %369 = vmatprep.mubr.msk.bf16.mxu1 %vm194_vm0, %v394_v16  ;;  %v396_v22 = vld [vmem:[%s499_s0 + $0x1c] ss:$12 sps:$4 sm:$0xff]   ;;  %v398_v23 = vld [vmem:[%s499_s0 + $0x18] ss:$12 sps:$4 sm:$0xff]  }
   0xa   :  { %368 = vmatpush3.bf16.msra.mxu1 %v390_v13 }
   0xb   :  { %338 = vmatpush3.bf16.msra.mxu0 %v378_v5 }
   0xc   :  { %339 = vmatprep.subr.bf16.mxu0 %v379_v6 }
   0xd   :  { %370 = vmatmul.mubr.msk.bf16.vlgmr.msra.gmra.mrb[0].mxu1 %vm194_vm0, %v395_v17 }
   0xf   :  { %340 = vmatpush3.bf16.msra.mxu0 %v380_v7 }
  0x10   :  { %341 = vmatprep.subr.bf16.mxu0 %v381_v8 }
  0x13   :  { %342 = vmatpush3.bf16.msra.mxu0 %v382_v10 }
  0x14   :  { %343 = vmatprep.subr.bf16.mxu0 %v383_v11 }
  0x17   :  { %344 = vmatpush3.bf16.msra.mxu0 %v384_v12 }
  0x18   :  { %345 = vmatprep.subr.bf16.mxu0 %v385_v14 }
  0x1b   :  { %346 = vmatpush3.bf16.msra.mxu0 %v386_v18 }
  0x1c   :  { %347 = vmatprep.subr.bf16.mxu0 %v388_v19 }
  0x1f   :  { %348 = vmatpush3.bf16.msra.mxu0 %v389_v20 }
  0x22   :  { %234 = vmatmul.mubr.bf16.vlgmr.msra.gmra.mrb[0].mxu0 %v391_v21 }
  0x23   :  { %241 = vmatprep.mubr.bf16.mxu0 %v396_v22 }
  0x2a   :  { %242 = vmatmul.mubr.bf16.gmra.mrb[4].mxu0 %v398_v23 }
  0xe0   :  { %v371_v24 = vpop.f32.mrb[0].mxu1 }
  0xe1   :  { %v284_v25 = vpop.f32.mrb[1].mxu1 }
  0xe2   :  { %v372_v26 = vpop.f32.mrb[2].mxu1 }
  0xe3   :  { %v287_v27 = vpop.f32.mrb[3].mxu1 }
  0xf5   :  { %v349_v28 = vpop.f32.mrb[0].mxu0 }
  0xf6   :  { %v350_v29 = vpop.f32.mrb[1].mxu0 }
  0xf7   :  { %v351_v30 = vadd.f32 %v350_v29, %v349_v28  ;;  %v352_v31 = vpop.f32.mrb[2].mxu0 }
  0xf8   :  { %v353_v32 = vpop.f32.mrb[3].mxu0 }
  0xf9   :  { %v354_v33 = vadd.f32 %v353_v32, %v352_v31  ;;  %v285_v34 = vadd.f32 %v351_v30, %v284_v25 }
  0xfb   :  { %299 = vst [vmem:[%s500_s2] sm:$0xff] %v285_v34  ;;  %v288_v35 = vadd.f32 %v354_v33, %v287_v27 }
  0xfd   :  { %300 = vst [vmem:[%s500_s2 + $0x8] sm:$0xff] %v288_v35  ;;  %v355_v36 = vpop.f32.mrb[4].mxu0 }
  0xfe   :  { %v356_v37 = vpop.f32.mrb[5].mxu0 }
  0xff   :  { %v357_v38 = vadd.f32 %v356_v37, %v355_v36  ;;  %v358_v39 = vpop.f32.mrb[6].mxu0 }
 0x100   :  { %v359_v40 = vpop.f32.mrb[7].mxu0 }
 0x101   :  { %v293_v41 = vadd.f32 %v371_v24, %v357_v38  ;;  %v360_v42 = vadd.f32 %v359_v40, %v358_v39 }
 0x103   :  { %301 = vst [vmem:[%s500_s2 + $0x10] sm:$0xff] %v293_v41  ;;  %v296_v43 = vadd.f32 %v372_v26, %v360_v42 }
 0x105   :  { %302 = vst [vmem:[%s500_s2 + $0x18] sm:$0xff] %v296_v43 }

// kernel: _lambda_.40
= control target key start
LH: loop header
LB: loop body
LE: loop exit
PB: predicated region body
PF: predicated region fallthrough
CT: control target
= control target key end

     0   :  { %vm42_vm0 = vcmask 261120   ;;  %s167_s1 = inlined_call_operand.vmem [shape: bf16[32,128], index: 1, kind: input, shape index: {}]   ;;  %s168_s0 = inlined_call_operand.vmem [shape: bf16[32,32], index: 0, kind: input, shape index: {}]   ;;  %s169_s2 = inlined_call_operand.vmem [shape: f32[32,128], index: 2, kind: output, shape index: {}]  }
   0x1   :  { %v124_v0 = vld [vmem:[%s167_s1] sm:$0xff]   ;;  %v125_v1 = vld [vmem:[%s167_s1 + $0x8] sm:$0xff]  }
   0x2   :  { %116 = vmatprep.subr.bf16.mxu0 %v124_v0  ;;  %v126_v2 = vld [vmem:[%s168_s0] sm:$0xff]   ;;  %v127_v3 = vld [vmem:[%s168_s0 + $0x8] sm:$0xff]  }
   0x3   :  { %117 = vmatpush3.bf16.msra.mxu0 %v124_v0  ;;  %120 = vmatprep.mubr.msk.bf16.mxu0 %vm42_vm0, %v126_v2 }
   0x4   :  { %118 = vmatprep.subr.bf16.mxu0 %v125_v1 }
   0x7   :  { %119 = vmatpush3.bf16.msra.mxu0 %v125_v1 }
   0xa   :  { %121 = vmatmul.mubr.msk.bf16.vlgmr.msra.gmra.mrb[0].mxu0 %vm42_vm0, %v127_v3 }
  0xdd   :  { %v122_v4 = vpop.f32.mrb[0].mxu0 }
  0xde   :  { %100 = vst [vmem:[%s169_s2 + $0x10] sm:$0xff] %v122_v4  ;;  %v83_v5 = vpop.f32.mrb[1].mxu0 }
  0xdf   :  { %98 = vst [vmem:[%s169_s2] sm:$0xff] %v83_v5  ;;  %v123_v6 = vpop.f32.mrb[2].mxu0 }
  0xe0   :  { %101 = vst [vmem:[%s169_s2 + $0x18] sm:$0xff] %v123_v6  ;;  %v86_v7 = vpop.f32.mrb[3].mxu0 }
  0xe1   :  { %99 = vst [vmem:[%s169_s2 + $0x8] sm:$0xff] %v86_v7 }

// kernel: _lambda_.43
= control target key start
LH: loop header
LB: loop body
LE: loop exit
PB: predicated region body
PF: predicated region fallthrough
CT: control target
= control target key end

     0   :  { %s256_s1 = inlined_call_operand.vmem [shape: bf16[128,128], index: 1, kind: input, shape index: {}]   ;;  %s257_s0 = inlined_call_operand.vmem [shape: bf16[32,128], index: 0, kind: input, shape index: {}]   ;;  %s258_s2 = inlined_call_operand.vmem [shape: f32[32,128], index: 2, kind: output, shape index: {}]  }
   0x1   :  { %v189_v0 = vld [vmem:[%s256_s1] sm:$0xff]   ;;  %v190_v1 = vld [vmem:[%s256_s1 + $0x8] sm:$0xff]   ;;  %v191_v2 = vld [vmem:[%s256_s1 + $0x10] sm:$0xff]  }
   0x2   :  { %169 = vmatprep.subr.bf16.mxu0 %v189_v0  ;;  %v192_v3 = vld [vmem:[%s256_s1 + $0x18] sm:$0xff]   ;;  %v197_v4 = vld [vmem:[%s257_s0] sm:$0xff]   ;;  %v194_v6 = vld [vmem:[%s256_s1 + $0x28] sm:$0xff]  }
   0x3   :  { %170 = vmatpush3.bf16.msra.mxu0 %v189_v0  ;;  %185 = vmatprep.mubr.bf16.mxu0 %v197_v4  ;;  %v193_v5 = vld [vmem:[%s256_s1 + $0x20] sm:$0xff]   ;;  %v195_v7 = vld [vmem:[%s256_s1 + $0x30] sm:$0xff]   ;;  %v196_v8 = vld [vmem:[%s256_s1 + $0x38] sm:$0xff]  }
   0x4   :  { %171 = vmatprep.subr.bf16.mxu0 %v190_v1  ;;  %v198_v9 = vld [vmem:[%s257_s0 + $0x8] sm:$0xff]  }
   0x7   :  { %172 = vmatpush3.bf16.msra.mxu0 %v190_v1 }
   0x8   :  { %173 = vmatprep.subr.bf16.mxu0 %v191_v2 }
   0xb   :  { %174 = vmatpush3.bf16.msra.mxu0 %v191_v2 }
   0xc   :  { %175 = vmatprep.subr.bf16.mxu0 %v192_v3 }
   0xf   :  { %176 = vmatpush3.bf16.msra.mxu0 %v192_v3 }
  0x10   :  { %177 = vmatprep.subr.bf16.mxu0 %v193_v5 }
  0x13   :  { %178 = vmatpush3.bf16.msra.mxu0 %v193_v5 }
  0x14   :  { %179 = vmatprep.subr.bf16.mxu0 %v194_v6 }
  0x17   :  { %180 = vmatpush3.bf16.msra.mxu0 %v194_v6 }
  0x18   :  { %181 = vmatprep.subr.bf16.mxu0 %v195_v7 }
  0x1b   :  { %182 = vmatpush3.bf16.msra.mxu0 %v195_v7 }
  0x1c   :  { %183 = vmatprep.subr.bf16.mxu0 %v196_v8 }
  0x1f   :  { %184 = vmatpush3.bf16.msra.mxu0 %v196_v8 }
  0x22   :  { %186 = vmatmul.mubr.bf16.vlgmr.msra.gmra.mrb[0].mxu0 %v198_v9 }
  0xf5   :  { %v187_v10 = vpop.f32.mrb[0].mxu0 }
  0xf6   :  { %143 = vst [vmem:[%s258_s2 + $0x10] sm:$0xff] %v187_v10  ;;  %v126_v11 = vpop.f32.mrb[1].mxu0 }
  0xf7   :  { %141 = vst [vmem:[%s258_s2] sm:$0xff] %v126_v11  ;;  %v188_v12 = vpop.f32.mrb[2].mxu0 }
  0xf8   :  { %144 = vst [vmem:[%s258_s2 + $0x18] sm:$0xff] %v188_v12  ;;  %v129_v13 = vpop.f32.mrb[3].mxu0 }
  0xf9   :  { %142 = vst [vmem:[%s258_s2 + $0x8] sm:$0xff] %v129_v13 }

// kernel: _lambda_.45
= control target key start
LH: loop header
LB: loop body
LE: loop exit
PB: predicated region body
PF: predicated region fallthrough
CT: control target
= control target key end

     0   :  { %s399_s9 = smov 0   ;;  %s419_s0 = inlined_call_operand.vmem [shape: bf16[128,16], index: 0, kind: input, shape index: {}]   ;;  %s420_s1 = inlined_call_operand.vmem [shape: bf16[16,128], index: 1, kind: input, shape index: {}]   ;;  %s421_s2 = inlined_call_operand.vmem [shape: f32[128,128], index: 2, kind: output, shape index: {}]  }
   0x1 LB: > { %s326_s10 = sadd.s32 4294967295, %s382_s9   ;;  %p330_p0 = scmp.ge.s32.totalorder %s382_s9, 1  ;;  %s382_s9 = sphi %s399_s9, %s12_s9  }
   0x2   : > { %p113_p1 = scmp.lt.s32.totalorder %s382_s9, 3 }
   0x4   : > { %p114_p2 = pnand %p330_p0, %p113_p1 }
   0x5   : > { %v371_v0 = vld [vmem:[%s420_s1] sm:$0xff] (!%p114_p2)   ;;  %s331_s13 = sshll.u32 (!%p114_p2), %s326_s10, 3  ;;  %vm184_vm0 = vcmask (!%p114_p2), 130048  }
   0x6   : > { %117 = sbr.rel (%p114_p2) target bundleno = 234 (0xea), region = 28  ;;  %p136_p3 = scmp.lt.s32.totalorder (!%p114_p2), %s331_s13, 15  ;;  %351 = vmatprep.subr.bf16.mxu0 (!%p114_p2), %v371_v0  ;;  %361 = vmatprep.subr.bf16.mxu1 (!%p114_p2), %v371_v0 }
   0x7   : > { %352 = vmatpush3.bf16.msra.mxu0 (!%p114_p2), %v371_v0  ;;  %362 = vmatpush3.bf16.msra.mxu1 (!%p114_p2), %v371_v0 }
   0xd   : > { %s423_s13 = smov (!%p136_p3, %s331_s13), 15 }
   0xe   : > { %s332_s14 = sshll.u32 %s423_s13, 2  ;;  %s334_s18 = sshll.u32 %s423_s13, 3 }
   0xf   : > { %s139_s17 = scalar_lea.vmem %s419_s0, %s332_s14  ;;  %s145_s21 = scalar_lea.vmem %s421_s2, %s334_s18 }
  0x10   : > { %v372_v1 = vld [vmem:[%s139_s17] sm:$0xff]   ;;  %v373_v2 = vld [vmem:[%s139_s17 + $0x10] sm:$0xff]   ;;  %v374_v3 = vld [vmem:[%s139_s17 + $0x8] sm:$0xff]  }
  0x11   : > { %353 = vmatprep.mubr.msk.bf16.mxu0 %vm184_vm0, %v372_v1  ;;  %357 = vmatprep.mubr.msk.bf16.mxu1 %vm184_vm0, %v373_v2  ;;  %v375_v4 = vld [vmem:[%s139_s17 + $0x18] sm:$0xff]  }
  0x12   : > { %354 = vmatmul.mubr.msk.bf16.vlgmr.msra.gmra.mrb[0].mxu0 %vm184_vm0, %v374_v3  ;;  %358 = vmatmul.mubr.msk.bf16.vlgmr.msra.gmra.mrb[0].mxu1 %vm184_vm0, %v375_v4 }
  0xe5   : > { %v355_v5 = vpop.f32.mrb[0].mxu0  ;;  %v359_v6 = vpop.f32.mrb[0].mxu1 }
  0xe6   : > { %264 = vst [vmem:[%s145_s21 + $0x10] sm:$0xff] %v355_v5  ;;  %v231_v7 = vpop.f32.mrb[1].mxu0  ;;  %268 = vst [vmem:[%s145_s21 + $0x30] sm:$0xff] %v359_v6  ;;  %v247_v8 = vpop.f32.mrb[1].mxu1 }
  0xe7   : > { %262 = vst [vmem:[%s145_s21] sm:$0xff] %v231_v7  ;;  %v356_v9 = vpop.f32.mrb[2].mxu0  ;;  %266 = vst [vmem:[%s145_s21 + $0x20] sm:$0xff] %v247_v8  ;;  %v360_v10 = vpop.f32.mrb[2].mxu1 }
  0xe8   : > { %265 = vst [vmem:[%s145_s21 + $0x18] sm:$0xff] %v356_v9  ;;  %v234_v11 = vpop.f32.mrb[3].mxu0  ;;  %269 = vst [vmem:[%s145_s21 + $0x38] sm:$0xff] %v360_v10  ;;  %v250_v12 = vpop.f32.mrb[3].mxu1 }
  0xe9   : > { %263 = vst [vmem:[%s145_s21 + $0x8] sm:$0xff] %v234_v11  ;;  %267 = vst [vmem:[%s145_s21 + $0x28] sm:$0xff] %v250_v12 }
  0xea PF: > { %s12_s9 = sadd.s32 1, %s382_s9  }
  0xeb   : > { %p9_p4 = scmp.ge.s32.totalorder %s12_s9, 4  }
  0xed   :  { %11 = sbr.rel (!%p9_p4) target bundleno = 1 (0x1), region = 58 }

// kernel: _lambda_.46
= control target key start
LH: loop header
LB: loop body
LE: loop exit
PB: predicated region body
PF: predicated region fallthrough
CT: control target
= control target key end

     0   :  { %s414_s9 = smov 0   ;;  %s437_s0 = inlined_call_operand.vmem [shape: bf16[128,32], index: 0, kind: input, shape index: {}]   ;;  %s438_s1 = inlined_call_operand.vmem [shape: bf16[32,128], index: 1, kind: input, shape index: {}]   ;;  %s439_s2 = inlined_call_operand.vmem [shape: f32[128,128], index: 2, kind: output, shape index: {}]  }
   0x1 LB: > { %s334_s10 = sadd.s32 4294967295, %s397_s9   ;;  %p338_p0 = scmp.ge.s32.totalorder %s397_s9, 1  ;;  %s397_s9 = sphi %s414_s9, %s12_s9  }
   0x2   : > { %p113_p1 = scmp.lt.s32.totalorder %s397_s9, 3 }
   0x4   : > { %p114_p2 = pnand %p338_p0, %p113_p1 }
   0x5   : > { %v385_v0 = vld [vmem:[%s438_s1] sm:$0xff] (!%p114_p2)   ;;  %s339_s13 = sshll.u32 (!%p114_p2), %s334_s10, 3  ;;  %v386_v1 = vld [vmem:[%s438_s1 + $0x8] sm:$0xff] (!%p114_p2)   ;;  %vm192_vm0 = vcmask (!%p114_p2), 261120  }
   0x6   : > { %117 = sbr.rel (%p114_p2) target bundleno = 234 (0xea), region = 28  ;;  %p136_p3 = scmp.lt.s32.totalorder (!%p114_p2), %s339_s13, 15  ;;  %361 = vmatprep.subr.bf16.mxu0 (!%p114_p2), %v385_v0  ;;  %373 = vmatprep.subr.bf16.mxu1 (!%p114_p2), %v385_v0 }
   0x7   : > { %362 = vmatpush3.bf16.msra.mxu0 (!%p114_p2), %v385_v0  ;;  %375 = vmatpush3.bf16.msra.mxu1 (!%p114_p2), %v385_v0 }
   0x8   : > { %363 = vmatprep.subr.bf16.mxu0 (!%p114_p2), %v386_v1  ;;  %374 = vmatprep.subr.bf16.mxu1 (!%p114_p2), %v386_v1 }
   0xb   : > { %364 = vmatpush3.bf16.msra.mxu0 (!%p114_p2), %v386_v1  ;;  %376 = vmatpush3.bf16.msra.mxu1 (!%p114_p2), %v386_v1 }
   0xd   : > { %s441_s13 = smov (!%p136_p3, %s339_s13), 15 }
   0xe   : > { %s340_s16 = sshll.u32 %s441_s13, 2  ;;  %s342_s20 = sshll.u32 %s441_s13, 3 }
   0xf   : > { %s139_s19 = scalar_lea.vmem %s437_s0, %s340_s16  ;;  %s145_s23 = scalar_lea.vmem %s439_s2, %s342_s20 }
  0x10   : > { %v387_v2 = vld [vmem:[%s139_s19] sm:$0xff]   ;;  %v388_v3 = vld [vmem:[%s139_s19 + $0x10] sm:$0xff]   ;;  %v389_v4 = vld [vmem:[%s139_s19 + $0x8] sm:$0xff]  }
  0x11   : > { %365 = vmatprep.mubr.msk.bf16.mxu0 %vm192_vm0, %v387_v2  ;;  %369 = vmatprep.mubr.msk.bf16.mxu1 %vm192_vm0, %v388_v3  ;;  %v390_v5 = vld [vmem:[%s139_s19 + $0x18] sm:$0xff]  }
  0x12   : > { %366 = vmatmul.mubr.msk.bf16.vlgmr.msra.gmra.mrb[0].mxu0 %vm192_vm0, %v389_v4  ;;  %370 = vmatmul.mubr.msk.bf16.vlgmr.msra.gmra.mrb[0].mxu1 %vm192_vm0, %v390_v5 }
  0xe5   : > { %v367_v6 = vpop.f32.mrb[0].mxu0  ;;  %v371_v7 = vpop.f32.mrb[0].mxu1 }
  0xe6   : > { %272 = vst [vmem:[%s145_s23 + $0x10] sm:$0xff] %v367_v6  ;;  %v239_v8 = vpop.f32.mrb[1].mxu0  ;;  %276 = vst [vmem:[%s145_s23 + $0x30] sm:$0xff] %v371_v7  ;;  %v255_v9 = vpop.f32.mrb[1].mxu1 }
  0xe7   : > { %270 = vst [vmem:[%s145_s23] sm:$0xff] %v239_v8  ;;  %v368_v10 = vpop.f32.mrb[2].mxu0  ;;  %274 = vst [vmem:[%s145_s23 + $0x20] sm:$0xff] %v255_v9  ;;  %v372_v11 = vpop.f32.mrb[2].mxu1 }
  0xe8   : > { %273 = vst [vmem:[%s145_s23 + $0x18] sm:$0xff] %v368_v10  ;;  %v242_v12 = vpop.f32.mrb[3].mxu0  ;;  %277 = vst [vmem:[%s145_s23 + $0x38] sm:$0xff] %v372_v11  ;;  %v258_v13 = vpop.f32.mrb[3].mxu1 }
  0xe9   : > { %271 = vst [vmem:[%s145_s23 + $0x8] sm:$0xff] %v242_v12  ;;  %275 = vst [vmem:[%s145_s23 + $0x28] sm:$0xff] %v258_v13 }
  0xea PF: > { %s12_s9 = sadd.s32 1, %s397_s9  }
  0xeb   : > { %p9_p4 = scmp.ge.s32.totalorder %s12_s9, 4  }
  0xed   :  { %11 = sbr.rel (!%p9_p4) target bundleno = 1 (0x1), region = 58 }

// kernel: _lambda_.48
= control target key start
LH: loop header
LB: loop body
LE: loop exit
PB: predicated region body
PF: predicated region fallthrough
CT: control target
= control target key end

     0   :  { %s444_s9 = smov 0   ;;  %s477_s0 = inlined_call_operand.vmem [shape: bf16[128,64], index: 0, kind: input, shape index: {}]   ;;  %s478_s1 = inlined_call_operand.vmem [shape: bf16[64,128], index: 1, kind: input, shape index: {}]   ;;  %s479_s2 = inlined_call_operand.vmem [shape: f32[128,128], index: 2, kind: output, shape index: {}]  }
   0x1 LB: > { %s350_s10 = sadd.s32 4294967295, %s427_s9   ;;  %p354_p0 = scmp.ge.s32.totalorder %s427_s9, 1  ;;  %s427_s9 = sphi %s444_s9, %s12_s9  }
   0x2   : > { %p113_p1 = scmp.lt.s32.totalorder %s427_s9, 3 }
   0x4   : > { %p114_p2 = pnand %p354_p0, %p113_p1 }
   0x5   : > { %v413_v0 = vld [vmem:[%s478_s1] sm:$0xff] (!%p114_p2)   ;;  %s355_s13 = sshll.u32 (!%p114_p2), %s350_s10, 3  ;;  %v414_v1 = vld [vmem:[%s478_s1 + $0x8] sm:$0xff] (!%p114_p2)   ;;  %v415_v2 = vld [vmem:[%s478_s1 + $0x10] sm:$0xff] (!%p114_p2)   ;;  %vm208_vm0 = vcmask (!%p114_p2), 523264  }
   0x6   : > { %117 = sbr.rel (%p114_p2) target bundleno = 238 (0xee), region = 28  ;;  %p136_p3 = scmp.lt.s32.totalorder (!%p114_p2), %s355_s13, 15  ;;  %381 = vmatprep.subr.bf16.mxu0 (!%p114_p2), %v413_v0  ;;  %397 = vmatprep.subr.bf16.mxu1 (!%p114_p2), %v413_v0  ;;  %v416_v3 = vld [vmem:[%s478_s1 + $0x18] sm:$0xff] (!%p114_p2)  }
   0x7   : > { %382 = vmatpush3.bf16.msra.mxu0 (!%p114_p2), %v413_v0  ;;  %401 = vmatpush3.bf16.msra.mxu1 (!%p114_p2), %v413_v0 }
   0x8   : > { %383 = vmatprep.subr.bf16.mxu0 (!%p114_p2), %v414_v1  ;;  %398 = vmatprep.subr.bf16.mxu1 (!%p114_p2), %v414_v1 }
   0xb   : > { %384 = vmatpush3.bf16.msra.mxu0 (!%p114_p2), %v414_v1  ;;  %402 = vmatpush3.bf16.msra.mxu1 (!%p114_p2), %v414_v1 }
   0xc   : > { %385 = vmatprep.subr.bf16.mxu0 (!%p114_p2), %v415_v2  ;;  %399 = vmatprep.subr.bf16.mxu1 (!%p114_p2), %v415_v2 }
   0xd   : > { %s481_s13 = smov (!%p136_p3, %s355_s13), 15 }
   0xe   : > { %s356_s18 = sshll.u32 %s481_s13, 2  ;;  %s358_s24 = sshll.u32 %s481_s13, 3 }
   0xf   : > { %s139_s23 = scalar_lea.vmem %s477_s0, %s356_s18  ;;  %386 = vmatpush3.bf16.msra.mxu0 %v415_v2  ;;  %403 = vmatpush3.bf16.msra.mxu1 %v415_v2  ;;  %s145_s27 = scalar_lea.vmem %s479_s2, %s358_s24 }
  0x10   : > { %v417_v4 = vld [vmem:[%s139_s23] sm:$0xff]   ;;  %v418_v5 = vld [vmem:[%s139_s23 + $0x10] sm:$0xff]   ;;  %387 = vmatprep.subr.bf16.mxu0 %v416_v3  ;;  %400 = vmatprep.subr.bf16.mxu1 %v416_v3  ;;  %v419_v6 = vld [vmem:[%s139_s23 + $0x8] sm:$0xff]  }
  0x11   : > { %389 = vmatprep.mubr.msk.bf16.mxu0 %vm208_vm0, %v417_v4  ;;  %393 = vmatprep.mubr.msk.bf16.mxu1 %vm208_vm0, %v418_v5  ;;  %v420_v7 = vld [vmem:[%s139_s23 + $0x18] sm:$0xff]  }
  0x13   : > { %388 = vmatpush3.bf16.msra.mxu0 %v416_v3  ;;  %404 = vmatpush3.bf16.msra.mxu1 %v416_v3 }
  0x16   : > { %390 = vmatmul.mubr.msk.bf16.vlgmr.msra.gmra.mrb[0].mxu0 %vm208_vm0, %v419_v6  ;;  %394 = vmatmul.mubr.msk.bf16.vlgmr.msra.gmra.mrb[0].mxu1 %vm208_vm0, %v420_v7 }
  0xe9   : > { %v391_v8 = vpop.f32.mrb[0].mxu0  ;;  %v395_v9 = vpop.f32.mrb[0].mxu1 }
  0xea   : > { %288 = vst [vmem:[%s145_s27 + $0x10] sm:$0xff] %v391_v8  ;;  %292 = vst [vmem:[%s145_s27 + $0x30] sm:$0xff] %v395_v9  ;;  %v255_v10 = vpop.f32.mrb[1].mxu0  ;;  %v271_v11 = vpop.f32.mrb[1].mxu1 }
  0xeb   : > { %286 = vst [vmem:[%s145_s27] sm:$0xff] %v255_v10  ;;  %290 = vst [vmem:[%s145_s27 + $0x20] sm:$0xff] %v271_v11  ;;  %v392_v12 = vpop.f32.mrb[2].mxu0  ;;  %v396_v13 = vpop.f32.mrb[2].mxu1 }
  0xec   : > { %289 = vst [vmem:[%s145_s27 + $0x18] sm:$0xff] %v392_v12  ;;  %293 = vst [vmem:[%s145_s27 + $0x38] sm:$0xff] %v396_v13  ;;  %v258_v14 = vpop.f32.mrb[3].mxu0  ;;  %v274_v15 = vpop.f32.mrb[3].mxu1 }
  0xed   : > { %287 = vst [vmem:[%s145_s27 + $0x8] sm:$0xff] %v258_v14  ;;  %291 = vst [vmem:[%s145_s27 + $0x28] sm:$0xff] %v274_v15 }
  0xee PF: > { %s12_s9 = sadd.s32 1, %s427_s9  }
  0xef   : > { %p9_p4 = scmp.ge.s32.totalorder %s12_s9, 4  }
  0xf1   :  { %11 = sbr.rel (!%p9_p4) target bundleno = 1 (0x1), region = 58 }

// kernel: tile.186
= control target key start
LH: loop header
LB: loop body
LE: loop exit
PB: predicated region body
PF: predicated region fallthrough
CT: control target
= control target key end

     0   :  { %s28_s0 = inlined_call_operand.vmem [shape: f32[3], index: 0, kind: input, shape index: {}]   ;;  %s29_s1 = inlined_call_operand.vmem [shape: f32[16,3], index: 1, kind: output, shape index: {}]  }
   0x1   :  { %v4_v0 = vld [vmem:[%s28_s0] ss:$0 sm:$0xff] }
   0x2   :  { %5 = vst [vmem:[%s29_s1] sm:$0xff] %v4_v0  ;;  %8 = vst [vmem:[%s29_s1 + $0x8] sm:$0xff] %v4_v0 }

// kernel: tile.187
= control target key start
LH: loop header
LB: loop body
LE: loop exit
PB: predicated region body
PF: predicated region fallthrough
CT: control target
= control target key end

     0   :  { %s131_s10 = smov 45   ;;  %s132_s11 = smov 39   ;;  %vm3_vm0 = vcmask 23552   ;;  %vm9_vm1 = vcmask 392552   ;;  %vm15_vm2 = vcmask 367952   ;;  %vm21_vm3 = vcmask 343352   ;;  %s207_s0 = inlined_call_operand.vmem [shape: f32[16,3], index: 0, kind: input, shape index: {}]   ;;  %s208_s1 = inlined_call_operand.vmem [shape: f32[1,48], index: 1, kind: output, shape index: {}]  }
   0x1   :  { %v101_v0 = vld [vmem:[%s207_s0 + $0xf] sm:$0x1]   ;;  %v103_v1 = vld [vmem:[%s207_s0 + $0xd] sm:$0x1]   ;;  %v102_v2 = vld [vmem:[%s207_s0 + $0xe] sm:$0x1]  }
   0x2   :  { %7 = vrot.lane.b32.xlu0 %v101_v0, %s131_s10  ;;  %19 = vrot.lane.b32.xlu1 %v103_v1, %s132_s11  ;;  %v104_v3 = vld [vmem:[%s207_s0 + $0xc] sm:$0x1]   ;;  %s133_s16 = smov 42   ;;  %s134_s17 = smov 36   ;;  %v105_v4 = vld [vmem:[%s207_s0 + $0xb] sm:$0x1]  }
   0x3   :  { %v106_v5 = vld [vmem:[%s207_s0 + $0xa] sm:$0x1]   ;;  %v2_v6 = vld [vmem:[%s207_s0] sm:$0x1]   ;;  %s135_s24 = smov 33   ;;  %s136_s25 = smov 30  }
   0x4   :  { %4 = vst.msk [vmem:[#allocation0] sm:$0x1] %vm3_vm0, %v2_v6   ;;  %v107_v7 = vld [vmem:[%s207_s0 + $0x9] sm:$0x1]   ;;  %v108_v8 = vld [vmem:[%s207_s0 + $0x8] sm:$0x1]  }
   0x5   :  { %s137_s30 = smov 27   ;;  %s138_s2 = smov 24   ;;  %v109_v9 = vld [vmem:[%s207_s0 + $0x7] sm:$0x1]   ;;  %v110_v10 = vld [vmem:[%s207_s0 + $0x6] sm:$0x1]  }
   0x6   :  { %13 = vrot.lane.b32.xlu0 %v102_v2, %s133_s16  ;;  %25 = vrot.lane.b32.xlu1 %v104_v3, %s134_s17  ;;  %s139_s7 = smov 21   ;;  %s140_s8 = smov 18   ;;  %v111_v11 = vld [vmem:[%s207_s0 + $0x5] sm:$0x1]   ;;  %v112_v12 = vld [vmem:[%s207_s0 + $0x4] sm:$0x1]  }
   0x7   :  { %s141_s13 = smov 15   ;;  %s142_s14 = smov 12   ;;  %v113_v13 = vld [vmem:[%s207_s0 + $0x3] sm:$0x1]   ;;  %v114_v14 = vld [vmem:[%s207_s0 + $0x2] sm:$0x1]  }
   0x8   :  { %s143_s19 = smov 9   ;;  %s144_s20 = smov 6   ;;  %v115_v15 = vld [vmem:[%s207_s0 + $0x1] sm:$0x1]   ;;  %vm27_vm4 = vcmask 318752   ;;  %vm33_vm5 = vcmask 294152  }
   0x9   :  { %s145_s0 = smov 3   ;;  %vm39_vm6 = vcmask 269552   ;;  %vm45_vm7 = vcmask 244952   ;;  %vm51_vm8 = vcmask 220352   ;;  %vm57_vm9 = vcmask 195752  }
   0xa   :  { %31 = vrot.lane.b32.xlu0 %v105_v4, %s135_s24  ;;  %37 = vrot.lane.b32.xlu1 %v106_v5, %s136_s25  ;;  %vm63_vm10 = vcmask 171152   ;;  %vm69_vm11 = vcmask 146552   ;;  %vm75_vm12 = vcmask 121952   ;;  %vm81_vm13 = vcmask 97352  }
   0xb   :  { %vm87_vm14 = vcmask 72752   ;;  %vm93_vm15 = vcmask 48152  }
   0xe   :  { %43 = vrot.lane.b32.xlu0 %v107_v7, %s137_s30  ;;  %49 = vrot.lane.b32.xlu1 %v108_v8, %s138_s2 }
  0x12   :  { %55 = vrot.lane.b32.xlu0 %v109_v9, %s139_s7  ;;  %61 = vrot.lane.b32.xlu1 %v110_v10, %s140_s8 }
  0x16   :  { %67 = vrot.lane.b32.xlu0 %v111_v11, %s141_s13  ;;  %73 = vrot.lane.b32.xlu1 %v112_v12, %s142_s14 }
  0x1a   :  { %79 = vrot.lane.b32.xlu0 %v113_v13, %s143_s19  ;;  %85 = vrot.lane.b32.xlu1 %v114_v14, %s144_s20 }
  0x1e   :  { %91 = vrot.lane.b32.xlu0 %v115_v15, %s145_s0 }
  0x74   :  { %v8_v16 = vpop.permute.xlu0 %7   ;;  %v20_v17 = vpop.permute.xlu1 %19  }
  0x75   :  { %10 = vst.msk [vmem:[#allocation0] sm:$0x1] %vm9_vm1, %v8_v16  }
  0x78   :  { %v14_v18 = vpop.permute.xlu0 %13   ;;  %v26_v19 = vpop.permute.xlu1 %25  }
  0x79   :  { %16 = vst.msk [vmem:[#allocation0] sm:$0x1] %vm15_vm2, %v14_v18  }
  0x7a   :  { %22 = vst.msk [vmem:[#allocation0] sm:$0x1] %vm21_vm3, %v20_v17  }
  0x7b   :  { %28 = vst.msk [vmem:[#allocation0] sm:$0x1] %vm27_vm4, %v26_v19  }
  0x7c   :  { %v32_v20 = vpop.permute.xlu0 %31   ;;  %v38_v21 = vpop.permute.xlu1 %37  }
  0x7d   :  { %34 = vst.msk [vmem:[#allocation0] sm:$0x1] %vm33_vm5, %v32_v20  }
  0x7e   :  { %40 = vst.msk [vmem:[#allocation0] sm:$0x1] %vm39_vm6, %v38_v21  }
  0x80   :  { %v44_v22 = vpop.permute.xlu0 %43   ;;  %v50_v23 = vpop.permute.xlu1 %49  }
  0x81   :  { %46 = vst.msk [vmem:[#allocation0] sm:$0x1] %vm45_vm7, %v44_v22  }
  0x82   :  { %52 = vst.msk [vmem:[#allocation0] sm:$0x1] %vm51_vm8, %v50_v23  }
  0x84   :  { %v56_v24 = vpop.permute.xlu0 %55   ;;  %v62_v25 = vpop.permute.xlu1 %61  }
  0x85   :  { %58 = vst.msk [vmem:[#allocation0] sm:$0x1] %vm57_vm9, %v56_v24  }
  0x86   :  { %64 = vst.msk [vmem:[#allocation0] sm:$0x1] %vm63_vm10, %v62_v25  }
  0x88   :  { %v68_v26 = vpop.permute.xlu0 %67   ;;  %v74_v27 = vpop.permute.xlu1 %73  }
  0x89   :  { %70 = vst.msk [vmem:[#allocation0] sm:$0x1] %vm69_vm11, %v68_v26  }
  0x8a   :  { %76 = vst.msk [vmem:[#allocation0] sm:$0x1] %vm75_vm12, %v74_v27  }
  0x8c   :  { %v80_v28 = vpop.permute.xlu0 %79   ;;  %v86_v29 = vpop.permute.xlu1 %85  }
  0x8d   :  { %82 = vst.msk [vmem:[#allocation0] sm:$0x1] %vm81_vm13, %v80_v28  }
  0x8e   :  { %88 = vst.msk [vmem:[#allocation0] sm:$0x1] %vm87_vm14, %v86_v29  }
  0x90   :  { %v92_v30 = vpop.permute.xlu0 %91  }
  0x91   :  { %94 = vst.msk [vmem:[#allocation0] sm:$0x1] %vm93_vm15, %v92_v30  }
  0x98   :  { %v98_v31 = vld [vmem:[#allocation0] sm:$0x1] }
  0x99   :  { %100 = vst [vmem:[%s208_s1] sm:$0x1] %v98_v31 }

// kernel: _lambda_.50
= control target key start
LH: loop header
LB: loop body
LE: loop exit
PB: predicated region body
PF: predicated region fallthrough
CT: control target
= control target key end

     0   :  { %s1562_s9 = smov 0   ;;  %s1783_s0 = inlined_call_operand.vmem [shape: bf16[512,400], index: 0, kind: input, shape index: {}]   ;;  %s1784_s1 = inlined_call_operand.vmem [shape: bf16[400,128], index: 1, kind: input, shape index: {}]   ;;  %s1785_s2 = inlined_call_operand.vmem [shape: f32[512,128], index: 2, kind: output, shape index: {}]  }
   0x1 LB: > { %s1178_s10 = sadd.s32 4294967295, %s1544_s9   ;;  %p1182_p0 = scmp.ge.s32.totalorder %s1544_s9, 1  ;;  %s1544_s9 = sphi %s1562_s9, %s12_s9  }
   0x2   : > { %p114_p1 = scmp.lt.s32.totalorder %s1544_s9, 3 }
   0x4   : > { %p115_p2 = pnand %p1182_p0, %p114_p1 }
   0x5   : > { %v1417_v0 = vld [vmem:[%s1784_s1 + $0x40] sm:$0xff] (!%p115_p2)   ;;  %v1546_v1 = vmov (!%p115_p2), 0   ;;  %v1420_v4 = vld [vmem:[%s1784_s1 + $0x48] sm:$0xff] (!%p115_p2)   ;;  %v1423_v7 = vld [vmem:[%s1784_s1 + $0x50] sm:$0xff] (!%p115_p2)   ;;  %s1183_s29 = sshll.u32 (!%p115_p2), %s1178_s10, 5  ;;  %vm719_vm0 = vcmask (!%p115_p2), 130048  }
   0x6   : > { %118 = sbr.rel (%p115_p2) target bundleno = 379 (0x17b), region = 28  ;;  %929 = vmatprep.subr.bf16.mxu1 (!%p115_p2), %v1546_v1  ;;  %v1418_v2 = vld [vmem:[%s1784_s1 + $0x80] sm:$0xff] (!%p115_p2)   ;;  %1296 = vmatprep.subr.bf16.mxu0 (!%p115_p2), %v1417_v0  ;;  %v1421_v5 = vld [vmem:[%s1784_s1 + $0x88] sm:$0xff] (!%p115_p2)   ;;  %v1424_v8 = vld [vmem:[%s1784_s1 + $0x90] sm:$0xff] (!%p115_p2)   ;;  %p138_p3 = scmp.lt.s32.totalorder (!%p115_p2), %s1183_s29, 63 }
   0x7   : > { %v1419_v3 = vld [vmem:[%s1784_s1] sm:$0xff] (!%p115_p2)   ;;  %930 = vmatpush1.bf16.msra.mxu1 (!%p115_p2), %v1418_v2  ;;  %v1422_v6 = vld [vmem:[%s1784_s1 + $0x8] sm:$0xff] (!%p115_p2)   ;;  %v1425_v9 = vld [vmem:[%s1784_s1 + $0x10] sm:$0xff] (!%p115_p2)  }
   0x8   : > { %1297 = vmatpush3.bf16.msra.mxu0 (!%p115_p2), %v1419_v3  ;;  %931 = vmatprep.subr.bf16.mxu1 (!%p115_p2), %v1546_v1  ;;  %v1426_v10 = vld [vmem:[%s1784_s1 + $0x58] sm:$0xff] (!%p115_p2)   ;;  %v1429_v13 = vld [vmem:[%s1784_s1 + $0x60] sm:$0xff] (!%p115_p2)   ;;  %v1432_v16 = vld [vmem:[%s1784_s1 + $0x68] sm:$0xff] (!%p115_p2)  }
   0x9   : > { %1298 = vmatprep.subr.bf16.mxu0 (!%p115_p2), %v1420_v4  ;;  %v1427_v11 = vld [vmem:[%s1784_s1 + $0x98] sm:$0xff] (!%p115_p2)   ;;  %v1430_v14 = vld [vmem:[%s1784_s1 + $0xa0] sm:$0xff] (!%p115_p2)   ;;  %v1433_v17 = vld [vmem:[%s1784_s1 + $0xa8] sm:$0xff] (!%p115_p2)  }
   0xa   : > { %v1428_v12 = vld [vmem:[%s1784_s1 + $0x18] sm:$0xff] (!%p115_p2)   ;;  %v1431_v15 = vld [vmem:[%s1784_s1 + $0x20] sm:$0xff] (!%p115_p2)   ;;  %v1434_v18 = vld [vmem:[%s1784_s1 + $0x28] sm:$0xff] (!%p115_p2)  }
   0xb   : > { %932 = vmatpush1.bf16.msra.mxu1 (!%p115_p2), %v1421_v5  ;;  %v1435_v19 = vld [vmem:[%s1784_s1 + $0x70] sm:$0xff] (!%p115_p2)   ;;  %v1438_v22 = vld [vmem:[%s1784_s1 + $0x78] sm:$0xff] (!%p115_p2)   ;;  %v1444_v28 = vld [vmem:[%s1784_s1 + $0xc0] sm:$0xff] (!%p115_p2)  }
   0xc   : > { %1299 = vmatpush3.bf16.msra.mxu0 (!%p115_p2), %v1422_v6  ;;  %933 = vmatprep.subr.bf16.mxu1 (!%p115_p2), %v1546_v1  ;;  %v1436_v20 = vld [vmem:[%s1784_s1 + $0xb0] sm:$0xff] (!%p115_p2)   ;;  %v1439_v24 = vld [vmem:[%s1784_s1 + $0xb8] sm:$0xff] (!%p115_p2)  }
   0xd   : > { %1300 = vmatprep.subr.bf16.mxu0 %v1423_v7  ;;  %s1787_s29 = smov (!%p138_p3, %s1183_s29), 63  ;;  %v1437_v21 = vld [vmem:[%s1784_s1 + $0x30] sm:$0xff]   ;;  %v1440_v26 = vld [vmem:[%s1784_s1 + $0x38] sm:$0xff]  }
   0xe   : > { %s1295_s19 = sshll.u32 %s1787_s29, 4  ;;  %s1187_s13 = sshll.u32 %s1787_s29, 3 }
   0xf   : > { %934 = vmatpush1.bf16.msra.mxu1 %v1424_v8  ;;  %s1642_s28 = scalar_lea.vmem %s1783_s0, %s1295_s19  ;;  %s1746_s16 = scalar_lea.vmem %s1785_s2, %s1187_s13 }
  0x10   : > { %1301 = vmatpush3.bf16.msra.mxu0 %v1425_v9  ;;  %935 = vmatprep.subr.bf16.mxu1 %v1546_v1  ;;  %v1443_v23 = vld [vmem:[%s1642_s28 + $0x4] ss:$16 sps:$4 sm:$0xff]   ;;  %v1447_v25 = vld [vmem:[%s1642_s28 + $0xc] ss:$16 sps:$4 sm:$0xff]   ;;  %v1441_v27 = vld [vmem:[%s1642_s28] ss:$16 sps:$4 sm:$0xff]  }
  0x11   : > { %1302 = vmatprep.subr.bf16.mxu0 %v1426_v10  ;;  %800 = vmatprep.mubr.bf16.mxu0 %v1443_v23  ;;  %v1448_v29 = vld [vmem:[%s1642_s28 + $0x24] ss:$16 sps:$4 sm:$0xff]   ;;  %v1445_v30 = vld [vmem:[%s1642_s28 + $0x8] ss:$16 sps:$4 sm:$0xff]   ;;  %v1451_v31 = vld [vmem:[%s1642_s28 + $0x2c] ss:$16 sps:$4 sm:$0xff]  }
  0x12   : > { %1277 = vmatprep.mubr.msk.bf16.mxu1 %vm719_vm0, %v1447_v25  ;;  %v1450_v32 = vld [vmem:[%s1642_s28 + $0x20] ss:$16 sps:$4 sm:$0xff]   ;;  %v1454_v33 = vld [vmem:[%s1642_s28 + $0x44] ss:$16 sps:$4 sm:$0xff]   ;;  %v1453_v34 = vld [vmem:[%s1642_s28 + $0x28] ss:$16 sps:$4 sm:$0xff]  }
  0x13   : > { %936 = vmatpush1.bf16.msra.mxu1 %v1427_v11  ;;  %v1457_v35 = vld [vmem:[%s1642_s28 + $0x4c] ss:$16 sps:$4 sm:$0xff]   ;;  %v1456_v36 = vld [vmem:[%s1642_s28 + $0x40] ss:$16 sps:$4 sm:$0xff]   ;;  %v1460_v37 = vld [vmem:[%s1642_s28 + $0x64] ss:$16 sps:$4 sm:$0xff]  }
  0x14   : > { %1303 = vmatpush3.bf16.msra.mxu0 %v1428_v12  ;;  %937 = vmatprep.subr.bf16.mxu1 %v1546_v1  ;;  %v1459_v38 = vld [vmem:[%s1642_s28 + $0x48] ss:$16 sps:$4 sm:$0xff]   ;;  %v1463_v39 = vld [vmem:[%s1642_s28 + $0x6c] ss:$16 sps:$4 sm:$0xff]   ;;  %v1462_v40 = vld [vmem:[%s1642_s28 + $0x60] ss:$16 sps:$4 sm:$0xff]  }
  0x15   : > { %1304 = vmatprep.subr.bf16.mxu0 %v1429_v13  ;;  %v1466_v41 = vld [vmem:[%s1642_s28 + $0x84] ss:$16 sps:$4 sm:$0xff]   ;;  %v1465_v42 = vld [vmem:[%s1642_s28 + $0x68] ss:$16 sps:$4 sm:$0xff]   ;;  %v1469_v43 = vld [vmem:[%s1642_s28 + $0x8c] ss:$16 sps:$4 sm:$0xff]  }
  0x16   : > { %v1468_v44 = vld [vmem:[%s1642_s28 + $0x80] ss:$16 sps:$4 sm:$0xff]   ;;  %v1472_v45 = vld [vmem:[%s1642_s28 + $0xa4] ss:$16 sps:$4 sm:$0xff]   ;;  %v1471_v46 = vld [vmem:[%s1642_s28 + $0x88] ss:$16 sps:$4 sm:$0xff]  }
  0x17   : > { %938 = vmatpush1.bf16.msra.mxu1 %v1430_v14  ;;  %v1475_v47 = vld [vmem:[%s1642_s28 + $0xac] ss:$16 sps:$4 sm:$0xff]   ;;  %v1474_v48 = vld [vmem:[%s1642_s28 + $0xa0] ss:$16 sps:$4 sm:$0xff]   ;;  %v1478_v49 = vld [vmem:[%s1642_s28 + $0xc4] ss:$16 sps:$4 sm:$0xff]  }
  0x18   : > { %1305 = vmatpush3.bf16.msra.mxu0 %v1431_v15  ;;  %939 = vmatprep.subr.bf16.mxu1 %v1546_v1  ;;  %v1477_v50 = vld [vmem:[%s1642_s28 + $0xa8] ss:$16 sps:$4 sm:$0xff]   ;;  %v1481_v51 = vld [vmem:[%s1642_s28 + $0xcc] ss:$16 sps:$4 sm:$0xff]   ;;  %v1480_v52 = vld [vmem:[%s1642_s28 + $0xc0] ss:$16 sps:$4 sm:$0xff]  }
  0x19   : > { %1306 = vmatprep.subr.bf16.mxu0 %v1432_v16  ;;  %v1484_v53 = vld [vmem:[%s1642_s28 + $0xe4] ss:$16 sps:$4 sm:$0xff]   ;;  %v1483_v54 = vld [vmem:[%s1642_s28 + $0xc8] ss:$16 sps:$4 sm:$0xff]   ;;  %v1487_v55 = vld [vmem:[%s1642_s28 + $0xec] ss:$16 sps:$4 sm:$0xff]  }
  0x1a   : > { %v1486_v56 = vld [vmem:[%s1642_s28 + $0xe0] ss:$16 sps:$4 sm:$0xff]   ;;  %v1490_v57 = vld [vmem:[%s1642_s28 + $0x104] ss:$16 sps:$4 sm:$0xff]   ;;  %v1489_v58 = vld [vmem:[%s1642_s28 + $0xe8] ss:$16 sps:$4 sm:$0xff]  }
  0x1b   : > { %940 = vmatpush1.bf16.msra.mxu1 %v1433_v17  ;;  %v1493_v59 = vld [vmem:[%s1642_s28 + $0x10c] ss:$16 sps:$4 sm:$0xff]   ;;  %v1492_v60 = vld [vmem:[%s1642_s28 + $0x100] ss:$16 sps:$4 sm:$0xff]   ;;  %v1496_v61 = vld [vmem:[%s1642_s28 + $0x124] ss:$16 sps:$4 sm:$0xff]  }
  0x1c   : > { %1307 = vmatpush3.bf16.msra.mxu0 %v1434_v18  ;;  %941 = vmatprep.subr.bf16.mxu1 %v1546_v1  ;;  %v1495_v62 = vld [vmem:[%s1642_s28 + $0x108] ss:$16 sps:$4 sm:$0xff]   ;;  %v1499_v63 = vld [vmem:[%s1642_s28 + $0x12c] ss:$16 sps:$4 sm:$0xff]   ;;  %v1498_v0 = vld [vmem:[%s1642_s28 + $0x120] ss:$16 sps:$4 sm:$0xff]  }
  0x1d   : > { %1308 = vmatprep.subr.bf16.mxu0 %v1435_v19  ;;  %v1501_v2 = vld [vmem:[%s1642_s28 + $0x128] ss:$16 sps:$4 sm:$0xff]   ;;  %v1505_v3 = vld [vmem:[%s1642_s28 + $0x14c] ss:$16 sps:$4 sm:$0xff]   ;;  %v1504_v4 = vld [vmem:[%s1642_s28 + $0x140] ss:$16 sps:$4 sm:$0xff]  }
  0x1e   : > { %v1508_v5 = vld [vmem:[%s1642_s28 + $0x164] ss:$16 sps:$4 sm:$0xff]   ;;  %v1507_v6 = vld [vmem:[%s1642_s28 + $0x148] ss:$16 sps:$4 sm:$0xff]   ;;  %v1511_v7 = vld [vmem:[%s1642_s28 + $0x16c] ss:$16 sps:$4 sm:$0xff]  }
  0x1f   : > { %942 = vmatpush1.bf16.msra.mxu1 %v1436_v20  ;;  %v1510_v8 = vld [vmem:[%s1642_s28 + $0x160] ss:$16 sps:$4 sm:$0xff]   ;;  %v1514_v9 = vld [vmem:[%s1642_s28 + $0x184] ss:$16 sps:$4 sm:$0xff]   ;;  %v1513_v10 = vld [vmem:[%s1642_s28 + $0x168] ss:$16 sps:$4 sm:$0xff]  }
  0x20   : > { %1309 = vmatpush3.bf16.msra.mxu0 %v1437_v21  ;;  %943 = vmatprep.subr.bf16.mxu1 %v1546_v1  ;;  %v1517_v11 = vld [vmem:[%s1642_s28 + $0x18c] ss:$16 sps:$4 sm:$0xff]   ;;  %v1516_v12 = vld [vmem:[%s1642_s28 + $0x180] ss:$16 sps:$4 sm:$0xff]   ;;  %v1520_v13 = vld [vmem:[%s1642_s28 + $0x1a4] ss:$16 sps:$4 sm:$0xff]  }
  0x21   : > { %1310 = vmatprep.subr.bf16.mxu0 %v1438_v22  ;;  %v1519_v14 = vld [vmem:[%s1642_s28 + $0x188] ss:$16 sps:$4 sm:$0xff]   ;;  %v1523_v15 = vld [vmem:[%s1642_s28 + $0x1ac] ss:$16 sps:$4 sm:$0xff]   ;;  %v1522_v16 = vld [vmem:[%s1642_s28 + $0x1a0] ss:$16 sps:$4 sm:$0xff]  }
  0x22   : > { %v1526_v17 = vld [vmem:[%s1642_s28 + $0x1c4] ss:$16 sps:$4 sm:$0xff]   ;;  %v1525_v18 = vld [vmem:[%s1642_s28 + $0x1a8] ss:$16 sps:$4 sm:$0xff]   ;;  %v1529_v19 = vld [vmem:[%s1642_s28 + $0x1cc] ss:$16 sps:$4 sm:$0xff]  }
  0x23   : > { %944 = vmatpush1.bf16.msra.mxu1 %v1439_v24  ;;  %v1528_v20 = vld [vmem:[%s1642_s28 + $0x1c0] ss:$16 sps:$4 sm:$0xff]   ;;  %v1532_v21 = vld [vmem:[%s1642_s28 + $0x1e4] ss:$16 sps:$4 sm:$0xff]   ;;  %v1531_v22 = vld [vmem:[%s1642_s28 + $0x1c8] ss:$16 sps:$4 sm:$0xff]  }
  0x24   : > { %1311 = vmatpush3.bf16.msra.mxu0 %v1440_v26  ;;  %945 = vmatprep.subr.bf16.mxu1 %v1546_v1  ;;  %v1502_v1 = vld [vmem:[%s1642_s28 + $0x144] ss:$16 sps:$4 sm:$0xff]   ;;  %v1535_v23 = vld [vmem:[%s1642_s28 + $0x1ec] ss:$16 sps:$4 sm:$0xff]   ;;  %v1534_v24 = vld [vmem:[%s1642_s28 + $0x1e0] ss:$16 sps:$4 sm:$0xff]  }
  0x25   : > { %v1537_v25 = vld [vmem:[%s1642_s28 + $0x1e8] ss:$16 sps:$4 sm:$0xff]  }
  0x27   : > { %801 = vmatmul.mubr.bf16.vlgmr.msra.gmra.mrb[0].mxu0 %v1441_v27  ;;  %946 = vmatpush1.bf16.msra.mxu1 %v1444_v28 }
  0x28   : > { %808 = vmatprep.mubr.bf16.mxu0 %v1448_v29 }
  0x2a   : > { %962 = vmatmul.mubr.bf16.vlgmr.msra.gmra.mrb[0].mxu1 %v1445_v30 }
  0x2b   : > { %1278 = vmatprep.mubr.msk.bf16.mxu1 %vm719_vm0, %v1451_v31 }
  0x2f   : > { %809 = vmatmul.mubr.bf16.gmra.mrb[4].mxu0 %v1450_v32 }
  0x30   : > { %816 = vmatprep.mubr.bf16.mxu0 %v1454_v33 }
  0x32   : > { %970 = vmatmul.mubr.bf16.gmra.mrb[4].mxu1 %v1453_v34 }
  0x33   : > { %1279 = vmatprep.mubr.msk.bf16.mxu1 %vm719_vm0, %v1457_v35 }
  0x37   : > { %817 = vmatmul.mubr.bf16.gmra.mrb[8].mxu0 %v1456_v36 }
  0x38   : > { %824 = vmatprep.mubr.bf16.mxu0 %v1460_v37 }
  0x3a   : > { %978 = vmatmul.mubr.bf16.gmra.mrb[8].mxu1 %v1459_v38 }
  0x3b   : > { %1280 = vmatprep.mubr.msk.bf16.mxu1 %vm719_vm0, %v1463_v39 }
  0x3f   : > { %825 = vmatmul.mubr.bf16.gmra.mrb[12].mxu0 %v1462_v40 }
  0x40   : > { %832 = vmatprep.mubr.bf16.mxu0 %v1466_v41 }
  0x42   : > { %986 = vmatmul.mubr.bf16.gmra.mrb[12].mxu1 %v1465_v42 }
  0x43   : > { %1281 = vmatprep.mubr.msk.bf16.mxu1 %vm719_vm0, %v1469_v43 }
  0x47   : > { %833 = vmatmul.mubr.bf16.gmra.mrb[16].mxu0 %v1468_v44 }
  0x48   : > { %840 = vmatprep.mubr.bf16.mxu0 %v1472_v45 }
  0x4a   : > { %994 = vmatmul.mubr.bf16.gmra.mrb[16].mxu1 %v1471_v46 }
  0x4b   : > { %1282 = vmatprep.mubr.msk.bf16.mxu1 %vm719_vm0, %v1475_v47 }
  0x4f   : > { %841 = vmatmul.mubr.bf16.gmra.mrb[20].mxu0 %v1474_v48 }
  0x50   : > { %848 = vmatprep.mubr.bf16.mxu0 %v1478_v49 }
  0x52   : > { %1002 = vmatmul.mubr.bf16.gmra.mrb[20].mxu1 %v1477_v50 }
  0x53   : > { %1283 = vmatprep.mubr.msk.bf16.mxu1 %vm719_vm0, %v1481_v51 }
  0x57   : > { %849 = vmatmul.mubr.bf16.gmra.mrb[24].mxu0 %v1480_v52 }
  0x58   : > { %856 = vmatprep.mubr.bf16.mxu0 %v1484_v53 }
  0x5a   : > { %1010 = vmatmul.mubr.bf16.gmra.mrb[24].mxu1 %v1483_v54 }
  0x5b   : > { %1284 = vmatprep.mubr.msk.bf16.mxu1 %vm719_vm0, %v1487_v55 }
  0x5f   : > { %857 = vmatmul.mubr.bf16.gmra.mrb[28].mxu0 %v1486_v56 }
  0x60   : > { %864 = vmatprep.mubr.bf16.mxu0 %v1490_v57 }
  0x62   : > { %1018 = vmatmul.mubr.bf16.gmra.mrb[28].mxu1 %v1489_v58 }
  0x63   : > { %1285 = vmatprep.mubr.msk.bf16.mxu1 %vm719_vm0, %v1493_v59 }
  0x67   : > { %865 = vmatmul.mubr.bf16.gmra.mrb[32].mxu0 %v1492_v60 }
  0x68   : > { %872 = vmatprep.mubr.bf16.mxu0 %v1496_v61 }
  0x6a   : > { %1026 = vmatmul.mubr.bf16.gmra.mrb[32].mxu1 %v1495_v62 }
  0x6b   : > { %1286 = vmatprep.mubr.msk.bf16.mxu1 %vm719_vm0, %v1499_v63 }
  0x6f   : > { %873 = vmatmul.mubr.bf16.gmra.mrb[36].mxu0 %v1498_v0 }
  0x70   : > { %880 = vmatprep.mubr.bf16.mxu0 %v1502_v1 }
  0x72   : > { %1034 = vmatmul.mubr.bf16.gmra.mrb[36].mxu1 %v1501_v2 }
  0x73   : > { %1287 = vmatprep.mubr.msk.bf16.mxu1 %vm719_vm0, %v1505_v3 }
  0x77   : > { %881 = vmatmul.mubr.bf16.gmra.mrb[40].mxu0 %v1504_v4 }
  0x78   : > { %888 = vmatprep.mubr.bf16.mxu0 %v1508_v5 }
  0x7a   : > { %1042 = vmatmul.mubr.bf16.gmra.mrb[40].mxu1 %v1507_v6 }
  0x7b   : > { %1288 = vmatprep.mubr.msk.bf16.mxu1 %vm719_vm0, %v1511_v7 }
  0x7f   : > { %889 = vmatmul.mubr.bf16.gmra.mrb[44].mxu0 %v1510_v8 }
  0x80   : > { %896 = vmatprep.mubr.bf16.mxu0 %v1514_v9 }
  0x82   : > { %1050 = vmatmul.mubr.bf16.gmra.mrb[44].mxu1 %v1513_v10 }
  0x83   : > { %1289 = vmatprep.mubr.msk.bf16.mxu1 %vm719_vm0, %v1517_v11 }
  0x87   : > { %897 = vmatmul.mubr.bf16.gmra.mrb[48].mxu0 %v1516_v12 }
  0x88   : > { %904 = vmatprep.mubr.bf16.mxu0 %v1520_v13 }
  0x8a   : > { %1058 = vmatmul.mubr.bf16.gmra.mrb[48].mxu1 %v1519_v14 }
  0x8b   : > { %1290 = vmatprep.mubr.msk.bf16.mxu1 %vm719_vm0, %v1523_v15 }
  0x8f   : > { %905 = vmatmul.mubr.bf16.gmra.mrb[52].mxu0 %v1522_v16 }
  0x90   : > { %912 = vmatprep.mubr.bf16.mxu0 %v1526_v17 }
  0x92   : > { %1066 = vmatmul.mubr.bf16.gmra.mrb[52].mxu1 %v1525_v18 }
  0x93   : > { %1291 = vmatprep.mubr.msk.bf16.mxu1 %vm719_vm0, %v1529_v19 }
  0x97   : > { %913 = vmatmul.mubr.bf16.gmra.mrb[56].mxu0 %v1528_v20 }
  0x98   : > { %920 = vmatprep.mubr.bf16.mxu0 %v1532_v21 }
  0x9a   : > { %1074 = vmatmul.mubr.bf16.gmra.mrb[56].mxu1 %v1531_v22 }
  0x9b   : > { %1292 = vmatprep.mubr.msk.bf16.mxu1 %vm719_vm0, %v1535_v23 }
  0x9f   : > { %921 = vmatmul.mubr.bf16.gmra.mrb[60].mxu0 %v1534_v24 }
  0xa2   : > { %1082 = vmatmul.mubr.bf16.gmra.mrb[60].mxu1 %v1537_v25 }
  0xfa   : > { %v1312_v26 = vpop.f32.mrb[0].mxu0 }
  0xfb   : > { %v1313_v27 = vpop.f32.mrb[1].mxu0 }
  0xfc   : > { %v1314_v28 = vadd.f32 %v1313_v27, %v1312_v26  ;;  %v1315_v29 = vpop.f32.mrb[2].mxu0 }
  0xfd   : > { %v1316_v30 = vpop.f32.mrb[3].mxu0  ;;  %v963_v31 = vpop.f32.mrb[0].mxu1 }
  0xfe   : > { %v1317_v32 = vadd.f32 %v1316_v30, %v1315_v29  ;;  %v964_v33 = vadd.f32 %v1314_v28, %v963_v31  ;;  %v965_v34 = vpop.f32.mrb[1].mxu1 }
  0xff   : > { %v966_v35 = vpop.f32.mrb[2].mxu1 }
 0x100   : > { %1090 = vst [vmem:[%s1746_s16] sm:$0xff] %v964_v33  ;;  %v967_v36 = vadd.f32 %v1317_v32, %v966_v35  ;;  %v968_v37 = vpop.f32.mrb[3].mxu1 }
 0x102   : > { %1091 = vst [vmem:[%s1746_s16 + $0x8] sm:$0xff] %v967_v36  ;;  %v1318_v38 = vpop.f32.mrb[4].mxu0 }
 0x103   : > { %v1319_v39 = vpop.f32.mrb[5].mxu0 }
 0x104   : > { %v1320_v40 = vadd.f32 %v1319_v39, %v1318_v38  ;;  %v1321_v41 = vpop.f32.mrb[6].mxu0 }
 0x105   : > { %v1322_v42 = vpop.f32.mrb[7].mxu0  ;;  %v971_v43 = vpop.f32.mrb[4].mxu1 }
 0x106   : > { %v1323_v44 = vadd.f32 %v1322_v42, %v1321_v41  ;;  %v972_v45 = vadd.f32 %v1320_v40, %v971_v43  ;;  %v973_v46 = vpop.f32.mrb[5].mxu1 }
 0x107   : > { %v974_v47 = vpop.f32.mrb[6].mxu1 }
 0x108   : > { %1092 = vst [vmem:[%s1746_s16 + $0x10] sm:$0xff] %v972_v45  ;;  %v975_v48 = vadd.f32 %v1323_v44, %v974_v47  ;;  %v976_v49 = vpop.f32.mrb[7].mxu1 }
 0x10a   : > { %1093 = vst [vmem:[%s1746_s16 + $0x18] sm:$0xff] %v975_v48  ;;  %v1324_v50 = vpop.f32.mrb[8].mxu0 }
 0x10b   : > { %v1325_v51 = vpop.f32.mrb[9].mxu0 }
 0x10c   : > { %v1326_v52 = vadd.f32 %v1325_v51, %v1324_v50  ;;  %v1327_v53 = vpop.f32.mrb[10].mxu0 }
 0x10d   : > { %v1328_v54 = vpop.f32.mrb[11].mxu0  ;;  %v979_v55 = vpop.f32.mrb[8].mxu1 }
 0x10e   : > { %v1329_v56 = vadd.f32 %v1328_v54, %v1327_v53  ;;  %v980_v57 = vadd.f32 %v1326_v52, %v979_v55  ;;  %v981_v58 = vpop.f32.mrb[9].mxu1 }
 0x10f   : > { %v982_v59 = vpop.f32.mrb[10].mxu1 }
 0x110   : > { %1094 = vst [vmem:[%s1746_s16 + $0x20] sm:$0xff] %v980_v57  ;;  %v983_v60 = vadd.f32 %v1329_v56, %v982_v59  ;;  %v984_v61 = vpop.f32.mrb[11].mxu1 }
 0x112   : > { %1095 = vst [vmem:[%s1746_s16 + $0x28] sm:$0xff] %v983_v60  ;;  %v1330_v62 = vpop.f32.mrb[12].mxu0 }
 0x113   : > { %v1331_v63 = vpop.f32.mrb[13].mxu0 }
 0x114   : > { %v1332_v0 = vadd.f32 %v1331_v63, %v1330_v62  ;;  %v1333_v1 = vpop.f32.mrb[14].mxu0 }
 0x115   : > { %v1334_v2 = vpop.f32.mrb[15].mxu0  ;;  %v987_v3 = vpop.f32.mrb[12].mxu1 }
 0x116   : > { %v1335_v4 = vadd.f32 %v1334_v2, %v1333_v1  ;;  %v988_v5 = vadd.f32 %v1332_v0, %v987_v3  ;;  %v989_v6 = vpop.f32.mrb[13].mxu1 }
 0x117   : > { %v990_v7 = vpop.f32.mrb[14].mxu1 }
 0x118   : > { %1096 = vst [vmem:[%s1746_s16 + $0x30] sm:$0xff] %v988_v5  ;;  %v991_v8 = vadd.f32 %v1335_v4, %v990_v7  ;;  %v992_v9 = vpop.f32.mrb[15].mxu1 }
 0x11a   : > { %1097 = vst [vmem:[%s1746_s16 + $0x38] sm:$0xff] %v991_v8  ;;  %v1336_v10 = vpop.f32.mrb[16].mxu0 }
 0x11b   : > { %v1337_v11 = vpop.f32.mrb[17].mxu0 }
 0x11c   : > { %v1338_v12 = vadd.f32 %v1337_v11, %v1336_v10  ;;  %v1339_v13 = vpop.f32.mrb[18].mxu0 }
 0x11d   : > { %v1340_v14 = vpop.f32.mrb[19].mxu0  ;;  %v995_v15 = vpop.f32.mrb[16].mxu1 }
 0x11e   : > { %v1341_v16 = vadd.f32 %v1340_v14, %v1339_v13  ;;  %v996_v17 = vadd.f32 %v1338_v12, %v995_v15  ;;  %v997_v18 = vpop.f32.mrb[17].mxu1 }
 0x11f   : > { %v998_v19 = vpop.f32.mrb[18].mxu1 }
 0x120   : > { %1098 = vst [vmem:[%s1746_s16 + $0x40] sm:$0xff] %v996_v17  ;;  %v999_v20 = vadd.f32 %v1341_v16, %v998_v19  ;;  %v1000_v21 = vpop.f32.mrb[19].mxu1 }
 0x122   : > { %1099 = vst [vmem:[%s1746_s16 + $0x48] sm:$0xff] %v999_v20  ;;  %v1342_v22 = vpop.f32.mrb[20].mxu0 }
 0x123   : > { %v1343_v23 = vpop.f32.mrb[21].mxu0 }
 0x124   : > { %v1344_v24 = vadd.f32 %v1343_v23, %v1342_v22  ;;  %v1345_v25 = vpop.f32.mrb[22].mxu0 }
 0x125   : > { %v1346_v26 = vpop.f32.mrb[23].mxu0  ;;  %v1003_v27 = vpop.f32.mrb[20].mxu1 }
 0x126   : > { %v1347_v28 = vadd.f32 %v1346_v26, %v1345_v25  ;;  %v1004_v29 = vadd.f32 %v1344_v24, %v1003_v27  ;;  %v1005_v30 = vpop.f32.mrb[21].mxu1 }
 0x127   : > { %v1006_v31 = vpop.f32.mrb[22].mxu1 }
 0x128   : > { %1100 = vst [vmem:[%s1746_s16 + $0x50] sm:$0xff] %v1004_v29  ;;  %v1007_v32 = vadd.f32 %v1347_v28, %v1006_v31  ;;  %v1008_v33 = vpop.f32.mrb[23].mxu1 }
 0x12a   : > { %1101 = vst [vmem:[%s1746_s16 + $0x58] sm:$0xff] %v1007_v32  ;;  %v1348_v34 = vpop.f32.mrb[24].mxu0 }
 0x12b   : > { %v1349_v35 = vpop.f32.mrb[25].mxu0 }
 0x12c   : > { %v1350_v36 = vadd.f32 %v1349_v35, %v1348_v34  ;;  %v1351_v37 = vpop.f32.mrb[26].mxu0 }
 0x12d   : > { %v1352_v38 = vpop.f32.mrb[27].mxu0  ;;  %v1011_v39 = vpop.f32.mrb[24].mxu1 }
 0x12e   : > { %v1353_v40 = vadd.f32 %v1352_v38, %v1351_v37  ;;  %v1012_v41 = vadd.f32 %v1350_v36, %v1011_v39  ;;  %v1013_v42 = vpop.f32.mrb[25].mxu1 }
 0x12f   : > { %v1014_v43 = vpop.f32.mrb[26].mxu1 }
 0x130   : > { %1102 = vst [vmem:[%s1746_s16 + $0x60] sm:$0xff] %v1012_v41  ;;  %v1015_v44 = vadd.f32 %v1353_v40, %v1014_v43  ;;  %v1016_v45 = vpop.f32.mrb[27].mxu1 }
 0x132   : > { %1103 = vst [vmem:[%s1746_s16 + $0x68] sm:$0xff] %v1015_v44  ;;  %v1354_v46 = vpop.f32.mrb[28].mxu0 }
 0x133   : > { %v1355_v47 = vpop.f32.mrb[29].mxu0 }
 0x134   : > { %v1356_v48 = vadd.f32 %v1355_v47, %v1354_v46  ;;  %v1357_v49 = vpop.f32.mrb[30].mxu0 }
 0x135   : > { %v1358_v50 = vpop.f32.mrb[31].mxu0  ;;  %v1019_v51 = vpop.f32.mrb[28].mxu1 }
 0x136   : > { %v1359_v52 = vadd.f32 %v1358_v50, %v1357_v49  ;;  %v1020_v53 = vadd.f32 %v1356_v48, %v1019_v51  ;;  %v1021_v54 = vpop.f32.mrb[29].mxu1 }
 0x137   : > { %v1022_v55 = vpop.f32.mrb[30].mxu1 }
 0x138   : > { %1104 = vst [vmem:[%s1746_s16 + $0x70] sm:$0xff] %v1020_v53  ;;  %v1023_v56 = vadd.f32 %v1359_v52, %v1022_v55  ;;  %v1024_v57 = vpop.f32.mrb[31].mxu1 }
 0x13a   : > { %1105 = vst [vmem:[%s1746_s16 + $0x78] sm:$0xff] %v1023_v56  ;;  %v1360_v58 = vpop.f32.mrb[32].mxu0 }
 0x13b   : > { %v1361_v59 = vpop.f32.mrb[33].mxu0 }
 0x13c   : > { %v1362_v60 = vadd.f32 %v1361_v59, %v1360_v58  ;;  %v1363_v61 = vpop.f32.mrb[34].mxu0 }
 0x13d   : > { %v1364_v62 = vpop.f32.mrb[35].mxu0  ;;  %v1027_v63 = vpop.f32.mrb[32].mxu1 }
 0x13e   : > { %v1365_v0 = vadd.f32 %v1364_v62, %v1363_v61  ;;  %v1028_v1 = vadd.f32 %v1362_v60, %v1027_v63  ;;  %v1029_v2 = vpop.f32.mrb[33].mxu1 }
 0x13f   : > { %v1030_v3 = vpop.f32.mrb[34].mxu1 }
 0x140   : > { %1106 = vst [vmem:[%s1746_s16 + $0x80] sm:$0xff] %v1028_v1  ;;  %v1031_v4 = vadd.f32 %v1365_v0, %v1030_v3  ;;  %v1032_v5 = vpop.f32.mrb[35].mxu1 }
 0x142   : > { %1107 = vst [vmem:[%s1746_s16 + $0x88] sm:$0xff] %v1031_v4  ;;  %v1366_v6 = vpop.f32.mrb[36].mxu0 }
 0x143   : > { %v1367_v7 = vpop.f32.mrb[37].mxu0 }
 0x144   : > { %v1368_v8 = vadd.f32 %v1367_v7, %v1366_v6  ;;  %v1369_v9 = vpop.f32.mrb[38].mxu0 }
 0x145   : > { %v1370_v10 = vpop.f32.mrb[39].mxu0  ;;  %v1035_v11 = vpop.f32.mrb[36].mxu1 }
 0x146   : > { %v1371_v12 = vadd.f32 %v1370_v10, %v1369_v9  ;;  %v1036_v13 = vadd.f32 %v1368_v8, %v1035_v11  ;;  %v1037_v14 = vpop.f32.mrb[37].mxu1 }
 0x147   : > { %v1038_v15 = vpop.f32.mrb[38].mxu1 }
 0x148   : > { %1108 = vst [vmem:[%s1746_s16 + $0x90] sm:$0xff] %v1036_v13  ;;  %v1039_v16 = vadd.f32 %v1371_v12, %v1038_v15  ;;  %v1040_v17 = vpop.f32.mrb[39].mxu1 }
 0x14a   : > { %1109 = vst [vmem:[%s1746_s16 + $0x98] sm:$0xff] %v1039_v16  ;;  %v1372_v18 = vpop.f32.mrb[40].mxu0 }
 0x14b   : > { %v1373_v19 = vpop.f32.mrb[41].mxu0 }
 0x14c   : > { %v1374_v20 = vadd.f32 %v1373_v19, %v1372_v18  ;;  %v1375_v21 = vpop.f32.mrb[42].mxu0 }
 0x14d   : > { %v1376_v22 = vpop.f32.mrb[43].mxu0  ;;  %v1043_v23 = vpop.f32.mrb[40].mxu1 }
 0x14e   : > { %v1377_v24 = vadd.f32 %v1376_v22, %v1375_v21  ;;  %v1044_v25 = vadd.f32 %v1374_v20, %v1043_v23  ;;  %v1045_v26 = vpop.f32.mrb[41].mxu1 }
 0x14f   : > { %v1046_v27 = vpop.f32.mrb[42].mxu1 }
 0x150   : > { %1110 = vst [vmem:[%s1746_s16 + $0xa0] sm:$0xff] %v1044_v25  ;;  %v1047_v28 = vadd.f32 %v1377_v24, %v1046_v27  ;;  %v1048_v29 = vpop.f32.mrb[43].mxu1 }
 0x152   : > { %1111 = vst [vmem:[%s1746_s16 + $0xa8] sm:$0xff] %v1047_v28  ;;  %v1378_v30 = vpop.f32.mrb[44].mxu0 }
 0x153   : > { %v1379_v31 = vpop.f32.mrb[45].mxu0 }
 0x154   : > { %v1380_v32 = vadd.f32 %v1379_v31, %v1378_v30  ;;  %v1381_v33 = vpop.f32.mrb[46].mxu0 }
 0x155   : > { %v1382_v34 = vpop.f32.mrb[47].mxu0  ;;  %v1051_v35 = vpop.f32.mrb[44].mxu1 }
 0x156   : > { %v1383_v36 = vadd.f32 %v1382_v34, %v1381_v33  ;;  %v1052_v37 = vadd.f32 %v1380_v32, %v1051_v35  ;;  %v1053_v38 = vpop.f32.mrb[45].mxu1 }
 0x157   : > { %v1054_v39 = vpop.f32.mrb[46].mxu1 }
 0x158   : > { %1112 = vst [vmem:[%s1746_s16 + $0xb0] sm:$0xff] %v1052_v37  ;;  %v1055_v40 = vadd.f32 %v1383_v36, %v1054_v39  ;;  %v1056_v41 = vpop.f32.mrb[47].mxu1 }
 0x15a   : > { %1113 = vst [vmem:[%s1746_s16 + $0xb8] sm:$0xff] %v1055_v40  ;;  %v1384_v42 = vpop.f32.mrb[48].mxu0 }
 0x15b   : > { %v1385_v43 = vpop.f32.mrb[49].mxu0 }
 0x15c   : > { %v1386_v44 = vadd.f32 %v1385_v43, %v1384_v42  ;;  %v1387_v45 = vpop.f32.mrb[50].mxu0 }
 0x15d   : > { %v1388_v46 = vpop.f32.mrb[51].mxu0  ;;  %v1059_v47 = vpop.f32.mrb[48].mxu1 }
 0x15e   : > { %v1389_v48 = vadd.f32 %v1388_v46, %v1387_v45  ;;  %v1060_v49 = vadd.f32 %v1386_v44, %v1059_v47  ;;  %v1061_v50 = vpop.f32.mrb[49].mxu1 }
 0x15f   : > { %v1062_v51 = vpop.f32.mrb[50].mxu1 }
 0x160   : > { %1114 = vst [vmem:[%s1746_s16 + $0xc0] sm:$0xff] %v1060_v49  ;;  %v1063_v52 = vadd.f32 %v1389_v48, %v1062_v51  ;;  %v1064_v53 = vpop.f32.mrb[51].mxu1 }
 0x162   : > { %1115 = vst [vmem:[%s1746_s16 + $0xc8] sm:$0xff] %v1063_v52  ;;  %v1390_v54 = vpop.f32.mrb[52].mxu0 }
 0x163   : > { %v1391_v55 = vpop.f32.mrb[53].mxu0 }
 0x164   : > { %v1392_v56 = vadd.f32 %v1391_v55, %v1390_v54  ;;  %v1393_v57 = vpop.f32.mrb[54].mxu0 }
 0x165   : > { %v1394_v58 = vpop.f32.mrb[55].mxu0  ;;  %v1067_v59 = vpop.f32.mrb[52].mxu1 }
 0x166   : > { %v1395_v60 = vadd.f32 %v1394_v58, %v1393_v57  ;;  %v1068_v61 = vadd.f32 %v1392_v56, %v1067_v59  ;;  %v1069_v62 = vpop.f32.mrb[53].mxu1 }
 0x167   : > { %v1070_v63 = vpop.f32.mrb[54].mxu1 }
 0x168   : > { %1116 = vst [vmem:[%s1746_s16 + $0xd0] sm:$0xff] %v1068_v61  ;;  %v1071_v0 = vadd.f32 %v1395_v60, %v1070_v63  ;;  %v1072_v1 = vpop.f32.mrb[55].mxu1 }
 0x16a   : > { %1117 = vst [vmem:[%s1746_s16 + $0xd8] sm:$0xff] %v1071_v0  ;;  %v1396_v2 = vpop.f32.mrb[56].mxu0 }
 0x16b   : > { %v1397_v3 = vpop.f32.mrb[57].mxu0 }
 0x16c   : > { %v1398_v4 = vadd.f32 %v1397_v3, %v1396_v2  ;;  %v1399_v5 = vpop.f32.mrb[58].mxu0 }
 0x16d   : > { %v1400_v6 = vpop.f32.mrb[59].mxu0  ;;  %v1075_v7 = vpop.f32.mrb[56].mxu1 }
 0x16e   : > { %v1401_v8 = vadd.f32 %v1400_v6, %v1399_v5  ;;  %v1076_v9 = vadd.f32 %v1398_v4, %v1075_v7  ;;  %v1077_v10 = vpop.f32.mrb[57].mxu1 }
 0x16f   : > { %v1078_v11 = vpop.f32.mrb[58].mxu1 }
 0x170   : > { %1118 = vst [vmem:[%s1746_s16 + $0xe0] sm:$0xff] %v1076_v9  ;;  %v1079_v12 = vadd.f32 %v1401_v8, %v1078_v11  ;;  %v1080_v13 = vpop.f32.mrb[59].mxu1 }
 0x172   : > { %1119 = vst [vmem:[%s1746_s16 + $0xe8] sm:$0xff] %v1079_v12  ;;  %v1402_v14 = vpop.f32.mrb[60].mxu0 }
 0x173   : > { %v1403_v15 = vpop.f32.mrb[61].mxu0 }
 0x174   : > { %v1404_v16 = vadd.f32 %v1403_v15, %v1402_v14  ;;  %v1405_v17 = vpop.f32.mrb[62].mxu0 }
 0x175   : > { %v1406_v18 = vpop.f32.mrb[63].mxu0  ;;  %v1083_v19 = vpop.f32.mrb[60].mxu1 }
 0x176   : > { %v1407_v20 = vadd.f32 %v1406_v18, %v1405_v17  ;;  %v1084_v21 = vadd.f32 %v1404_v16, %v1083_v19  ;;  %v1085_v22 = vpop.f32.mrb[61].mxu1 }
 0x177   : > { %v1086_v23 = vpop.f32.mrb[62].mxu1 }
 0x178   : > { %1120 = vst [vmem:[%s1746_s16 + $0xf0] sm:$0xff] %v1084_v21  ;;  %v1087_v24 = vadd.f32 %v1407_v20, %v1086_v23  ;;  %v1088_v25 = vpop.f32.mrb[63].mxu1 }
 0x17a   : > { %1121 = vst [vmem:[%s1746_s16 + $0xf8] sm:$0xff] %v1087_v24 }
 0x17b PF: > { %s12_s9 = sadd.s32 1, %s1544_s9  }
 0x17c   : > { %p9_p4 = scmp.ge.s32.totalorder %s12_s9, 4  }
 0x17e   :  { %11 = sbr.rel (!%p9_p4) target bundleno = 1 (0x1), region = 58 }

// kernel: _lambda_.51
= control target key start
LH: loop header
LB: loop body
LE: loop exit
PB: predicated region body
PF: predicated region fallthrough
CT: control target
= control target key end

     0   :  { %vm44_vm0 = vcmask 392192   ;;  %s113_s0 = inlined_call_operand.vmem [shape: f32[32,48], index: 0, kind: input, shape index: {}]   ;;  %s114_s1 = inlined_call_operand.vmem [shape: f32[1,48], index: 1, kind: input, shape index: {}]   ;;  %s115_s2 = inlined_call_operand.vmem [shape: f32[1,48], index: 2, kind: input, shape index: {}]   ;;  %s116_s3 = inlined_call_operand.vmem [shape: f32[32,48], index: 3, kind: output, shape index: {}]  }
   0x1   :  { %v14_v0 = vld [vmem:[%s113_s0] sm:$0xff]  ;;  %v15_v4 = vld [vmem:[%s113_s0 + $0x8] sm:$0xff]  ;;  %v16_v5 = vld [vmem:[%s113_s0 + $0x10] sm:$0xff] }
   0x2   :  { %v53_v1 = vld [vmem:[%s114_s1] ss:$0 sm:$0xff]  ;;  %v17_v6 = vld [vmem:[%s113_s0 + $0x18] sm:$0xff] }
   0x3   :  { %v54_v2 = vld [vmem:[%s115_s2] ss:$0 sm:$0xff]  ;;  %v25_v3 = vmul.f32 %v53_v1, %v14_v0  ;;  %v26_v7 = vmul.f32 %v53_v1, %v15_v4  ;;  %v27_v8 = vmul.f32 %v53_v1, %v16_v5  ;;  %v28_v9 = vmul.f32 %v53_v1, %v17_v6 }
   0x5   :  { %v36_v10 = vadd.f32 %v54_v2, %v25_v3  ;;  %v37_v11 = vadd.f32 %v54_v2, %v26_v7  ;;  %v38_v12 = vadd.f32 %v54_v2, %v27_v8  ;;  %v39_v13 = vadd.f32 %v54_v2, %v28_v9 }
   0x7   :  { %55 = vtanh.f32 %v36_v10 }
   0x8   :  { %57 = vtanh.f32 %v37_v11 }
   0x9   :  { %59 = vtanh.f32 %v38_v12 }
   0xa   :  { %61 = vtanh.f32 %v39_v13 }
  0x11   :  { %v56_v14 = vpop.eup %55 }
  0x12   :  { %v58_v15 = vpop.eup %57  ;;  %45 = vst.msk [vmem:[%s116_s3] sm:$0xff] %vm44_vm0, %v56_v14 }
  0x13   :  { %v60_v16 = vpop.eup %59  ;;  %46 = vst.msk [vmem:[%s116_s3 + $0x8] sm:$0xff] %vm44_vm0, %v58_v15 }
  0x14   :  { %v62_v17 = vpop.eup %61  ;;  %47 = vst.msk [vmem:[%s116_s3 + $0x10] sm:$0xff] %vm44_vm0, %v60_v16 }
  0x15   :  { %48 = vst.msk [vmem:[%s116_s3 + $0x18] sm:$0xff] %vm44_vm0, %v62_v17 }

</bundles_post_ra>
